<compile_context>
chip_gen: v7x
topology: tpu7x:2x2x1
jax: 0.10.0
libtpu: 0.0.40
codegen_flags: <defaults>
</compile_context>

<pallas_src>
import functools
import math

import jax
import jax.numpy as jnp
from jax.experimental import pallas as pl
from jax.experimental.pallas import tpu as pltpu


# --------------------------------- kernel ------------------------------------

def _seg_head_kernel(x_ref, w3_ref, shift_ref, wup_ref, uhb_ref, out_ref,
                     xpad_ref, xk_ref, *, img_rows):
    """Fused SegmentationHead forward for one block of images (one grid step).

    Wide layout: W is merged with channels into the lane dimension, and the
    block of images is flattened along rows (M = block_images * H).

      x_ref     (M, W*Cin)            f32   input rows of the image block
      w3_ref    (3*W*Cin, W*Chid)     bf16  K-stacked banded 3x3 conv weight
                                            (BN scale folded, kx shifts and
                                            zero column halo baked in)
      shift_ref (1, W*Chid)           f32   BN shift, tiled across W
      wup_ref   (W*Chid, Wout*Ccp)    bf16  fused [1x1 conv + width upsample]
      uhb_ref   (B*Hout, M)           bf16  block-diag height upsample kron(I_B, Uh)
      out_ref   (B*Hout, Wout*Ccp)    f32   output rows of the image block
      xpad_ref  (M+2, W*Cin)          f32   scratch: row-halo-padded rows
      xk_ref    (M, 3*W*Cin)          bf16  scratch: merged-K conv operand
    """
    M, WC = x_ref.shape
    H = img_rows

    x = x_ref[...]                                          # (M, WC) f32

    # Row-halo pad into scratch (column halo is baked into the banded weight).
    zero_row = jnp.zeros((1, WC), jnp.float32)
    xpad_ref[0:1, :] = zero_row
    xpad_ref[M + 1:M + 2, :] = zero_row
    xpad_ref[1:M + 1, :] = x

    # Merged-K conv operand: slab ky holds the row-(ky-1)-shifted image rows.
    # Per-image boundary rows are zeroed so stacked images don't bleed.
    row_in_img = jax.lax.broadcasted_iota(jnp.int32, (M, 1), 0) % H
    up = jnp.where(row_in_img == 0, 0.0, xpad_ref[0:M, :])          # ky = 0
    down = jnp.where(row_in_img == H - 1, 0.0, xpad_ref[2:M + 2, :])  # ky = 2
    xk_ref[:, 0:WC] = up.astype(jnp.bfloat16)
    xk_ref[:, WC:2 * WC] = x.astype(jnp.bfloat16)                   # ky = 1
    xk_ref[:, 2 * WC:3 * WC] = down.astype(jnp.bfloat16)

    # 3x3 conv (+ folded BN scale): ONE bf16 MXU matmul, K = 3*W*Cin, f32 acc.
    acc = jnp.dot(xk_ref[...], w3_ref[...],
                  preferred_element_type=jnp.float32)               # (M, W*Chid)

    # BN shift + ReLU epilogue (VPU, f32).
    h = jnp.maximum(acc + shift_ref[...], 0.0)

    # 1x1 conv fused with the width-direction bilinear upsample, then the
    # block-diagonal height-direction upsample.  bf16 operands, f32 acc.
    yw = jnp.dot(h.astype(jnp.bfloat16), wup_ref[...],
                 preferred_element_type=jnp.float32)                # (M, Wout*Ccp)
    out = jnp.dot(uhb_ref[...], yw.astype(jnp.bfloat16),
                  preferred_element_type=jnp.float32)               # (B*Hout, Wout*Ccp)
    out_ref[...] = out.astype(out_ref.dtype)


# ------------------------- parameter / operand prep ---------------------------

def upsample_matrix(n_in, n_out):
    """Bilinear interpolation matrix (n_out, n_in), align_corners=True."""
    if n_in == 1:
        return jnp.ones((n_out, 1), jnp.float32)
    src = jnp.arange(n_out, dtype=jnp.float32) * ((n_in - 1) / (n_out - 1))
    i0 = jnp.clip(jnp.floor(src).astype(jnp.int32), 0, n_in - 2)
    frac = src - i0.astype(jnp.float32)
    rows = jnp.arange(n_out)
    u = jnp.zeros((n_out, n_in), jnp.float32)
    u = u.at[rows, i0].add(1.0 - frac)
    u = u.at[rows, i0 + 1].add(frac)
    return u


def _prep_operands(p, H, W, block_images, scale_factor, cc_pad, eps=1e-5):
    """Fold BN, build banded conv weight and fused upsample operands (bf16)."""
    w1 = p["w1"]                                    # (3, 3, Cin, Chid) HWIO
    w2 = p["w2"]                                    # (Chid, Cc)
    Cin, Chid = w1.shape[2], w1.shape[3]
    Cc = w2.shape[1]

    scale = p["gamma"] / jnp.sqrt(p["var"] + eps)   # (Chid,)
    w1f = w1 * scale                                # BN scale folded into conv
    shift = p["beta"] - p["mean"] * scale           # (Chid,)

    # Banded 3x3 weight, one (W*Cin, W*Chid) band per kernel row ky, stacked
    # along K so the conv is a single matmul with K = 3*W*Cin.
    bands = []
    for ky in range(3):
        band = jnp.zeros((W * Cin, W * Chid), jnp.float32)
        for kx in range(3):
            band = band + jnp.kron(
                jnp.eye(W, k=1 - kx, dtype=jnp.float32), w1f[ky, kx])
        bands.append(band)
    w3 = jnp.concatenate(bands, axis=0).astype(jnp.bfloat16)   # (3*W*Cin, W*Chid)

    shift_wide = jnp.tile(shift, W).reshape(1, W * Chid)       # f32 epilogue

    uh = upsample_matrix(H, H * scale_factor)                  # (Hout, H)
    uw = upsample_matrix(W, W * scale_factor)                  # (Wout, W)
    w2p = jnp.pad(w2, ((0, 0), (0, cc_pad - Cc)))              # pad classes
    wup = jnp.kron(uw.T, w2p).astype(jnp.bfloat16)             # (W*Chid, Wout*Ccp)
    uhb = jnp.kron(jnp.eye(block_images, dtype=jnp.float32),
                   uh).astype(jnp.bfloat16)                    # (B*Hout, B*H)
    return w3, shift_wide, wup, uhb


# --------------------------------- wrapper ------------------------------------

def segmentation_head(x, p, *, scale_factor, block_images=None):
    """x: (N, H, W, Cin) NHWC float32.  Returns (N, H*s, W*s, num_classes)."""
    N, H, W, Cin = x.shape
    Chid = p["w1"].shape[3]
    Cc = p["w2"].shape[1]
    Hout, Wout = H * scale_factor, W * scale_factor

    if H % 8 != 0:
        raise ValueError("row-stacked wide layout requires H % 8 == 0")

    # Images per grid step so the matmul M dimension is >= ~128 rows.
    if block_images is None:
        block_images = max(1, min(N, -(-128 // H)))
    B = block_images
    Npad = -(-N // B) * B

    # Pad num_classes so the output row is a multiple of 128 lanes.
    step = 128 // math.gcd(Wout, 128)
    Cc_pad = step * (-(-Cc // step))
    if Cc_pad > max(Cc, 8) * 2:          # don't over-pad for awkward Wout
        Cc_pad = Cc

    w3, shift_wide, wup, uhb = _prep_operands(p, H, W, B, scale_factor, Cc_pad)

    M = B * H
    WC = W * Cin
    WCh = W * Chid
    WoCcp = Wout * Cc_pad

    x_rows = x.reshape(N * H, WC)                   # lane-dense wide layout
    if Npad != N:
        x_rows = jnp.pad(x_rows, ((0, (Npad - N) * H), (0, 0)))

    kernel = functools.partial(_seg_head_kernel, img_rows=H)
    out_rows = pl.pallas_call(
        kernel,
        out_shape=jax.ShapeDtypeStruct((Npad * Hout, WoCcp), x.dtype),
        grid=(Npad // B,),
        in_specs=[
            pl.BlockSpec((M, WC), lambda n: (n, 0)),
            pl.BlockSpec((3 * WC, WCh), lambda n: (0, 0)),
            pl.BlockSpec((1, WCh), lambda n: (0, 0)),
            pl.BlockSpec((WCh, WoCcp), lambda n: (0, 0)),
            pl.BlockSpec((B * Hout, M), lambda n: (0, 0)),
        ],
        out_specs=pl.BlockSpec((B * Hout, WoCcp), lambda n: (n, 0)),
        scratch_shapes=[
            pltpu.VMEM((M + 2, WC), jnp.float32),     # row-halo padded rows
            pltpu.VMEM((M, 3 * WC), jnp.bfloat16),    # merged-K conv operand
        ],
        compiler_params=pltpu.CompilerParams(
            dimension_semantics=("parallel",),
            vmem_limit_bytes=32 * 1024 * 1024),
    )(x_rows, w3, shift_wide, wup, uhb)

    out = out_rows.reshape(Npad, Hout, Wout, Cc_pad)
    return out[:N, :, :, :Cc]


# ------------------------------ init & reference ------------------------------

def init_params(key, Cin, Chid, Cc):
    k1, k2, k3, k4, k5, k6 = jax.random.split(key, 6)
    p = {}
    p["w1"] = 0.15 * jax.random.normal(k1, (3, 3, Cin, Chid), jnp.float32)
    p["gamma"] = 1.0 + 0.1 * jax.random.normal(k2, (Chid,), jnp.float32)
    p["beta"] = 0.1 * jax.random.normal(k3, (Chid,), jnp.float32)
    p["mean"] = 0.1 * jax.random.normal(k4, (Chid,), jnp.float32)
    p["var"] = 1.0 + 0.2 * jax.random.uniform(k5, (Chid,), jnp.float32)
    p["w2"] = 0.2 * jax.random.normal(k6, (Chid, Cc), jnp.float32)
    return p


def reference(x, p, scale_factor, eps=1e-5):
    """Pure-JAX f32 reference: conv3x3 -> BN(inference) -> ReLU -> conv1x1 -> up."""
    prec = jax.lax.Precision.HIGHEST
    y = jax.lax.conv_general_dilated(
        x, p["w1"], (1, 1), ((1, 1), (1, 1)),
        dimension_numbers=("NHWC", "HWIO", "NHWC"), precision=prec)
    scale = p["gamma"] / jnp.sqrt(p["var"] + eps)
    y = (y - p["mean"]) * scale + p["beta"]
    y = jnp.maximum(y, 0.0)
    y = jnp.einsum("nhwc,cd->nhwd", y, p["w2"], precision=prec)
    uh = upsample_matrix(x.shape[1], x.shape[1] * scale_factor)
    uw = upsample_matrix(x.shape[2], x.shape[2] * scale_factor)
    return jnp.einsum("Hh,nhwc,Ww->nHWc", uh, y, uw, precision=prec)


# ----------------------------------- main --------------------------------------

if __name__ == "__main__":
    N, H, W = 16, 16, 16
    Cin, Chid, Cc = 16, 32, 3        # in_channels, hidden_channels, num_classes
    scale_factor = 4

    key = jax.random.PRNGKey(0)
    kx_, kp_ = jax.random.split(key)
    x = jax.random.normal(kx_, (N, H, W, Cin), jnp.float32)
    params = init_params(kp_, Cin, Chid, Cc)

    fwd = jax.jit(functools.partial(segmentation_head,
                                    scale_factor=scale_factor))
    out = jax.block_until_ready(fwd(x, params))

    assert out.shape == (N, H * scale_factor, W * scale_factor, Cc), out.shape
    assert bool(jnp.all(jnp.isfinite(out)))

    ref = reference(x, params, scale_factor)
    max_err = float(jnp.max(jnp.abs(out - ref)))
    mean_err = float(jnp.mean(jnp.abs(out - ref)))
    # bf16 MXU operands vs. an f32 HIGHEST-precision reference: loose max-abs
    # tolerance plus a mean-abs check still robustly catches structural bugs
    # (indexing / mask / weight-layout errors are O(1), not O(1e-2)).
    if max_err > 1.5e-1 or mean_err > 2.5e-2:
        raise RuntimeError(
            f"Pallas output mismatch vs reference, "
            f"max_err={max_err}, mean_err={mean_err}")

    print("KERNEL_OK")
</pallas_src>

<mosaic_0001>
module attributes {stable_mosaic.version = 11 : i64} {
  func.func private @main(%arg0: i32) attributes {dimension_semantics = [#tpu.dimension_semantics<core_parallel>], iteration_bounds = array<i64: 2>, tpu.core_type = #tpu.core_type<sc_scalar_subcore>, window_params = []} {
    return
  }
}

module attributes {stable_mosaic.version = 11 : i64} {
  func.func private @main(%arg0: i32) attributes {dimension_semantics = [#tpu.dimension_semantics<core_parallel>], iteration_bounds = array<i64: 2>, tpu.core_type = #tpu.core_type<sc_scalar_subcore>, window_params = []} {
    return
  }
}

module attributes {stable_mosaic.version = 11 : i64} {
  func.func @_seg_head_kernel(%arg0: i32, %arg1: memref<128x256xf32, #tpu.memory_space<vmem>>, %arg2: memref<768x512xbf16, #tpu.memory_space<vmem>>, %arg3: memref<1x512xf32, #tpu.memory_space<vmem>>, %arg4: memref<512x256xbf16, #tpu.memory_space<vmem>>, %arg5: memref<512x128xbf16, #tpu.memory_space<vmem>>, %arg6: memref<512x256xf32, #tpu.memory_space<vmem>>, %arg7: memref<130x256xf32, #tpu.memory_space<vmem>>, %arg8: memref<128x768xbf16, #tpu.memory_space<vmem>>) attributes {dimension_semantics = [#tpu.dimension_semantics<parallel>], iteration_bounds = array<i64: 2>, scalar_prefetch = 0 : i64, scratch_operands = 2 : i64, tpu.core_type = #tpu.core_type<tc>, window_params = [{transform_indices = @transform_0, window_bounds = array<i64: 128, 256>}, {pipeline_mode = #tpu.pipeline_mode<synchronous>, transform_indices = @transform_1, window_bounds = array<i64: 768, 512>}, {pipeline_mode = #tpu.pipeline_mode<synchronous>, transform_indices = @transform_2, window_bounds = array<i64: 1, 512>}, {pipeline_mode = #tpu.pipeline_mode<synchronous>, transform_indices = @transform_3, window_bounds = array<i64: 512, 256>}, {pipeline_mode = #tpu.pipeline_mode<synchronous>, transform_indices = @transform_4, window_bounds = array<i64: 512, 128>}, {transform_indices = @transform_5, window_bounds = array<i64: 512, 256>}]} {
    %c0 = arith.constant 0 : index
    %c0_0 = arith.constant 0 : index
    %0 = vector.load %arg1[%c0, %c0_0] : memref<128x256xf32, #tpu.memory_space<vmem>>, vector<128x256xf32>
    %cst = arith.constant 0.000000e+00 : f32
    %1 = vector.broadcast %cst : f32 to vector<1x256xf32>
    %c0_1 = arith.constant 0 : index
    %c0_2 = arith.constant 0 : index
    %2 = vector.load %arg7[%c0_1, %c0_2] : memref<130x256xf32, #tpu.memory_space<vmem>>, vector<1x256xf32>
    tpu.vector_store %arg7[%c0_1, %c0_2], %1 {strides = array<i32>} : memref<130x256xf32, #tpu.memory_space<vmem>>, vector<1x256xf32>,
    %c129 = arith.constant 129 : index
    %c0_3 = arith.constant 0 : index
    %3 = vector.load %arg7[%c129, %c0_3] : memref<130x256xf32, #tpu.memory_space<vmem>>, vector<1x256xf32>
    tpu.vector_store %arg7[%c129, %c0_3], %1 {strides = array<i32>} : memref<130x256xf32, #tpu.memory_space<vmem>>, vector<1x256xf32>,
    %c1 = arith.constant 1 : index
    %c0_4 = arith.constant 0 : index
    %4 = vector.load %arg7[%c1, %c0_4] : memref<130x256xf32, #tpu.memory_space<vmem>>, vector<128x256xf32>
    tpu.vector_store %arg7[%c1, %c0_4], %0 {strides = array<i32>} : memref<130x256xf32, #tpu.memory_space<vmem>>, vector<128x256xf32>,
    %5 = tpu.iota {dimensions = array<i32: 0>} : vector<128x1xi32>
    %c16_i32 = arith.constant 16 : i32
    %c0_i32 = arith.constant 0 : i32
    %6 = arith.cmpi eq, %c16_i32, %c0_i32 : i32
    %c1_i32 = arith.constant 1 : i32
    %7 = arith.select %6, %c1_i32, %c16_i32 : i32
    %8 = vector.broadcast %7 : i32 to vector<128x1xi32>
    %9 = arith.remsi %5, %8 : vector<128x1xi32>
    %c0_i32_5 = arith.constant 0 : i32
    %10 = vector.broadcast %c0_i32_5 : i32 to vector<128x1xi32>
    %11 = arith.cmpi ne, %9, %10 : vector<128x1xi32>
    %c0_i32_6 = arith.constant 0 : i32
    %12 = vector.broadcast %c0_i32_6 : i32 to vector<128x1xi32>
    %13 = arith.cmpi slt, %9, %12 : vector<128x1xi32>
    %c0_i32_7 = arith.constant 0 : i32
    %14 = arith.cmpi slt, %7, %c0_i32_7 : i32
    %15 = vector.broadcast %14 : i1 to vector<128x1xi1>
    %16 = vector.broadcast %15 : vector<128x1xi1> to vector<128x1xi1>
    %17 = arith.xori %13, %16 : vector<128x1xi1>
    %18 = arith.andi %17, %11 : vector<128x1xi1>
    %19 = vector.broadcast %7 : i32 to vector<128x1xi32>
    %20 = arith.addi %9, %19 : vector<128x1xi32>
    %21 = arith.select %18, %20, %9 : vector<128x1xi1>, vector<128x1xi32>
    %c0_i32_8 = arith.constant 0 : i32
    %22 = vector.broadcast %c0_i32_8 : i32 to vector<128x1xi32>
    %23 = arith.cmpi eq, %21, %22 : vector<128x1xi32>
    %c0_9 = arith.constant 0 : index
    %c0_10 = arith.constant 0 : index
    %24 = vector.load %arg7[%c0_9, %c0_10] : memref<130x256xf32, #tpu.memory_space<vmem>>, vector<128x256xf32>
    %cst_11 = arith.constant 0.000000e+00 : f32
    %25 = vector.shape_cast %23 : vector<128x1xi1> to vector<128x1xi1>
    %26 = vector.broadcast %25 : vector<128x1xi1> to vector<128x256xi1>
    %27 = vector.broadcast %cst_11 : f32 to vector<128x256xf32>
    %28 = arith.select %26, %27, %24 : vector<128x256xi1>, vector<128x256xf32>
    %c15_i32 = arith.constant 15 : i32
    %29 = vector.broadcast %c15_i32 : i32 to vector<128x1xi32>
    %30 = arith.cmpi eq, %21, %29 : vector<128x1xi32>
    %c2 = arith.constant 2 : index
    %c0_12 = arith.constant 0 : index
    %31 = vector.load %arg7[%c2, %c0_12] : memref<130x256xf32, #tpu.memory_space<vmem>>, vector<128x256xf32>
    %cst_13 = arith.constant 0.000000e+00 : f32
    %32 = vector.shape_cast %30 : vector<128x1xi1> to vector<128x1xi1>
    %33 = vector.broadcast %32 : vector<128x1xi1> to vector<128x256xi1>
    %34 = vector.broadcast %cst_13 : f32 to vector<128x256xf32>
    %35 = arith.select %33, %34, %31 : vector<128x256xi1>, vector<128x256xf32>
    %36 = arith.truncf %28 : vector<128x256xf32> to vector<128x256xbf16>
    %c0_14 = arith.constant 0 : index
    %c0_15 = arith.constant 0 : index
    %37 = vector.load %arg8[%c0_14, %c0_15] : memref<128x768xbf16, #tpu.memory_space<vmem>>, vector<128x256xbf16>
    tpu.vector_store %arg8[%c0_14, %c0_15], %36 {strides = array<i32>} : memref<128x768xbf16, #tpu.memory_space<vmem>>, vector<128x256xbf16>,
    %38 = arith.truncf %0 : vector<128x256xf32> to vector<128x256xbf16>
    %c0_16 = arith.constant 0 : index
    %c256 = arith.constant 256 : index
    %39 = vector.load %arg8[%c0_16, %c256] : memref<128x768xbf16, #tpu.memory_space<vmem>>, vector<128x256xbf16>
    tpu.vector_store %arg8[%c0_16, %c256], %38 {strides = array<i32>} : memref<128x768xbf16, #tpu.memory_space<vmem>>, vector<128x256xbf16>,
    %40 = arith.truncf %35 : vector<128x256xf32> to vector<128x256xbf16>
    %c0_17 = arith.constant 0 : index
    %c512 = arith.constant 512 : index
    %41 = vector.load %arg8[%c0_17, %c512] : memref<128x768xbf16, #tpu.memory_space<vmem>>, vector<128x256xbf16>
    tpu.vector_store %arg8[%c0_17, %c512], %40 {strides = array<i32>} : memref<128x768xbf16, #tpu.memory_space<vmem>>, vector<128x256xbf16>,
    %c0_18 = arith.constant 0 : index
    %c0_19 = arith.constant 0 : index
    %42 = vector.load %arg8[%c0_18, %c0_19] : memref<128x768xbf16, #tpu.memory_space<vmem>>, vector<128x768xbf16>
    %c0_20 = arith.constant 0 : index
    %c0_21 = arith.constant 0 : index
    %43 = vector.load %arg2[%c0_20, %c0_21] : memref<768x512xbf16, #tpu.memory_space<vmem>>, vector<768x512xbf16>
    %cst_22 = arith.constant dense<0.000000e+00> : vector<128x512xf32>
    %44 = tpu.matmul %42, %43, %cst_22 {dimension_numbers = #tpu.dot_dimension_numbers<[1], [0], [0], [1], [0, 0, 1, 1], [], []>} : vector<128x768xbf16>, vector<768x512xbf16>, vector<128x512xf32> -> vector<128x512xf32>
    %c0_23 = arith.constant 0 : index
    %c0_24 = arith.constant 0 : index
    %45 = vector.load %arg3[%c0_23, %c0_24] : memref<1x512xf32, #tpu.memory_space<vmem>>, vector<1x512xf32>
    %46 = vector.broadcast %45 : vector<1x512xf32> to vector<128x512xf32>
    %47 = arith.addf %44, %46 : vector<128x512xf32>
    %cst_25 = arith.constant 0.000000e+00 : f32
    %48 = vector.broadcast %cst_25 : f32 to vector<128x512xf32>
    %49 = arith.maximumf %47, %48 : vector<128x512xf32>
    %50 = arith.truncf %49 : vector<128x512xf32> to vector<128x512xbf16>
    %c0_26 = arith.constant 0 : index
    %c0_27 = arith.constant 0 : index
    %51 = vector.load %arg4[%c0_26, %c0_27] : memref<512x256xbf16, #tpu.memory_space<vmem>>, vector<512x256xbf16>
    %cst_28 = arith.constant dense<0.000000e+00> : vector<128x256xf32>
    %52 = tpu.matmul %50, %51, %cst_28 {dimension_numbers = #tpu.dot_dimension_numbers<[1], [0], [0], [1], [0, 0, 1, 1], [], []>} : vector<128x512xbf16>, vector<512x256xbf16>, vector<128x256xf32> -> vector<128x256xf32>
    %c0_29 = arith.constant 0 : index
    %c0_30 = arith.constant 0 : index
    %53 = vector.load %arg5[%c0_29, %c0_30] : memref<512x128xbf16, #tpu.memory_space<vmem>>, vector<512x128xbf16>
    %54 = arith.truncf %52 : vector<128x256xf32> to vector<128x256xbf16>
    %cst_31 = arith.constant dense<0.000000e+00> : vector<512x256xf32>
    %55 = tpu.matmul %53, %54, %cst_31 {dimension_numbers = #tpu.dot_dimension_numbers<[1], [0], [0], [1], [0, 0, 1, 1], [], []>} : vector<512x128xbf16>, vector<128x256xbf16>, vector<512x256xf32> -> vector<512x256xf32>
    %c0_32 = arith.constant 0 : index
    %c0_33 = arith.constant 0 : index
    %56 = vector.load %arg6[%c0_32, %c0_33] : memref<512x256xf32, #tpu.memory_space<vmem>>, vector<512x256xf32>
    tpu.vector_store %arg6[%c0_32, %c0_33], %55 {strides = array<i32>} : memref<512x256xf32, #tpu.memory_space<vmem>>, vector<512x256xf32>,
    return
  }
  func.func @transform_0(%arg0: i32) -> (i32, i32) {
    %c0_i32 = arith.constant 0 : i32
    %c0_i32_0 = arith.constant 0 : i32
    return %arg0, %c0_i32 : i32, i32
  }
  func.func @transform_1(%arg0: i32) -> (i32, i32) {
    %c0_i32 = arith.constant 0 : i32
    %c0_i32_0 = arith.constant 0 : i32
    %c0_i32_1 = arith.constant 0 : i32
    return %c0_i32, %c0_i32_0 : i32, i32
  }
  func.func @transform_2(%arg0: i32) -> (i32, i32) {
    %c0_i32 = arith.constant 0 : i32
    %c0_i32_0 = arith.constant 0 : i32
    %c0_i32_1 = arith.constant 0 : i32
    return %c0_i32, %c0_i32_0 : i32, i32
  }
  func.func @transform_3(%arg0: i32) -> (i32, i32) {
    %c0_i32 = arith.constant 0 : i32
    %c0_i32_0 = arith.constant 0 : i32
    %c0_i32_1 = arith.constant 0 : i32
    return %c0_i32, %c0_i32_0 : i32, i32
  }
  func.func @transform_4(%arg0: i32) -> (i32, i32) {
    %c0_i32 = arith.constant 0 : i32
    %c0_i32_0 = arith.constant 0 : i32
    %c0_i32_1 = arith.constant 0 : i32
    return %c0_i32, %c0_i32_0 : i32, i32
  }
  func.func @transform_5(%arg0: i32) -> (i32, i32) {
    %c0_i32 = arith.constant 0 : i32
    %c0_i32_0 = arith.constant 0 : i32
    return %arg0, %c0_i32 : i32, i32
  }
}

</mosaic_0001>

<bundles_post_ra>
// kernel: tile.8
= control target key start
LH: loop header
LB: loop body
LE: loop exit
PB: predicated region body
PF: predicated region fallthrough
CT: control target
= control target key end

     0   :  { %s28_s0 = inlined_call_operand.vmem [shape: f32[32], index: 0, kind: input, shape index: {}]   ;;  %s29_s1 = inlined_call_operand.vmem [shape: f32[16,32], index: 1, kind: output, shape index: {}]  }
   0x1   :  { %v4_v0 = vld [vmem:[%s28_s0] ss:$0 sm:$0xff] }
   0x2   :  { %5 = vst [vmem:[%s29_s1] sm:$0xff] %v4_v0  ;;  %8 = vst [vmem:[%s29_s1 + $0x8] sm:$0xff] %v4_v0 }

// kernel: tile.9
= control target key start
LH: loop header
LB: loop body
LE: loop exit
PB: predicated region body
PF: predicated region fallthrough
CT: control target
= control target key end

     0   :  { %s57_s8 = smov 96   ;;  %vm3_vm0 = vcmask 261120   ;;  %s59_s15 = smov 64   ;;  %vm9_vm1 = vcmask 1048320   ;;  %vm15_vm2 = vcmask 785920   ;;  %vm21_vm3 = vcmask 523520   ;;  %s94_s0 = inlined_call_operand.vmem [shape: f32[16,32], index: 0, kind: input, shape index: {}]   ;;  %s95_s1 = inlined_call_operand.vmem [shape: f32[1,512], index: 1, kind: output, shape index: {}]  }
   0x1   :  { %v48_v0 = vld [vmem:[%s94_s0 + $0x3] ss:$4 sm:$0xf]   ;;  %v49_v1 = vld [vmem:[%s94_s0 + $0x2] ss:$4 sm:$0xf]  }
   0x2   :  { %7 = vrot.lane.b32.xlu0 %v48_v0, %s57_s8  ;;  %v50_v2 = vld [vmem:[%s94_s0 + $0x1] ss:$4 sm:$0xf]   ;;  %v2_v3 = vld [vmem:[%s94_s0] ss:$4 sm:$0xf]  }
   0x3   :  { %s58_s0 = smov 32   ;;  %4 = vst.msk [vmem:[#allocation0] ss:$8 sm:$0xf] %vm3_vm0, %v2_v3  }
   0x4   :  { %19 = vrot.lane.b32.xlu1 %v50_v2, %s58_s0 }
   0x6   :  { %13 = vrot.lane.b32.xlu0 %v49_v1, %s59_s15 }
  0x74   :  { %v8_v4 = vpop.permute.xlu0 %7  }
  0x75   :  { %10 = vst.msk [vmem:[#allocation0] ss:$8 sm:$0xf] %vm9_vm1, %v8_v4  }
  0x76   :  { %v20_v5 = vpop.permute.xlu1 %19  }
  0x78   :  { %v14_v6 = vpop.permute.xlu0 %13  }
  0x79   :  { %16 = vst.msk [vmem:[#allocation0] ss:$8 sm:$0xf] %vm15_vm2, %v14_v6  }
  0x7a   :  { %22 = vst.msk [vmem:[#allocation0] ss:$8 sm:$0xf] %vm21_vm3, %v20_v5  }
  0x81   :  { %v26_v7 = vld [vmem:[#allocation0] sm:$0x1]  ;;  %v30_v8 = vld [vmem:[#allocation0 + $0x8] sm:$0x1]  ;;  %v35_v9 = vld [vmem:[#allocation0 + $0x10] sm:$0x1] }
  0x82   :  { %28 = vst [vmem:[%s95_s1] sm:$0x1] %v26_v7  ;;  %51 = vst [vmem:[%s95_s1 + $0x1] sm:$0x1] %v30_v8  ;;  %v41_v10 = vld [vmem:[#allocation0 + $0x18] sm:$0x1] }
  0x83   :  { %52 = vst [vmem:[%s95_s1 + $0x2] sm:$0x1] %v35_v9  ;;  %53 = vst [vmem:[%s95_s1 + $0x3] sm:$0x1] %v41_v10 }

// kernel: segmentation_head.1
= control target key start
LH: loop header
LB: loop body
LE: loop exit
PB: predicated region body
PF: predicated region fallthrough
CT: control target
= control target key end

     0   :  { %s5756_s18 = smov 0   ;;  %s7816_s0 = inlined_call_operand.vmem [shape: f32[256,256], index: 0, kind: input, shape index: {}]   ;;  %s7817_s1 = inlined_call_operand.vmem [shape: bf16[768,512], index: 1, kind: input, shape index: {}]   ;;  %s7818_s2 = inlined_call_operand.vmem [shape: f32[1,512], index: 2, kind: input, shape index: {}]   ;;  %s7819_s3 = inlined_call_operand.vmem [shape: bf16[512,256], index: 3, kind: input, shape index: {}]   ;;  %s7820_s4 = inlined_call_operand.vmem [shape: bf16[512,128], index: 4, kind: input, shape index: {}]   ;;  %s7821_s5 = inlined_call_operand.vmem [shape: f32[1024,256], index: 5, kind: output, shape index: {}]  }
   0x1 LB: > { %s4489_s19 = sadd.s32 4294967295, %s5721_s18   ;;  %p4493_p0 = scmp.ge.s32.totalorder %s5721_s18, 1  ;;  %s5721_s18 = sphi %s5756_s18, %s15_s18  }
   0x2   : > { %p189_p1 = scmp.lt.s32.totalorder %s5721_s18, 3 }
   0x4   : > { %p190_p2 = pnand %p4493_p0, %p189_p1 }
   0x6   : > { %193 = sbr.rel (%p190_p2) target bundleno = 1235 (0x4d3), region = 40 }
   0xd   : > { %v5299_v0 = vld [vmem:[%s7817_s1 + $0x4] ss:$16 sps:$4 sm:$0xff]   ;;  %v266_v1 = vlaneseq  ;;  %v5301_v2 = vld [vmem:[%s7817_s1] ss:$16 sps:$4 sm:$0xff]   ;;  %v5723_v5 = vmov 0.0   ;;  %s4494_s30 = sshll.u32 %s4489_s19, 4 }
   0xe   : > { %2294 = vmatprep.subr.bf16.mxu0 %v5299_v0  ;;  %v5302_v3 = vld [vmem:[%s7817_s1 + $0x24] ss:$16 sps:$4 sm:$0xff]   ;;  %v5304_v4 = vld [vmem:[%s7817_s1 + $0x20] ss:$16 sps:$4 sm:$0xff]   ;;  %p220_p3 = scmp.lt.s32.totalorder %s4494_s30, 31  ;;  %vm307_vm1 = vcmask 1040384  }
   0xf   : > { %vm268_vm0 = vcmp.lt.s32.totalorder %v266_v1, 256  ;;  %2295 = vmatpush1.bf16.msra.mxu0 %v5301_v2  ;;  %v5305_v6 = vld [vmem:[%s7817_s1 + $0x44] ss:$16 sps:$4 sm:$0xff]   ;;  %v5781_v7 = vshrl.u32 %v266_v1, 7  ;;  %v5307_v9 = vld [vmem:[%s7817_s1 + $0x40] ss:$16 sps:$4 sm:$0xff]  }
  0x10   : > { %270 = vst.msk [vmem:[#allocation2] ss:$8 sm:$0x3] %vm268_vm0, %v5723_v5  ;;  %273 = vst.msk [vmem:[#allocation2 + $0x101] ss:$8 sm:$0x3] %vm268_vm0, %v5723_v5  ;;  %2296 = vmatprep.subr.bf16.mxu0 %v5302_v3 }
  0x11   : > { %v459_v8 = vand.u32 15, %v5781_v7  ;;  %v5788_v10 = vadd.s32 16, %v5781_v7  ;;  %v5308_v11 = vld [vmem:[%s7817_s1 + $0x64] ss:$16 sps:$4 sm:$0xff]   ;;  %v5795_v13 = vadd.s32 32, %v5781_v7  ;;  %v5798_v14 = vadd.s32 48, %v5781_v7 }
  0x12   : > { %v5310_v15 = vld [vmem:[%s7817_s1 + $0x60] ss:$16 sps:$4 sm:$0xff]   ;;  %s7955_s30 = smov (!%p220_p3, %s4494_s30), 31  ;;  %v5311_v16 = vld [vmem:[%s7817_s1 + $0x84] ss:$16 sps:$4 sm:$0xff]   ;;  %v5808_v18 = vadd.s32 64, %v5781_v7 }
  0x13   : > { %2297 = vmatpush1.bf16.msra.mxu0 %v5304_v4  ;;  %v473_v12 = vand.u32 15, %v5788_v10  ;;  %v5313_v20 = vld [vmem:[%s7817_s1 + $0x80] ss:$16 sps:$4 sm:$0xff]   ;;  %s4790_s16 = sshll.u32 %s7955_s30, 4  ;;  %v5314_v21 = vld [vmem:[%s7817_s1 + $0xa4] ss:$16 sps:$4 sm:$0xff]  }
  0x14   : > { %2298 = vmatprep.subr.bf16.mxu0 %v5305_v6  ;;  %v5819_v23 = vadd.s32 80, %v5781_v7  ;;  %s5824_s23 = scalar_lea.vmem %s7816_s0, %s4790_s16  ;;  %v5827_v24 = vadd.s32 96, %v5781_v7  ;;  %v5316_v25 = vld [vmem:[%s7817_s1 + $0xa0] ss:$16 sps:$4 sm:$0xff]   ;;  %v5317_v26 = vld [vmem:[%s7817_s1 + $0xc4] ss:$16 sps:$4 sm:$0xff]  }
  0x15   : > { %v5319_v28 = vld [vmem:[%s7817_s1 + $0xc0] ss:$16 sps:$4 sm:$0xff]   ;;  %v235_v29 = vld [vmem:[%s5824_s23 + $0x8] sm:$0xff]  ;;  %v237_v30 = vld [vmem:[%s5824_s23 + $0x18] sm:$0xff]  ;;  %v5843_v32 = vadd.s32 112, %v5781_v7  ;;  %vm845_vm2 = vcmask 1045504  }
  0x16   : > { %v5320_v33 = vld [vmem:[%s7817_s1 + $0xe4] ss:$16 sps:$4 sm:$0xff]   ;;  %v5849_v34 = vld [vmem:[%s5824_s23 + $0x28] sm:$0xff]  ;;  %v309_v35 = vrot.slane %v235_v29, 7  ;;  %v312_v36 = vrot.slane %v237_v30, 7  ;;  %v5856_v40 = vpack.c.bf16 %v237_v30, %v235_v29  ;;  %vm5272_vm3 = vcmp.ne.s32.totalorder %v459_v8, 0 }
  0x17   : > { %2299 = vmatpush1.bf16.msra.mxu0 %v5307_v9  ;;  %v316_v37 = vrot.slane %v5849_v34, 7  ;;  %v5347_v38 = vld [vmem:[%s7817_s1 + $0x20c] ss:$16 sps:$4 sm:$0xff]   ;;  %v234_v39 = vld [vmem:[%s5824_s23] sm:$0xff]  ;;  %v236_v42 = vld [vmem:[%s5824_s23 + $0x10] sm:$0xff]  ;;  %vm5724_vm4 = vmmov 1  }
  0x18   : > { %2300 = vmatprep.subr.bf16.mxu0 %v5308_v11  ;;  %7847 = vst [vmem:[#allocation4_spill] sm:$0xff] %v5856_v40  ;;  %v5859_v41 = vsel %vm307_vm1, %v309_v35, %v312_v36  ;;  %405 = vst [vmem:[#allocation2 + $0x8] sm:$0xfe] %v309_v35  ;;  %v308_v43 = vrot.slane %v234_v39, 7  ;;  %v5322_v45 = vld [vmem:[%s7817_s1 + $0xe0] ss:$16 sps:$4 sm:$0xff]   ;;  %2746 = vmatprep.subr.bf16.mxu1 %v5347_v38  ;;  %v5871_v49 = vpack.c.bf16 %v236_v42, %v234_v39 }
  0x19   : > { %v5867_v46 = vsel %vm307_vm1, %v312_v36, %v316_v37  ;;  %v7824_v47 = vrot.slane %v5859_v41, 2  ;;  %v310_v48 = vrot.slane %v236_v42, 7  ;;  %2778 = vmatprep.mubr.bf16.mxu1 %v5856_v40  ;;  %v5352_v51 = vld [vmem:[%s7817_s1 + $0x208] ss:$16 sps:$4 sm:$0xff]   ;;  %v5353_v53 = vld [vmem:[%s7817_s1 + $0x22c] ss:$16 sps:$4 sm:$0xff]   ;;  %vm5911_vm5 = vmpackc.low %vm5724_vm4, %vm5272_vm3 }
  0x1a   : > { %v7823_v50 = vrot.slane %v5867_v46, 2  ;;  %404 = vst [vmem:[#allocation2] sm:$0xfe] %v308_v43  ;;  %v5323_v54 = vld [vmem:[%s7817_s1 + $0x104] ss:$16 sps:$4 sm:$0xff]   ;;  %2747 = vmatpush1.bf16.msra.mxu1 %v5352_v51  ;;  %v5896_v56 = vld [vmem:[%s5824_s23 + $0x38] sm:$0xff] }
  0x1b   : > { %2301 = vmatpush1.bf16.msra.mxu0 %v5310_v15  ;;  %v5878_v52 = vsel %vm307_vm1, %v308_v43, %v310_v48  ;;  %v5325_v57 = vld [vmem:[%s7817_s1 + $0x100] ss:$16 sps:$4 sm:$0xff]   ;;  %2748 = vmatprep.subr.bf16.mxu1 %v5353_v53  ;;  %v5358_v58 = vld [vmem:[%s7817_s1 + $0x228] ss:$16 sps:$4 sm:$0xff]   ;;  %v320_v59 = vrot.slane %v5896_v56, 7  ;;  %v7848_v0 = vmov 0 }
  0x1c   : > { %2302 = vmatprep.subr.bf16.mxu0 %v5311_v16  ;;  %v5891_v55 = vsel %vm845_vm2, %v7824_v47, %v7823_v50  ;;  %v5359_v60 = vld [vmem:[%s7817_s1 + $0x24c] ss:$16 sps:$4 sm:$0xff]   ;;  %v238_v61 = vld [vmem:[%s5824_s23 + $0x20] sm:$0xff]  ;;  %v240_v62 = vld [vmem:[%s5824_s23 + $0x30] sm:$0xff]  ;;  %v7849_v0 = vsel %vm5911_vm5, 4294967295, %v7848_v0  ;;  %v847_v8 = vrot.slane %v5878_v52, 2 }
  0x1d   : > { %7850 = vst [vmem:[#allocation5_spill] sm:$0xff] %v7849_v0  ;;  %v5916_v1 = vsel %vm307_vm1, %v316_v37, %v320_v59  ;;  %v314_v2 = vrot.slane %v238_v61, 7  ;;  %v318_v3 = vrot.slane %v240_v62, 7  ;;  %v5918_v4 = vpack.c.bf16 %v240_v62, %v238_v61  ;;  %v5326_v5 = vld [vmem:[%s7817_s1 + $0x124] ss:$16 sps:$4 sm:$0xff]   ;;  %v5957_v35 = vld [vmem:[%s5824_s23 + $0x48] sm:$0xff] }
  0x1e   : > { %2749 = vmatpush1.bf16.msra.mxu1 %v5358_v58  ;;  %v5331_v36 = vld [vmem:[%s7817_s1 + $0x140] ss:$16 sps:$4 sm:$0xff]   ;;  %v5965_v38 = vld [vmem:[%s5824_s23 + $0x58] sm:$0xff]  ;;  %v324_v39 = vrot.slane %v5957_v35, 7  ;;  %vm6106_vm6 = vcmp.ne.s32.totalorder %v473_v12, 0  ;;  %s4497_s16 = sshll.u32 %s4489_s19, 6 }
  0x1f   : > { %2303 = vmatpush1.bf16.msra.mxu0 %v5313_v20  ;;  %v664_v63 = vld [vmem:[#allocation2 + $0x8] sm:$0xff]  ;;  %2750 = vmatprep.subr.bf16.mxu1 %v5359_v60  ;;  %v5928_v11 = vsel %vm307_vm1, %v310_v48, %v314_v2  ;;  %v5931_v15 = vsel %vm307_vm1, %v314_v2, %v318_v3  ;;  %v328_v42 = vrot.slane %v5965_v38, 7  ;;  %v244_v51 = vld [vmem:[%s5824_s23 + $0x50] sm:$0xff]  ;;  %v254_v17 = vld [vmem:[%s5824_s23 + $0xa0] sm:$0xff]  ;;  %p227_p4 = scmp.lt.s32.totalorder %s4497_s16, 127 }
  0x20   : > { %2304 = vmatprep.subr.bf16.mxu0 %v5314_v21  ;;  %v5924_v6 = vpack.c.bf16 %v5859_v41, %v664_v63  ;;  %v7822_v20 = vrot.slane %v5928_v11, 2  ;;  %v5364_v21 = vld [vmem:[%s7817_s1 + $0x248] ss:$16 sps:$4 sm:$0xff]   ;;  %v5371_v43 = vld [vmem:[%s7817_s1 + $0x28c] ss:$16 sps:$4 sm:$0xff]   ;;  %v5974_v48 = vsel %vm307_vm1, %v320_v59, %v324_v39  ;;  %v326_v58 = vrot.slane %v244_v51, 7  ;;  %vm6144_vm7 = vmpackc.low %vm5724_vm4, %vm6106_vm6 }
  0x21   : > { %v775_v9 = vld [vmem:[#allocation2] sm:$0xfc]  ;;  %v5376_v61 = vld [vmem:[%s7817_s1 + $0x288] ss:$16 sps:$4 sm:$0xff]   ;;  %v5377_v63 = vld [vmem:[%s7817_s1 + $0x2ac] ss:$16 sps:$4 sm:$0xff]  }
  0x22   : > { %7851 = vst [vmem:[#allocation6_spill] sm:$0xff] %v5924_v6  ;;  %4795 = vmatprep.mubr.msk.bf16.mxu0 %vm5911_vm5, %v5924_v6  ;;  %v846_v16 = vrot.slane %v775_v9, 2  ;;  %v853_v30 = vsel %vm845_vm2, %v847_v8, %v7822_v20  ;;  %2751 = vmatpush1.bf16.msra.mxu1 %v5364_v21  ;;  %v5334_v2 = vld [vmem:[%s7817_s1 + $0x160] ss:$16 sps:$4 sm:$0xff]   ;;  %v6010_v9 = vld [vmem:[%s5824_s23 + $0x78] sm:$0xff]  ;;  %v7857_v6 = vrot.slane %v5859_v41, 2 }
  0x23   : > { %2305 = vmatpush1.bf16.msra.mxu0 %v5316_v25  ;;  %v5328_v25 = vld [vmem:[%s7817_s1 + $0x120] ss:$16 sps:$4 sm:$0xff]   ;;  %v336_v21 = vrot.slane %v6010_v9, 7  ;;  %v5406_v20 = vld [vmem:[%s7817_s1 + $0x328] ss:$16 sps:$4 sm:$0xff]   ;;  %s7957_s16 = smov (!%p227_p4, %s4497_s16), 127 }
  0x24   : > { %2306 = vmatprep.subr.bf16.mxu0 %v5317_v26  ;;  %v5365_v26 = vld [vmem:[%s7817_s1 + $0x26c] ss:$16 sps:$4 sm:$0xff]   ;;  %v848_v29 = vsel %vm845_vm2, %v846_v16, %v847_v8  ;;  %v5382_v8 = vld [vmem:[%s7817_s1 + $0x2a8] ss:$16 sps:$4 sm:$0xff]   ;;  %v5343_v31 = vld [vmem:[%s7817_s1 + $0x1c0] ss:$16 sps:$4 sm:$0xff]  }
  0x25   : > { %v5962_v37 = vpack.c.bf16 %v853_v30, %v848_v29  ;;  %2752 = vmatprep.subr.bf16.mxu1 %v5365_v26  ;;  %v246_v26 = vld [vmem:[%s5824_s23 + $0x60] sm:$0xff]  ;;  %v248_v29 = vld [vmem:[%s5824_s23 + $0x70] sm:$0xff]  ;;  %s4791_s24 = sshll.u32 %s7957_s16, 4 }
  0x26   : > { %v330_v30 = vrot.slane %v246_v26, 7  ;;  %v256_v12 = vld [vmem:[%s5824_s23 + $0xb0] sm:$0xff]  ;;  %s7663_s27 = scalar_lea.vmem %s7821_s5, %s4791_s24 }
  0x27   : > { %2307 = vmatpush1.bf16.msra.mxu0 %v5319_v28  ;;  %v5329_v28 = vld [vmem:[%s7817_s1 + $0x144] ss:$16 sps:$4 sm:$0xff]   ;;  %7852 = vst [vmem:[#allocation7_spill] sm:$0xff] %v5962_v37  ;;  %v350_v41 = vrot.slane %v256_v12, 7 }
  0x28   : > { %2308 = vmatprep.subr.bf16.mxu0 %v5320_v33  ;;  %v5370_v33 = vld [vmem:[%s7817_s1 + $0x268] ss:$16 sps:$4 sm:$0xff]  }
  0x29   : > { %2753 = vmatpush1.bf16.msra.mxu1 %v5370_v33  ;;  %v5337_v33 = vld [vmem:[%s7817_s1 + $0x180] ss:$16 sps:$4 sm:$0xff]  }
  0x2a   : > { %2754 = vmatprep.subr.bf16.mxu1 %v5371_v43  ;;  %v334_v43 = vrot.slane %v248_v29, 7 }
  0x2b   : > { %2309 = vmatpush1.bf16.msra.mxu0 %v5322_v45  ;;  %v242_v45 = vld [vmem:[%s5824_s23 + $0x40] sm:$0xff] }
  0x2c   : > { %2310 = vmatprep.subr.bf16.mxu0 %v5323_v54  ;;  %v322_v53 = vrot.slane %v242_v45, 7  ;;  %v5332_v54 = vld [vmem:[%s7817_s1 + $0x164] ss:$16 sps:$4 sm:$0xff]   ;;  %v5983_v60 = vpack.c.bf16 %v244_v51, %v242_v45  ;;  %v6031_v45 = vpack.c.bf16 %v248_v29, %v246_v26  ;;  %v5388_v51 = vld [vmem:[%s7817_s1 + $0x2c8] ss:$16 sps:$4 sm:$0xff]  }
  0x2d   : > { %2755 = vmatpush1.bf16.msra.mxu1 %v5376_v61  ;;  %v5340_v61 = vld [vmem:[%s7817_s1 + $0x1a0] ss:$16 sps:$4 sm:$0xff]   ;;  %v5395_v26 = vld [vmem:[%s7817_s1 + $0x30c] ss:$16 sps:$4 sm:$0xff]  }
  0x2e   : > { %v5986_v59 = vsel %vm307_vm1, %v318_v3, %v322_v53  ;;  %v5992_v62 = vsel %vm307_vm1, %v322_v53, %v326_v58  ;;  %v5335_v3 = vld [vmem:[%s7817_s1 + $0x184] ss:$16 sps:$4 sm:$0xff]   ;;  %2756 = vmatprep.subr.bf16.mxu1 %v5377_v63  ;;  %v6040_v53 = vsel %vm307_vm1, %v330_v30, %v334_v43  ;;  %v6052_v63 = vld [vmem:[%s5824_s23 + $0x88] sm:$0xff] }
  0x2f   : > { %2311 = vmatpush1.bf16.msra.mxu0 %v5325_v57  ;;  %v5981_v57 = vsel %vm307_vm1, %v324_v39, %v328_v42  ;;  %v250_v29 = vld [vmem:[%s5824_s23 + $0x80] sm:$0xff] }
  0x30   : > { %2312 = vmatprep.subr.bf16.mxu0 %v5326_v5  ;;  %v6004_v5 = vld [vmem:[%s5824_s23 + $0x68] sm:$0xff]  ;;  %v338_v44 = vrot.slane %v250_v29, 7 }
  0x31   : > { %v332_v16 = vrot.slane %v6004_v5, 7  ;;  %2757 = vmatpush1.bf16.msra.mxu1 %v5382_v8  ;;  %v6058_v8 = vld [vmem:[%s5824_s23 + $0x98] sm:$0xff] }
  0x33   : > { %2313 = vmatpush1.bf16.msra.mxu0 %v5328_v25  ;;  %v5383_v25 = vld [vmem:[%s7817_s1 + $0x2cc] ss:$16 sps:$4 sm:$0xff]   ;;  %v6029_v39 = vsel %vm307_vm1, %v332_v16, %v336_v21 }
  0x34   : > { %2314 = vmatprep.subr.bf16.mxu0 %v5329_v28  ;;  %v6019_v28 = vsel %vm307_vm1, %v328_v42, %v332_v16  ;;  %v6034_v42 = vsel %vm307_vm1, %v326_v58, %v330_v30  ;;  %2758 = vmatprep.subr.bf16.mxu1 %v5383_v25  ;;  %v5341_v58 = vld [vmem:[%s7817_s1 + $0x1c4] ss:$16 sps:$4 sm:$0xff]   ;;  %v340_v16 = vrot.slane %v6052_v63, 7  ;;  %v344_v25 = vrot.slane %v6058_v8, 7 }
  0x35   : > { %2759 = vmatpush1.bf16.msra.mxu1 %v5388_v51 }
  0x36   : > { %v6067_v30 = vsel %vm307_vm1, %v336_v21, %v340_v16  ;;  %v5344_v21 = vld [vmem:[%s7817_s1 + $0x1e4] ss:$16 sps:$4 sm:$0xff]  }
  0x37   : > { %2315 = vmatpush1.bf16.msra.mxu0 %v5331_v36  ;;  %v5338_v36 = vld [vmem:[%s7817_s1 + $0x1a4] ss:$16 sps:$4 sm:$0xff]  }
  0x38   : > { %2316 = vmatprep.subr.bf16.mxu0 %v5332_v54  ;;  %v5389_v54 = vld [vmem:[%s7817_s1 + $0x2ec] ss:$16 sps:$4 sm:$0xff]  }
  0x39   : > { %2760 = vmatprep.subr.bf16.mxu1 %v5389_v54  ;;  %v6082_v54 = vsel %vm307_vm1, %v334_v43, %v338_v44  ;;  %v5401_v43 = vld [vmem:[%s7817_s1 + $0x32c] ss:$16 sps:$4 sm:$0xff]  }
  0x3b   : > { %2317 = vmatpush1.bf16.msra.mxu0 %v5334_v2  ;;  %v776_v2 = vld [vmem:[#allocation2 + $0x8] sm:$0xfc] }
  0x3c   : > { %2318 = vmatprep.subr.bf16.mxu0 %v5335_v3  ;;  %v5394_v3 = vld [vmem:[%s7817_s1 + $0x2e8] ss:$16 sps:$4 sm:$0xff]   ;;  %v849_v22 = vrot.slane %v776_v2, 2  ;;  %v663_v2 = vld [vmem:[#allocation2] sm:$0xff] }
  0x3d   : > { %2761 = vmatpush1.bf16.msra.mxu1 %v5394_v3  ;;  %v257_v3 = vld [vmem:[%s5824_s23 + $0xb8] sm:$0xff] }
  0x3e   : > { %2762 = vmatprep.subr.bf16.mxu1 %v5395_v26  ;;  %v352_v50 = vrot.slane %v257_v3, 7  ;;  %v851_v37 = vsel %vm845_vm2, %v849_v22, %v7857_v6  ;;  %v6133_v22 = vpack.c.bf16 %v5878_v52, %v663_v2  ;;  %v5349_v6 = vld [vmem:[%s7817_s1 + $0x200] ss:$16 sps:$4 sm:$0xff]   ;;  %v259_v2 = vld [vmem:[%s5824_s23 + $0xc8] sm:$0xff] }
  0x3f   : > { %2319 = vmatpush1.bf16.msra.mxu0 %v5337_v33  ;;  %v252_v33 = vld [vmem:[%s5824_s23 + $0x90] sm:$0xff] }
  0x40   : > { %2320 = vmatprep.subr.bf16.mxu0 %v5338_v36  ;;  %v6074_v36 = vsel %vm307_vm1, %v340_v16, %v344_v25  ;;  %v342_v51 = vrot.slane %v252_v33, 7  ;;  %v6076_v27 = vpack.c.bf16 %v252_v33, %v250_v29  ;;  %v5400_v16 = vld [vmem:[%s7817_s1 + $0x308] ss:$16 sps:$4 sm:$0xff]   ;;  %v6102_v33 = vadd.s32 8, %v5781_v7  ;;  %7858 = vst [vmem:[#allocation10_spill] sm:$0xff] %v6133_v22 }
  0x41   : > { %2763 = vmatpush1.bf16.msra.mxu1 %v5400_v16  ;;  %v7859_v16 = vmov 0 }
  0x42   : > { %7853 = vst [vmem:[#allocation8_spill] sm:$0xff] %v6076_v27  ;;  %v6085_v19 = vsel %vm307_vm1, %v338_v44, %v342_v51  ;;  %v5351_v44 = vld [vmem:[%s7817_s1 + $0x204] ss:$16 sps:$4 sm:$0xff]   ;;  %7854 = vst [vmem:[#allocation9_spill] sm:$0xff] %v6102_v33  ;;  %2764 = vmatprep.subr.bf16.mxu1 %v5401_v43  ;;  %v7860_v16 = vsel %vm6144_vm7, 4294967295, %v7859_v16  ;;  %v6156_v43 = vpack.c.bf16 %v5891_v55, %v851_v37  ;;  %v261_v37 = vld [vmem:[%s5824_s23 + $0xd8] sm:$0xff] }
  0x43   : > { %2321 = vmatpush1.bf16.msra.mxu0 %v5340_v61  ;;  %v5346_v61 = vld [vmem:[%s7817_s1 + $0x1e0] ss:$16 sps:$4 sm:$0xff]   ;;  %7861 = vst [vmem:[#allocation11_spill] sm:$0xff] %v7860_v16  ;;  %v5413_v55 = vld [vmem:[%s7817_s1 + $0x36c] ss:$16 sps:$4 sm:$0xff]   ;;  %v360_v26 = vrot.slane %v261_v37, 7 }
  0x44   : > { %2322 = vmatprep.subr.bf16.mxu0 %v5341_v58  ;;  %v255_v58 = vld [vmem:[%s5824_s23 + $0xa8] sm:$0xff]  ;;  %7863 = vst [vmem:[#allocation13_spill] sm:$0xff] %v6156_v43  ;;  %v7866_v27 = vand.u32 15, %v5795_v13  ;;  %v7872_v43 = vrot.slane %v5974_v48, 2  ;;  %v874_v16 = vrot.slane %v6029_v39, 2 }
  0x45   : > { %v348_v29 = vrot.slane %v255_v58, 7  ;;  %v6114_v47 = vpack.c.bf16 %v257_v3, %v255_v58  ;;  %v6130_v58 = vpack.c.bf16 %v256_v12, %v254_v17  ;;  %2765 = vmatpush1.bf16.msra.mxu1 %v5406_v20  ;;  %v5355_v3 = vld [vmem:[%s7817_s1 + $0x220] ss:$16 sps:$4 sm:$0xff]   ;;  %v5418_v13 = vld [vmem:[%s7817_s1 + $0x368] ss:$16 sps:$4 sm:$0xff]  }
  0x46   : > { %v258_v12 = vld [vmem:[%s5824_s23 + $0xc0] sm:$0xff]  ;;  %vm6189_vm8 = vcmp.ne.s32.totalorder %v7866_v27, 0 }
  0x47   : > { %2323 = vmatpush1.bf16.msra.mxu0 %v5343_v31  ;;  %v6120_v10 = vsel %vm307_vm1, %v344_v25, %v348_v29  ;;  %v346_v31 = vrot.slane %v254_v17, 7  ;;  %v6125_v40 = vsel %vm307_vm1, %v348_v29, %v352_v50  ;;  %v6150_v17 = vpack.c.bf16 %v5916_v1, %v5867_v46  ;;  %vm6239_vm9 = vmpackc.low %vm5724_vm4, %vm6189_vm8 }
  0x48   : > { %2324 = vmatprep.subr.bf16.mxu0 %v5344_v21  ;;  %v5407_v21 = vld [vmem:[%s7817_s1 + $0x34c] ss:$16 sps:$4 sm:$0xff]   ;;  %v858_v29 = vrot.slane %v5916_v1, 2  ;;  %v6181_v1 = vadd.s32 24, %v5781_v7 }
  0x49   : > { %v6139_v25 = vsel %vm307_vm1, %v342_v51, %v346_v31  ;;  %7862 = vst [vmem:[#allocation12_spill] sm:$0xff] %v6150_v17  ;;  %v6153_v52 = vsel %vm307_vm1, %v346_v31, %v350_v41  ;;  %v5357_v51 = vld [vmem:[%s7817_s1 + $0x224] ss:$16 sps:$4 sm:$0xff]   ;;  %2766 = vmatprep.subr.bf16.mxu1 %v5407_v21  ;;  %v6178_v31 = vpack.c.bf16 %v261_v37, %v259_v2  ;;  %v856_v21 = vrot.slane %v5931_v15, 2 }
  0x4a   : > { %7865 = vst [vmem:[#allocation15_spill] sm:$0xff] %v6181_v1  ;;  %v354_v37 = vrot.slane %v258_v12, 7  ;;  %v863_v33 = vsel %vm845_vm2, %v858_v29, %v7872_v43  ;;  %v263_v43 = vld [vmem:[%s5824_s23 + $0xe8] sm:$0xff] }
  0x4b   : > { %2325 = vmatpush1.bf16.msra.mxu0 %v5346_v61  ;;  %v5412_v61 = vld [vmem:[%s7817_s1 + $0x348] ss:$16 sps:$4 sm:$0xff]   ;;  %7864 = vst [vmem:[#allocation14_spill] sm:$0xff] %v6178_v31  ;;  %v364_v1 = vrot.slane %v263_v43, 7  ;;  %v7878_v31 = vrot.slane %v5986_v59, 2 }
  0x4c   : > { %2407 = vmatprep.subr.bf16.mxu0 %v5351_v44  ;;  %v356_v44 = vrot.slane %v259_v2, 7  ;;  %v260_v2 = vld [vmem:[%s5824_s23 + $0xd0] sm:$0xff]  ;;  %2767 = vmatpush1.bf16.msra.mxu1 %v5412_v61  ;;  %v5419_v61 = vld [vmem:[%s7817_s1 + $0x38c] ss:$16 sps:$4 sm:$0xff]  }
  0x4d   : > { %v358_v0 = vrot.slane %v260_v2, 7  ;;  %2768 = vmatprep.subr.bf16.mxu1 %v5413_v55 }
  0x4e   : > { %4799 = vmatmul.mubr.msk.bf16.vlgmr.msra.gmra.mrb[0].mxu0 %vm5911_vm5, %v6133_v22  ;;  %v6194_v20 = vsel %vm307_vm1, %v352_v50, %v356_v44  ;;  %v6205_v27 = vsel %vm307_vm1, %v356_v44, %v360_v26  ;;  %v6207_v50 = vpack.c.bf16 %v260_v2, %v258_v12  ;;  %v5361_v44 = vld [vmem:[%s7817_s1 + $0x240] ss:$16 sps:$4 sm:$0xff]   ;;  %v5424_v22 = vld [vmem:[%s7817_s1 + $0x388] ss:$16 sps:$4 sm:$0xff]  }
  0x4f   : > { %2408 = vmatpush1.bf16.msra.mxu0 %v5349_v6  ;;  %4803 = vmatprep.mubr.msk.bf16.mxu0 %vm6144_vm7, %v6150_v17  ;;  %v5363_v6 = vld [vmem:[%s7817_s1 + $0x244] ss:$16 sps:$4 sm:$0xff]   ;;  %v6217_v17 = vsel %vm307_vm1, %v350_v41, %v354_v37  ;;  %v6223_v12 = vsel %vm307_vm1, %v354_v37, %v358_v0  ;;  %v265_v2 = vld [vmem:[%s5824_s23 + $0xf8] sm:$0xff]  ;;  %v5605_v37 = vld [vmem:[%s7819_s3 + $0x60] ss:$8 sps:$4 sm:$0xff]  }
  0x50   : > { %2409 = vmatprep.subr.bf16.mxu0 %v5357_v51  ;;  %7869 = vst [vmem:[#allocation16_spill] sm:$0xff] %v6207_v50  ;;  %v6211_v51 = vpack.c.bf16 %v5931_v15, %v5928_v11  ;;  %v7871_v15 = vrot.slane %v5867_v46, 2  ;;  %v5369_v41 = vld [vmem:[%s7817_s1 + $0x264] ss:$16 sps:$4 sm:$0xff]   ;;  %v866_v50 = vrot.slane %v5981_v57, 2  ;;  %v6245_v46 = vpack.c.bf16 %v5981_v57, %v5974_v48  ;;  %2769 = vmatpush1.bf16.msra.mxu1 %v5418_v13 }
  0x51   : > { %v861_v57 = vsel %vm845_vm2, %v856_v21, %v7878_v31  ;;  %2770 = vmatprep.subr.bf16.mxu1 %v5419_v61  ;;  %v6265_v13 = vpack.c.bf16 %v265_v2, %v263_v43  ;;  %v6274_v31 = vsel %vm307_vm1, %v360_v26, %v364_v1  ;;  %v5375_v43 = vld [vmem:[%s7817_s1 + $0x284] ss:$16 sps:$4 sm:$0xff]   ;;  %v868_v26 = vrot.slane %v6034_v42, 2 }
  0x52   : > { %7870 = vst [vmem:[#allocation17_spill] sm:$0xff] %v6211_v51  ;;  %v859_v55 = vsel %vm845_vm2, %v7871_v15, %v858_v29  ;;  %7875 = vst [vmem:[#allocation18_spill] sm:$0xff] %v6245_v46  ;;  %v7877_v29 = vrot.slane %v5928_v11, 2  ;;  %v5425_v11 = vld [vmem:[%s7817_s1 + $0x3ac] ss:$16 sps:$4 sm:$0xff]  }
  0x53   : > { %2410 = vmatpush1.bf16.msra.mxu0 %v5355_v3  ;;  %v6248_v3 = vpack.c.bf16 %v863_v33, %v859_v55  ;;  %v262_v55 = vld [vmem:[%s5824_s23 + $0xe0] sm:$0xff]  ;;  %v6278_v33 = vadd.s32 40, %v5781_v7 }
  0x54   : > { %v857_v15 = vsel %vm845_vm2, %v7877_v29, %v856_v21  ;;  %2411 = vmatprep.subr.bf16.mxu0 %v5363_v6  ;;  %v368_v6 = vrot.slane %v265_v2, 7  ;;  %v264_v21 = vld [vmem:[%s5824_s23 + $0xf0] sm:$0xff]  ;;  %v362_v61 = vrot.slane %v262_v55, 7  ;;  %2771 = vmatpush1.bf16.msra.mxu1 %v5424_v22 }
  0x55   : > { %7876 = vst [vmem:[#allocation19_spill] sm:$0xff] %v6248_v3  ;;  %v6267_v29 = vpack.c.bf16 %v861_v57, %v857_v15  ;;  %v864_v3 = vrot.slane %v5992_v62, 2  ;;  %v5367_v2 = vld [vmem:[%s7817_s1 + $0x260] ss:$16 sps:$4 sm:$0xff]   ;;  %v366_v57 = vrot.slane %v264_v21, 7  ;;  %2772 = vmatprep.subr.bf16.mxu1 %v5425_v11  ;;  %v6322_v11 = vpack.c.bf16 %v5992_v62, %v5986_v59 }
  0x56   : > { %4807 = vmatmul.mubr.msk.bf16.gmra.mrb[4].mxu0 %vm6144_vm7, %v6211_v51  ;;  %v6291_v15 = vsel %vm307_vm1, %v364_v1, %v368_v6  ;;  %437 = vst [vmem:[#allocation2 + $0x108] sm:$0x1] %v368_v6  ;;  %v7880_v51 = vand.u32 15, %v5798_v14  ;;  %v5431_v1 = vld [vmem:[%s7817_s1 + $0x3cc] ss:$16 sps:$4 sm:$0xff]   ;;  %v7884_v6 = vrot.slane %v6019_v28, 2 }
  0x57   : > { %7879 = vst [vmem:[#allocation20_spill] sm:$0xff] %v6267_v29  ;;  %2412 = vmatpush1.bf16.msra.mxu0 %v5361_v44  ;;  %4811 = vmatprep.mubr.msk.bf16.mxu0 %vm6239_vm9, %v6245_v46  ;;  %v6293_v44 = vpack.c.bf16 %v264_v21, %v262_v55  ;;  %v5430_v46 = vld [vmem:[%s7817_s1 + $0x3a8] ss:$16 sps:$4 sm:$0xff]   ;;  %v6305_v29 = vsel %vm307_vm1, %v358_v0, %v362_v61  ;;  %436 = vst [vmem:[#allocation2 + $0x100] sm:$0x1] %v366_v57 }
  0x58   : > { %2413 = vmatprep.subr.bf16.mxu0 %v5369_v41  ;;  %vm6297_vm10 = vcmp.ne.s32.totalorder %v7880_v51, 0  ;;  %v6311_v41 = vsel %vm307_vm1, %v362_v61, %v366_v57  ;;  %v7883_v51 = vrot.slane %v5974_v48, 2  ;;  %v871_v0 = vsel %vm845_vm2, %v866_v50, %v7884_v6  ;;  %v5373_v55 = vld [vmem:[%s7817_s1 + $0x280] ss:$16 sps:$4 sm:$0xff]   ;;  %v5381_v57 = vld [vmem:[%s7817_s1 + $0x2a4] ss:$16 sps:$4 sm:$0xff]   ;;  %2773 = vmatpush1.bf16.msra.mxu1 %v5430_v46 }
  0x59   : > { %v7885_v61 = vrot.slane %v5986_v59, 2  ;;  %vm6338_vm11 = vmpackc.low %vm5724_vm4, %vm6297_vm10  ;;  %v869_v59 = vsel %vm845_vm2, %v864_v3, %v868_v26  ;;  %2774 = vmatprep.subr.bf16.mxu1 %v5431_v1  ;;  %v5437_v6 = vld [vmem:[%s7817_s1 + $0x3ec] ss:$16 sps:$4 sm:$0xff]   ;;  %v5379_v46 = vld [vmem:[%s7817_s1 + $0x2a0] ss:$16 sps:$4 sm:$0xff]  }
  0x5a   : > { %v867_v22 = vsel %vm845_vm2, %v7883_v51, %v866_v50  ;;  %v6344_v50 = vpack.c.bf16 %v6029_v39, %v6019_v28  ;;  %v6366_v39 = vadd.s32 56, %v5781_v7  ;;  %v5387_v1 = vld [vmem:[%s7817_s1 + $0x2c4] ss:$16 sps:$4 sm:$0xff]   ;;  %v5611_v62 = vld [vmem:[%s7819_s3 + $0x80] ss:$8 sps:$4 sm:$0xff]  }
  0x5b   : > { %v6327_v21 = vpack.c.bf16 %v871_v0, %v867_v22  ;;  %v865_v48 = vsel %vm845_vm2, %v7885_v61, %v864_v3  ;;  %2414 = vmatpush1.bf16.msra.mxu0 %v5367_v2  ;;  %v5436_v2 = vld [vmem:[%s7817_s1 + $0x3c8] ss:$16 sps:$4 sm:$0xff]   ;;  %v878_v22 = vrot.slane %v6067_v30, 2  ;;  %v872_v3 = vrot.slane %v6040_v53, 2 }
  0x5c   : > { %2415 = vmatprep.subr.bf16.mxu0 %v5375_v43  ;;  %v6350_v51 = vpack.c.bf16 %v869_v59, %v865_v48  ;;  %v876_v43 = vrot.slane %v6082_v54, 2  ;;  %v7888_v0 = vand.u32 15, %v5808_v18  ;;  %2775 = vmatpush1.bf16.msra.mxu1 %v5436_v2  ;;  %v5442_v61 = vld [vmem:[%s7817_s1 + $0x3e8] ss:$16 sps:$4 sm:$0xff]   ;;  %v5445_v59 = vld [vmem:[%s7817_s1 + $0x40c] ss:$16 sps:$4 sm:$0xff]  }
  0x5d   : > { %2776 = vmatprep.subr.bf16.mxu1 %v5437_v6  ;;  %v879_v2 = vsel %vm845_vm2, %v874_v16, %v878_v22  ;;  %v5617_v6 = vld [vmem:[%s7819_s3 + $0xa0] ss:$8 sps:$4 sm:$0xff]  }
  0x5e   : > { %4815 = vmatmul.mubr.msk.bf16.gmra.mrb[8].mxu0 %vm6239_vm9, %v6322_v11  ;;  %vm5276_vm12 = vcmp.ne.s32.totalorder %v7888_v0, 0  ;;  %v5385_v0 = vld [vmem:[%s7817_s1 + $0x2c0] ss:$16 sps:$4 sm:$0xff]  }
  0x5f   : > { %2416 = vmatpush1.bf16.msra.mxu0 %v5373_v55  ;;  %4819 = vmatprep.mubr.msk.bf16.mxu0 %vm6338_vm11, %v6344_v50  ;;  %v6382_v55 = vpack.c.bf16 %v6040_v53, %v6034_v42  ;;  %v873_v42 = vsel %vm845_vm2, %v868_v26, %v872_v3  ;;  %v877_v53 = vsel %vm845_vm2, %v872_v3, %v876_v43  ;;  %vm6399_vm13 = vmpackc.low %vm5724_vm4, %vm5276_vm12  ;;  %v882_v26 = vrot.slane %v6074_v36, 2  ;;  %v5443_v3 = vld [vmem:[%s7817_s1 + $0x408] ss:$16 sps:$4 sm:$0xff]  }
  0x60   : > { %2417 = vmatprep.subr.bf16.mxu0 %v5381_v57  ;;  %v7889_v57 = vrot.slane %v6019_v28, 2  ;;  %v6405_v28 = vpack.c.bf16 %v6074_v36, %v6067_v30  ;;  %2777 = vmatpush1.bf16.msra.mxu1 %v5442_v61  ;;  %v6419_v30 = vpack.c.bf16 %v5896_v56, %v5849_v34  ;;  %v884_v61 = vrot.slane %v6139_v25, 2  ;;  %v5451_v36 = vld [vmem:[%s7817_s1 + $0x42c] ss:$16 sps:$4 sm:$0xff]   ;;  %v5391_v34 = vld [vmem:[%s7817_s1 + $0x2e0] ss:$16 sps:$4 sm:$0xff]  }
  0x61   : > { %2859 = vmatprep.subr.bf16.mxu1 %v5445_v59  ;;  %v5399_v56 = vld [vmem:[%s7817_s1 + $0x304] ss:$16 sps:$4 sm:$0xff]   ;;  %v7892_v59 = vand.u32 15, %v5819_v23  ;;  %v883_v23 = vsel %vm845_vm2, %v878_v22, %v882_v26  ;;  %v5623_v22 = vld [vmem:[%s7819_s3 + $0xc0] ss:$8 sps:$4 sm:$0xff]  }
  0x62   : > { %v875_v18 = vsel %vm845_vm2, %v7889_v57, %v874_v16  ;;  %v6407_v16 = vpack.c.bf16 %v877_v53, %v873_v42  ;;  %v5393_v57 = vld [vmem:[%s7817_s1 + $0x2e4] ss:$16 sps:$4 sm:$0xff]   ;;  %v6451_v42 = vpack.c.bf16 %v6085_v19, %v6082_v54  ;;  %v5449_v53 = vld [vmem:[%s7817_s1 + $0x428] ss:$16 sps:$4 sm:$0xff]  }
  0x63   : > { %v6394_v48 = vpack.c.bf16 %v879_v2, %v875_v18  ;;  %2418 = vmatpush1.bf16.msra.mxu0 %v5379_v46  ;;  %v886_v46 = vrot.slane %v6120_v10, 2  ;;  %v6430_v18 = vadd.s32 72, %v5781_v7  ;;  %vm6443_vm14 = vcmp.ne.s32.totalorder %v7892_v59, 0  ;;  %2779 = vmatmul.mubr.bf16.vlgmr.msra.gmra.mrb[0].mxu1 %v5871_v49  ;;  %v5397_v59 = vld [vmem:[%s7817_s1 + $0x300] ss:$16 sps:$4 sm:$0xff]  }
  0x64   : > { %2419 = vmatprep.subr.bf16.mxu0 %v5387_v1  ;;  %v880_v1 = vrot.slane %v6085_v19, 2  ;;  %2860 = vmatpush1.bf16.msra.mxu1 %v5443_v3  ;;  %v5457_v19 = vld [vmem:[%s7817_s1 + $0x44c] ss:$16 sps:$4 sm:$0xff]   ;;  %vm6472_vm15 = vmpackc.low %vm5724_vm4, %vm6443_vm14  ;;  %v5455_v2 = vld [vmem:[%s7817_s1 + $0x448] ss:$16 sps:$4 sm:$0xff]  }
  0x65   : > { %2788 = vmatprep.mubr.bf16.mxu1 %v6419_v30  ;;  %2861 = vmatprep.subr.bf16.mxu1 %v5451_v36 }
  0x66   : > { %4823 = vmatmul.mubr.msk.bf16.gmra.mrb[12].mxu0 %vm6338_vm11, %v6382_v55  ;;  %v881_v3 = vsel %vm845_vm2, %v876_v43, %v880_v1  ;;  %v5405_v43 = vld [vmem:[%s7817_s1 + $0x324] ss:$16 sps:$4 sm:$0xff]  }
  0x67   : > { %2420 = vmatpush1.bf16.msra.mxu0 %v5385_v0  ;;  %4827 = vmatprep.mubr.msk.bf16.mxu0 %vm6399_vm13, %v6405_v28  ;;  %v885_v0 = vsel %vm845_vm2, %v880_v1, %v884_v61  ;;  %v890_v1 = vrot.slane %v6125_v40, 2 }
  0x68   : > { %2421 = vmatprep.subr.bf16.mxu0 %v5393_v57  ;;  %v887_v57 = vsel %vm845_vm2, %v882_v26, %v886_v46  ;;  %v6478_v26 = vpack.c.bf16 %v6125_v40, %v6120_v10  ;;  %v6480_v36 = vpack.c.bf16 %v885_v0, %v881_v3  ;;  %2862 = vmatpush1.bf16.msra.mxu1 %v5449_v53  ;;  %v892_v0 = vrot.slane %v6217_v17, 2  ;;  %v5463_v40 = vld [vmem:[%s7817_s1 + $0x46c] ss:$16 sps:$4 sm:$0xff]   ;;  %v5461_v3 = vld [vmem:[%s7817_s1 + $0x468] ss:$16 sps:$4 sm:$0xff]  }
  0x69   : > { %v6465_v54 = vpack.c.bf16 %v887_v57, %v883_v23  ;;  %v6492_v10 = vpack.c.bf16 %v5965_v38, %v5957_v35  ;;  %2863 = vmatprep.subr.bf16.mxu1 %v5457_v19  ;;  %v6503_v53 = vadd.s32 88, %v5781_v7  ;;  %v5403_v35 = vld [vmem:[%s7817_s1 + $0x320] ss:$16 sps:$4 sm:$0xff]   ;;  %v5411_v38 = vld [vmem:[%s7817_s1 + $0x344] ss:$16 sps:$4 sm:$0xff]   ;;  %v7897_v23 = vand.u32 15, %v5827_v24 }
  0x6a   : > { %v6524_v19 = vpack.c.bf16 %v6153_v52, %v6139_v25  ;;  %v891_v24 = vsel %vm845_vm2, %v886_v46, %v890_v1  ;;  %v5469_v25 = vld [vmem:[%s7817_s1 + $0x48c] ss:$16 sps:$4 sm:$0xff]   ;;  %v5467_v57 = vld [vmem:[%s7817_s1 + $0x488] ss:$16 sps:$4 sm:$0xff]  }
  0x6b   : > { %2422 = vmatpush1.bf16.msra.mxu0 %v5391_v34  ;;  %v894_v34 = vrot.slane %v6194_v20, 2  ;;  %vm6516_vm0 = vcmp.ne.s32.totalorder %v7897_v23, 0  ;;  %2789 = vmatmul.mubr.bf16.gmra.mrb[4].mxu1 %v5918_v4  ;;  %v5409_v23 = vld [vmem:[%s7817_s1 + $0x340] ss:$16 sps:$4 sm:$0xff]  }
  0x6c   : > { %2423 = vmatprep.subr.bf16.mxu0 %v5399_v56  ;;  %v888_v56 = vrot.slane %v6153_v52, 2  ;;  %2864 = vmatpush1.bf16.msra.mxu1 %v5455_v2  ;;  %vm6545_vm1 = vmpackc.low %vm5724_vm4, %vm6516_vm0  ;;  %v5629_v46 = vld [vmem:[%s7819_s3 + $0xe0] ss:$8 sps:$4 sm:$0xff]  }
  0x6d   : > { %2798 = vmatprep.mubr.bf16.mxu1 %v6492_v10  ;;  %2865 = vmatprep.subr.bf16.mxu1 %v5463_v40 }
  0x6e   : > { %4831 = vmatmul.mubr.msk.bf16.gmra.mrb[16].mxu0 %vm6399_vm13, %v6451_v42  ;;  %v889_v2 = vsel %vm845_vm2, %v884_v61, %v888_v56  ;;  %v5417_v61 = vld [vmem:[%s7817_s1 + $0x364] ss:$16 sps:$4 sm:$0xff]  }
  0x6f   : > { %2424 = vmatpush1.bf16.msra.mxu0 %v5397_v59  ;;  %4835 = vmatprep.mubr.msk.bf16.mxu0 %vm6472_vm15, %v6478_v26  ;;  %v893_v59 = vsel %vm845_vm2, %v888_v56, %v892_v0  ;;  %v898_v56 = vrot.slane %v6205_v27, 2 }
  0x70   : > { %2425 = vmatprep.subr.bf16.mxu0 %v5405_v43  ;;  %v895_v43 = vsel %vm845_vm2, %v890_v1, %v894_v34  ;;  %v6551_v1 = vpack.c.bf16 %v6205_v27, %v6194_v20  ;;  %v6553_v40 = vpack.c.bf16 %v893_v59, %v889_v2  ;;  %2866 = vmatpush1.bf16.msra.mxu1 %v5461_v3  ;;  %v900_v59 = vrot.slane %v6305_v29, 2  ;;  %v5475_v27 = vld [vmem:[%s7817_s1 + $0x4ac] ss:$16 sps:$4 sm:$0xff]   ;;  %v5473_v2 = vld [vmem:[%s7817_s1 + $0x4a8] ss:$16 sps:$4 sm:$0xff]  }
  0x71   : > { %v6538_v52 = vpack.c.bf16 %v895_v43, %v891_v24  ;;  %v6565_v20 = vpack.c.bf16 %v6010_v9, %v6004_v5  ;;  %2867 = vmatprep.subr.bf16.mxu1 %v5469_v25  ;;  %v6576_v3 = vadd.s32 104, %v5781_v7  ;;  %v5415_v5 = vld [vmem:[%s7817_s1 + $0x360] ss:$16 sps:$4 sm:$0xff]   ;;  %v5423_v9 = vld [vmem:[%s7817_s1 + $0x384] ss:$16 sps:$4 sm:$0xff]   ;;  %v7902_v24 = vand.u32 15, %v5843_v32 }
  0x72   : > { %v6597_v25 = vpack.c.bf16 %v6223_v12, %v6217_v17  ;;  %v899_v32 = vsel %vm845_vm2, %v894_v34, %v898_v56  ;;  %v5481_v17 = vld [vmem:[%s7817_s1 + $0x4cc] ss:$16 sps:$4 sm:$0xff]   ;;  %v7905_v34 = vmov 0  ;;  %v6637_v43 = vpack.c.bf16 %v6058_v8, %v6052_v63  ;;  %v5427_v63 = vld [vmem:[%s7817_s1 + $0x3a0] ss:$16 sps:$4 sm:$0xff]  }
  0x73   : > { %2426 = vmatpush1.bf16.msra.mxu0 %v5403_v35  ;;  %v902_v35 = vrot.slane %v6274_v31, 2  ;;  %vm6589_vm3 = vcmp.ne.s32.totalorder %v7902_v24, 0  ;;  %2799 = vmatmul.mubr.bf16.gmra.mrb[8].mxu1 %v5983_v60  ;;  %v5421_v24 = vld [vmem:[%s7817_s1 + $0x380] ss:$16 sps:$4 sm:$0xff]   ;;  %v5435_v8 = vld [vmem:[%s7817_s1 + $0x3c4] ss:$16 sps:$4 sm:$0xff]  }
  0x74   : > { %2427 = vmatprep.subr.bf16.mxu0 %v5411_v38  ;;  %v896_v38 = vrot.slane %v6223_v12, 2  ;;  %2868 = vmatpush1.bf16.msra.mxu1 %v5467_v57  ;;  %vm6618_vm6 = vmpackc.low %vm5724_vm4, %vm6589_vm3 }
  0x75   : > { %2808 = vmatprep.mubr.bf16.mxu1 %v6565_v20  ;;  %2869 = vmatprep.subr.bf16.mxu1 %v5475_v27  ;;  %v7906_v34 = vsel %vm6618_vm6, 4294967295, %v7905_v34 }
  0x76   : > { %4839 = vmatmul.mubr.msk.bf16.gmra.mrb[20].mxu0 %vm6472_vm15, %v6524_v19  ;;  %v897_v57 = vsel %vm845_vm2, %v892_v0, %v896_v38  ;;  %v5429_v0 = vld [vmem:[%s7817_s1 + $0x3a4] ss:$16 sps:$4 sm:$0xff]  }
  0x77   : > { %2428 = vmatpush1.bf16.msra.mxu0 %v5409_v23  ;;  %4843 = vmatprep.mubr.msk.bf16.mxu0 %vm6545_vm1, %v6551_v1  ;;  %v901_v23 = vsel %vm845_vm2, %v896_v38, %v900_v59  ;;  %v906_v38 = vrot.slane %v6291_v15, 2 }
  0x78   : > { %2429 = vmatprep.subr.bf16.mxu0 %v5417_v61  ;;  %v903_v61 = vsel %vm845_vm2, %v898_v56, %v902_v35  ;;  %v6624_v56 = vpack.c.bf16 %v6291_v15, %v6274_v31  ;;  %v6626_v27 = vpack.c.bf16 %v901_v23, %v897_v57  ;;  %2870 = vmatpush1.bf16.msra.mxu1 %v5473_v2  ;;  %v7844_v31 = vrot.slane %v6311_v41, 2  ;;  %v5482_v2 = vld [vmem:[%s7817_s1 + $0x4c0] ss:$16 sps:$4 sm:$0xff]  }
  0x79   : > { %v6611_v12 = vpack.c.bf16 %v903_v61, %v899_v32  ;;  %2871 = vmatprep.subr.bf16.mxu1 %v5481_v17  ;;  %v6647_v23 = vadd.s32 120, %v5781_v7  ;;  %v5485_v32 = vld [vmem:[%s7817_s1 + $0x4e8] ss:$16 sps:$4 sm:$0xff]   ;;  %v6667_v61 = vsel %vm845_vm2, %v902_v35, %v906_v38  ;;  %v5493_v17 = vld [vmem:[%s7817_s1 + $0x50c] ss:$16 sps:$4 sm:$0xff]   ;;  %v7921_v15 = vrot.slane %v6311_v41, 2 }
  0x7a   : > { %v6679_v57 = vsel %vm845_vm2, %v900_v59, %v7844_v31  ;;  %v5433_v35 = vld [vmem:[%s7817_s1 + $0x3c0] ss:$16 sps:$4 sm:$0xff]   ;;  %v5499_v59 = vld [vmem:[%s7817_s1 + $0x52c] ss:$16 sps:$4 sm:$0xff]  }
  0x7b   : > { %2430 = vmatpush1.bf16.msra.mxu0 %v5415_v5  ;;  %v5479_v5 = vld [vmem:[%s7817_s1 + $0x4c8] ss:$16 sps:$4 sm:$0xff]   ;;  %2809 = vmatmul.mubr.bf16.gmra.mrb[12].mxu1 %v6031_v45 }
  0x7c   : > { %2431 = vmatprep.subr.bf16.mxu0 %v5423_v9  ;;  %v5487_v9 = vld [vmem:[%s7817_s1 + $0x4ec] ss:$16 sps:$4 sm:$0xff]   ;;  %2872 = vmatpush1.bf16.msra.mxu1 %v5479_v5  ;;  %v5439_v5 = vld [vmem:[%s7817_s1 + $0x3e0] ss:$16 sps:$4 sm:$0xff]  }
  0x7d   : > { %2818 = vmatprep.mubr.bf16.mxu1 %v6637_v43  ;;  %2873 = vmatprep.subr.bf16.mxu1 %v5487_v9  ;;  %v7907_v9 = vld [vmem:[#allocation4_spill] sm:$0xff] }
  0x7e   : > { %4847 = vmatmul.mubr.msk.bf16.gmra.mrb[24].mxu0 %vm6545_vm1, %v6597_v25 }
  0x7f   : > { %2432 = vmatpush1.bf16.msra.mxu0 %v5421_v24  ;;  %4851 = vmatprep.mubr.msk.bf16.mxu0 %vm6618_vm6, %v6624_v56  ;;  %v6671_v24 = vpack.c.bf16 %v6311_v41, %v6305_v29  ;;  %v5441_v29 = vld [vmem:[%s7817_s1 + $0x3e4] ss:$16 sps:$4 sm:$0xff]   ;;  %v7922_v41 = vld [vmem:[#allocation13_spill] sm:$0xff] }
  0x80   : > { %2433 = vmatprep.subr.bf16.mxu0 %v5429_v0  ;;  %2874 = vmatpush1.bf16.msra.mxu1 %v5485_v32  ;;  %v5491_v0 = vld [vmem:[%s7817_s1 + $0x508] ss:$16 sps:$4 sm:$0xff]  }
  0x81   : > { %2875 = vmatprep.subr.bf16.mxu1 %v5493_v17  ;;  %v5497_v32 = vld [vmem:[%s7817_s1 + $0x528] ss:$16 sps:$4 sm:$0xff]   ;;  %v5505_v17 = vld [vmem:[%s7817_s1 + $0x54c] ss:$16 sps:$4 sm:$0xff]  }
  0x83   : > { %2434 = vmatpush1.bf16.msra.mxu0 %v5427_v63  ;;  %v5448_v63 = vld [vmem:[%s7817_s1 + $0x404] ss:$16 sps:$4 sm:$0xff]  }
  0x84   : > { %2435 = vmatprep.subr.bf16.mxu0 %v5435_v8  ;;  %v7908_v8 = vld [vmem:[#allocation8_spill] sm:$0xff]  ;;  %2876 = vmatpush1.bf16.msra.mxu1 %v5491_v0  ;;  %v5503_v0 = vld [vmem:[%s7817_s1 + $0x548] ss:$16 sps:$4 sm:$0xff]  }
  0x85   : > { %2819 = vmatmul.mubr.bf16.gmra.mrb[16].mxu1 %v7908_v8  ;;  %2877 = vmatprep.subr.bf16.mxu1 %v5499_v59  ;;  %v5511_v59 = vld [vmem:[%s7817_s1 + $0x56c] ss:$16 sps:$4 sm:$0xff]  }
  0x86   : > { %4855 = vmatmul.mubr.msk.bf16.gmra.mrb[28].mxu0 %vm6618_vm6, %v6671_v24  ;;  %2828 = vmatprep.mubr.bf16.mxu1 %v6114_v47 }
  0x87   : > { %2436 = vmatpush1.bf16.msra.mxu0 %v5433_v35  ;;  %2439 = vmatprep.mubr.bf16.mxu0 %v7907_v9  ;;  %v5446_v35 = vld [vmem:[%s7817_s1 + $0x400] ss:$16 sps:$4 sm:$0xff]   ;;  %v5460_v9 = vld [vmem:[%s7817_s1 + $0x444] ss:$16 sps:$4 sm:$0xff]  }
  0x88   : > { %2437 = vmatprep.subr.bf16.mxu0 %v5441_v29  ;;  %v5454_v29 = vld [vmem:[%s7817_s1 + $0x424] ss:$16 sps:$4 sm:$0xff]   ;;  %2878 = vmatpush1.bf16.msra.mxu1 %v5497_v32  ;;  %v5517_v32 = vld [vmem:[%s7817_s1 + $0x58c] ss:$16 sps:$4 sm:$0xff]  }
  0x89   : > { %2879 = vmatprep.subr.bf16.mxu1 %v5505_v17  ;;  %v5466_v17 = vld [vmem:[%s7817_s1 + $0x464] ss:$16 sps:$4 sm:$0xff]  }
  0x8b   : > { %2438 = vmatpush1.bf16.msra.mxu0 %v5439_v5  ;;  %v5452_v5 = vld [vmem:[%s7817_s1 + $0x420] ss:$16 sps:$4 sm:$0xff]  }
  0x8c   : > { %2520 = vmatprep.subr.bf16.mxu0 %v5448_v63  ;;  %2880 = vmatpush1.bf16.msra.mxu1 %v5503_v0  ;;  %v7909_v63 = vld [vmem:[#allocation14_spill] sm:$0xff] }
  0x8d   : > { %2829 = vmatmul.mubr.bf16.gmra.mrb[20].mxu1 %v6130_v58  ;;  %2881 = vmatprep.subr.bf16.mxu1 %v5511_v59  ;;  %v5464_v0 = vld [vmem:[%s7817_s1 + $0x460] ss:$16 sps:$4 sm:$0xff]   ;;  %v5472_v59 = vld [vmem:[%s7817_s1 + $0x484] ss:$16 sps:$4 sm:$0xff]  }
  0x8e   : > { %2440 = vmatmul.mubr.bf16.vlgmr.msra.gmra.mrb[0].mxu0 %v5871_v49  ;;  %v5509_v49 = vld [vmem:[%s7817_s1 + $0x568] ss:$16 sps:$4 sm:$0xff]   ;;  %2838 = vmatprep.mubr.bf16.mxu1 %v7909_v63 }
  0x8f   : > { %2521 = vmatpush1.bf16.msra.mxu0 %v5446_v35  ;;  %2449 = vmatprep.mubr.bf16.mxu0 %v6419_v30  ;;  %v5458_v30 = vld [vmem:[%s7817_s1 + $0x440] ss:$16 sps:$4 sm:$0xff]   ;;  %v5515_v35 = vld [vmem:[%s7817_s1 + $0x588] ss:$16 sps:$4 sm:$0xff]  }
  0x90   : > { %2522 = vmatprep.subr.bf16.mxu0 %v5454_v29  ;;  %2882 = vmatpush1.bf16.msra.mxu1 %v5509_v49  ;;  %v5523_v29 = vld [vmem:[%s7817_s1 + $0x5ac] ss:$16 sps:$4 sm:$0xff]  }
  0x91   : > { %2883 = vmatprep.subr.bf16.mxu1 %v5517_v32  ;;  %v5529_v32 = vld [vmem:[%s7817_s1 + $0x5cc] ss:$16 sps:$4 sm:$0xff]  }
  0x93   : > { %2523 = vmatpush1.bf16.msra.mxu0 %v5452_v5  ;;  %v7910_v5 = vld [vmem:[#allocation16_spill] sm:$0xff] }
  0x94   : > { %2524 = vmatprep.subr.bf16.mxu0 %v5460_v9  ;;  %2884 = vmatpush1.bf16.msra.mxu1 %v5515_v35  ;;  %v7911_v9 = vld [vmem:[#allocation9_spill] sm:$0xff] }
  0x95   : > { %2839 = vmatmul.mubr.bf16.gmra.mrb[24].mxu1 %v7910_v5  ;;  %v7912_v49 = vand.u32 15, %v7911_v9  ;;  %2885 = vmatprep.subr.bf16.mxu1 %v5523_v29  ;;  %v777_v9 = vld [vmem:[#allocation2 + $0x100] sm:$0x3]  ;;  %v5545_v29 = vld [vmem:[%s7817_s1 + $0x48] ss:$16 sps:$4 sm:$0xff]  }
  0x96   : > { %2450 = vmatmul.mubr.bf16.gmra.mrb[4].mxu0 %v5918_v4  ;;  %v5521_v4 = vld [vmem:[%s7817_s1 + $0x5a8] ss:$16 sps:$4 sm:$0xff]   ;;  %2848 = vmatprep.mubr.bf16.mxu1 %v6265_v13  ;;  %v908_v31 = vrot.slane %v777_v9, 2 }
  0x97   : > { %2525 = vmatpush1.bf16.msra.mxu0 %v5458_v30  ;;  %2459 = vmatprep.mubr.bf16.mxu0 %v6492_v10  ;;  %vm5280_vm8 = vcmp.ne.s32.totalorder %v7912_v49, 15  ;;  %v5470_v10 = vld [vmem:[%s7817_s1 + $0x480] ss:$16 sps:$4 sm:$0xff]   ;;  %v778_v30 = vld [vmem:[#allocation2 + $0x108] sm:$0x3] }
  0x98   : > { %2526 = vmatprep.subr.bf16.mxu0 %v5466_v17  ;;  %v7913_v17 = vld [vmem:[#allocation15_spill] sm:$0xff]  ;;  %v910_v14 = vrot.slane %v778_v30, 2  ;;  %v5478_v49 = vld [vmem:[%s7817_s1 + $0x4a4] ss:$16 sps:$4 sm:$0xff]   ;;  %vm6782_vm12 = vmpackc.low %vm5280_vm8, %vm5724_vm4  ;;  %2886 = vmatpush1.bf16.msra.mxu1 %v5521_v4 }
  0x99   : > { %v7914_v35 = vand.u32 15, %v7913_v17  ;;  %v5527_v30 = vld [vmem:[%s7817_s1 + $0x5c8] ss:$16 sps:$4 sm:$0xff]   ;;  %2887 = vmatprep.subr.bf16.mxu1 %v5529_v32  ;;  %v5553_v4 = vld [vmem:[%s7817_s1 + $0x8c] ss:$16 sps:$4 sm:$0xff]  }
  0x9a   : > { %v911_v17 = vsel %vm845_vm2, %v906_v38, %v910_v14  ;;  %v909_v14 = vsel %vm845_vm2, %v7921_v15, %v908_v31  ;;  %v7923_v31 = vand.u32 15, %v6278_v33  ;;  %v7926_v33 = vld [vmem:[#allocation7_spill] sm:$0xff]  ;;  %v5520_v15 = vld [vmem:[%s7817_s1 + $0x584] ss:$16 sps:$4 sm:$0xff]  }
  0x9b   : > { %2527 = vmatpush1.bf16.msra.mxu0 %v5464_v0  ;;  %vm6774_vm10 = vcmp.ne.s32.totalorder %v7914_v35, 15  ;;  %v5476_v0 = vld [vmem:[%s7817_s1 + $0x4a0] ss:$16 sps:$4 sm:$0xff]   ;;  %v5484_v35 = vld [vmem:[%s7817_s1 + $0x4c4] ss:$16 sps:$4 sm:$0xff]   ;;  %v6810_v9 = vpack.c.bf16 %v911_v17, %v6667_v61  ;;  %v6820_v38 = vpack.c.bf16 %v909_v14, %v6679_v57  ;;  %v7927_v32 = vld [vmem:[#allocation19_spill] sm:$0xff] }
  0x9c   : > { %2528 = vmatprep.subr.bf16.mxu0 %v5472_v59  ;;  %v5535_v59 = vld [vmem:[%s7817_s1 + $0x5ec] ss:$16 sps:$4 sm:$0xff]   ;;  %vm6805_vm14 = vmpackc.low %vm6774_vm10, %vm5724_vm4  ;;  %2888 = vmatpush1.bf16.msra.mxu1 %v5527_v30  ;;  %vm5282_vm2 = vcmp.ne.s32.totalorder %v7923_v31, 15  ;;  %v5488_v61 = vld [vmem:[%s7817_s1 + $0x4e0] ss:$16 sps:$4 sm:$0xff]  }
  0x9d   : > { %2849 = vmatmul.mubr.bf16.gmra.mrb[28].mxu1 %v6293_v44  ;;  %2889 = vmatprep.subr.bf16.mxu1 %v5535_v59  ;;  %v5496_v57 = vld [vmem:[%s7817_s1 + $0x504] ss:$16 sps:$4 sm:$0xff]   ;;  %vm6842_vm0 = vmpackc.low %vm5282_vm2, %vm5724_vm4  ;;  %v5536_v31 = vld [vmem:[%s7817_s1 + $0x5e0] ss:$16 sps:$4 sm:$0xff]  }
  0x9e   : > { %2460 = vmatmul.mubr.bf16.gmra.mrb[8].mxu0 %v5983_v60  ;;  %v5533_v60 = vld [vmem:[%s7817_s1 + $0x5e8] ss:$16 sps:$4 sm:$0xff]   ;;  %4987 = vmatprep.mubr.msk.bf16.mxu1 %vm6782_vm12, %v7922_v41  ;;  %v5508_v30 = vld [vmem:[%s7817_s1 + $0x544] ss:$16 sps:$4 sm:$0xff]   ;;  %v5583_v14 = vld [vmem:[%s7817_s1 + $0x1cc] ss:$16 sps:$4 sm:$0xff]  }
  0x9f   : > { %2529 = vmatpush1.bf16.msra.mxu0 %v5470_v10  ;;  %2469 = vmatprep.mubr.bf16.mxu0 %v6565_v20  ;;  %v5490_v20 = vld [vmem:[%s7817_s1 + $0x4e4] ss:$16 sps:$4 sm:$0xff]   ;;  %v5562_v10 = vld [vmem:[%s7817_s1 + $0xec] ss:$16 sps:$4 sm:$0xff]   ;;  %v5563_v59 = vld [vmem:[%s7817_s1 + $0x108] ss:$16 sps:$4 sm:$0xff]  }
  0xa0   : > { %2530 = vmatprep.subr.bf16.mxu0 %v5478_v49  ;;  %2890 = vmatpush1.bf16.msra.mxu1 %v5533_v60  ;;  %v5502_v49 = vld [vmem:[%s7817_s1 + $0x524] ss:$16 sps:$4 sm:$0xff]  }
  0xa1   : > { %v5514_v17 = vld [vmem:[%s7817_s1 + $0x564] ss:$16 sps:$4 sm:$0xff]  }
  0xa2   : > { %v5589_v60 = vld [vmem:[%s7819_s3 + $0x4] ss:$8 sps:$4 sm:$0xff]  }
  0xa3   : > { %2531 = vmatpush1.bf16.msra.mxu0 %v5476_v0  ;;  %v5500_v0 = vld [vmem:[%s7817_s1 + $0x520] ss:$16 sps:$4 sm:$0xff]  }
  0xa4   : > { %2532 = vmatprep.subr.bf16.mxu0 %v5484_v35  ;;  %v5512_v35 = vld [vmem:[%s7817_s1 + $0x560] ss:$16 sps:$4 sm:$0xff]  }
  0xa5   : > { %4991 = vmatmul.mubr.msk.bf16.vlgmr.msra.gmra.mrb[0].mxu1 %vm6782_vm12, %v7926_v33 }
  0xa6   : > { %2470 = vmatmul.mubr.bf16.gmra.mrb[12].mxu0 %v6031_v45  ;;  %v5494_v45 = vld [vmem:[%s7817_s1 + $0x500] ss:$16 sps:$4 sm:$0xff]   ;;  %4995 = vmatprep.mubr.msk.bf16.mxu1 %vm6805_vm14, %v7927_v32 }
  0xa7   : > { %2533 = vmatpush1.bf16.msra.mxu0 %v5482_v2  ;;  %2479 = vmatprep.mubr.bf16.mxu0 %v6637_v43  ;;  %v7928_v43 = vand.u32 15, %v6366_v39  ;;  %v7931_v39 = vld [vmem:[#allocation20_spill] sm:$0xff] }
  0xa8   : > { %2534 = vmatprep.subr.bf16.mxu0 %v5490_v20  ;;  %v5524_v2 = vld [vmem:[%s7817_s1 + $0x5a0] ss:$16 sps:$4 sm:$0xff]   ;;  %v5532_v20 = vld [vmem:[%s7817_s1 + $0x5c4] ss:$16 sps:$4 sm:$0xff]  }
  0xa9   : > { %vm5283_vm3 = vcmp.ne.s32.totalorder %v7928_v43, 15  ;;  %v5613_v43 = vld [vmem:[%s7819_s3 + $0x84] ss:$8 sps:$4 sm:$0xff]  }
  0xaa   : > { %vm6869_vm8 = vmpackc.low %vm5283_vm3, %vm5724_vm4 }
  0xab   : > { %2535 = vmatpush1.bf16.msra.mxu0 %v5488_v61  ;;  %v5539_v61 = vld [vmem:[%s7817_s1 + $0x8] ss:$16 sps:$4 sm:$0xff]  }
  0xac   : > { %2536 = vmatprep.subr.bf16.mxu0 %v5496_v57  ;;  %v5544_v57 = vld [vmem:[%s7817_s1 + $0x2c] ss:$16 sps:$4 sm:$0xff]  }
  0xad   : > { %4999 = vmatmul.mubr.msk.bf16.gmra.mrb[4].mxu1 %vm6805_vm14, %v7931_v39 }
  0xae   : > { %2480 = vmatmul.mubr.bf16.gmra.mrb[16].mxu0 %v7908_v8  ;;  %v5506_v8 = vld [vmem:[%s7817_s1 + $0x540] ss:$16 sps:$4 sm:$0xff]   ;;  %5003 = vmatprep.mubr.msk.bf16.mxu1 %vm6842_vm0, %v6327_v21 }
  0xaf   : > { %2537 = vmatpush1.bf16.msra.mxu0 %v5494_v45  ;;  %2489 = vmatprep.mubr.bf16.mxu0 %v6114_v47  ;;  %v7932_v47 = vand.u32 15, %v6430_v18  ;;  %v5526_v18 = vld [vmem:[%s7817_s1 + $0x5a4] ss:$16 sps:$4 sm:$0xff]   ;;  %v5542_v45 = vld [vmem:[%s7817_s1 + $0x28] ss:$16 sps:$4 sm:$0xff]  }
  0xb0   : > { %2538 = vmatprep.subr.bf16.mxu0 %v5502_v49  ;;  %v5547_v49 = vld [vmem:[%s7817_s1 + $0x4c] ss:$16 sps:$4 sm:$0xff]  }
  0xb1   : > { %vm5284_vm10 = vcmp.ne.s32.totalorder %v7932_v47, 15  ;;  %v5569_v47 = vld [vmem:[%s7817_s1 + $0x148] ss:$16 sps:$4 sm:$0xff]  }
  0xb2   : > { %vm6896_vm2 = vmpackc.low %vm5284_vm10, %vm5724_vm4 }
  0xb3   : > { %2539 = vmatpush1.bf16.msra.mxu0 %v5500_v0  ;;  %v5551_v0 = vld [vmem:[%s7817_s1 + $0x88] ss:$16 sps:$4 sm:$0xff]  }
  0xb4   : > { %2540 = vmatprep.subr.bf16.mxu0 %v5508_v30  ;;  %v5554_v30 = vld [vmem:[%s7817_s1 + $0xa8] ss:$16 sps:$4 sm:$0xff]  }
  0xb5   : > { %5007 = vmatmul.mubr.msk.bf16.gmra.mrb[8].mxu1 %vm6842_vm0, %v6350_v51 }
  0xb6   : > { %2490 = vmatmul.mubr.bf16.gmra.mrb[20].mxu0 %v6130_v58  ;;  %v5518_v58 = vld [vmem:[%s7817_s1 + $0x580] ss:$16 sps:$4 sm:$0xff]   ;;  %5011 = vmatprep.mubr.msk.bf16.mxu1 %vm6869_vm8, %v6394_v48 }
  0xb7   : > { %2541 = vmatpush1.bf16.msra.mxu0 %v5506_v8  ;;  %2499 = vmatprep.mubr.bf16.mxu0 %v7909_v63  ;;  %v7935_v63 = vand.u32 15, %v6503_v53  ;;  %v5530_v53 = vld [vmem:[%s7817_s1 + $0x5c0] ss:$16 sps:$4 sm:$0xff]   ;;  %v5565_v8 = vld [vmem:[%s7817_s1 + $0x10c] ss:$16 sps:$4 sm:$0xff]  }
  0xb8   : > { %2542 = vmatprep.subr.bf16.mxu0 %v5514_v17  ;;  %v5571_v17 = vld [vmem:[%s7817_s1 + $0x14c] ss:$16 sps:$4 sm:$0xff]  }
  0xb9   : > { %vm6915_vm3 = vcmp.ne.s32.totalorder %v7935_v63, 15 }
  0xba   : > { %vm6943_vm10 = vmpackc.low %vm6915_vm3, %vm5724_vm4 }
  0xbb   : > { %2543 = vmatpush1.bf16.msra.mxu0 %v5512_v35  ;;  %v5577_v35 = vld [vmem:[%s7817_s1 + $0x18c] ss:$16 sps:$4 sm:$0xff]  }
  0xbc   : > { %2544 = vmatprep.subr.bf16.mxu0 %v5520_v15  ;;  %v5575_v15 = vld [vmem:[%s7817_s1 + $0x188] ss:$16 sps:$4 sm:$0xff]  }
  0xbd   : > { %5015 = vmatmul.mubr.msk.bf16.gmra.mrb[12].mxu1 %vm6869_vm8, %v6407_v16 }
  0xbe   : > { %2500 = vmatmul.mubr.bf16.gmra.mrb[24].mxu0 %v7910_v5  ;;  %5019 = vmatprep.mubr.msk.bf16.mxu1 %vm6896_vm2, %v6465_v54  ;;  %v5538_v5 = vld [vmem:[%s7817_s1 + $0x5e4] ss:$16 sps:$4 sm:$0xff]  }
  0xbf   : > { %2545 = vmatpush1.bf16.msra.mxu0 %v5518_v58  ;;  %2509 = vmatprep.mubr.bf16.mxu0 %v6265_v13  ;;  %v5581_v58 = vld [vmem:[%s7817_s1 + $0x1c8] ss:$16 sps:$4 sm:$0xff]  }
  0xc0   : > { %2546 = vmatprep.subr.bf16.mxu0 %v5526_v18  ;;  %v7946_v18 = vld [vmem:[#allocation6_spill] sm:$0xff]  ;;  %v5590_v13 = vld [vmem:[%s7819_s3 + $0x10] ss:$8 sps:$4 sm:$0xff]  }
  0xc3   : > { %2547 = vmatpush1.bf16.msra.mxu0 %v5524_v2  ;;  %v5587_v2 = vld [vmem:[%s7819_s3] ss:$8 sps:$4 sm:$0xff]  }
  0xc4   : > { %2548 = vmatprep.subr.bf16.mxu0 %v5532_v20  ;;  %v7948_v20 = vld [vmem:[#allocation10_spill] sm:$0xff] }
  0xc5   : > { %5023 = vmatmul.mubr.msk.bf16.gmra.mrb[16].mxu1 %vm6896_vm2, %v6480_v36 }
  0xc6   : > { %2510 = vmatmul.mubr.bf16.gmra.mrb[28].mxu0 %v6293_v44  ;;  %v5541_v44 = vld [vmem:[%s7817_s1 + $0xc] ss:$16 sps:$4 sm:$0xff]   ;;  %5027 = vmatprep.mubr.msk.bf16.mxu1 %vm6943_vm10, %v6538_v52 }
  0xc7   : > { %2549 = vmatpush1.bf16.msra.mxu0 %v5530_v53  ;;  %4859 = vmatprep.mubr.msk.bf16.mxu0 %vm6782_vm12, %v7922_v41  ;;  %v7940_v41 = vand.u32 15, %v6576_v3  ;;  %v7949_v53 = vld [vmem:[#allocation12_spill] sm:$0xff]  ;;  %v5599_v3 = vld [vmem:[%s7819_s3 + $0x40] ss:$8 sps:$4 sm:$0xff]  }
  0xc8   : > { %2550 = vmatprep.subr.bf16.mxu0 %v5538_v5 }
  0xc9   : > { %vm5286_vm3 = vcmp.ne.s32.totalorder %v7940_v41, 15  ;;  %v7951_v41 = vld [vmem:[#allocation17_spill] sm:$0xff] }
  0xca   : > { %vm6980_vm6 = vmpackc.low %vm5286_vm3, %vm5724_vm4 }
  0xcb   : > { %2551 = vmatpush1.bf16.msra.mxu0 %v5536_v31  ;;  %v5595_v31 = vld [vmem:[%s7819_s3 + $0x24] ss:$8 sps:$4 sm:$0xff]  }
  0xcc   : > { %2633 = vmatprep.subr.bf16.mxu0 %v5541_v44  ;;  %v5593_v44 = vld [vmem:[%s7819_s3 + $0x20] ss:$8 sps:$4 sm:$0xff]  }
  0xcd   : > { %5031 = vmatmul.mubr.msk.bf16.gmra.mrb[20].mxu1 %vm6943_vm10, %v6553_v40 }
  0xce   : > { %4863 = vmatmul.mubr.msk.bf16.vlgmr.msra.gmra.mrb[0].mxu0 %vm6782_vm12, %v7926_v33  ;;  %5035 = vmatprep.mubr.msk.bf16.mxu1 %vm6980_vm6, %v6611_v12  ;;  %v7943_v33 = vand.u32 15, %v6647_v23  ;;  %v5548_v23 = vld [vmem:[%s7817_s1 + $0x68] ss:$16 sps:$4 sm:$0xff]  }
  0xcf   : > { %2634 = vmatpush1.bf16.msra.mxu0 %v5539_v61  ;;  %4867 = vmatprep.mubr.msk.bf16.mxu0 %vm6805_vm14, %v7927_v32  ;;  %v5550_v32 = vld [vmem:[%s7817_s1 + $0x6c] ss:$16 sps:$4 sm:$0xff]  }
  0xd0   : > { %2635 = vmatprep.subr.bf16.mxu0 %v5544_v57  ;;  %vm5287_vm12 = vcmp.ne.s32.totalorder %v7943_v33, 15  ;;  %v5598_v61 = vld [vmem:[%s7819_s3 + $0x34] ss:$8 sps:$4 sm:$0xff]   ;;  %v7952_v57 = vld [vmem:[#allocation18_spill] sm:$0xff]  ;;  %v5602_v33 = vld [vmem:[%s7819_s3 + $0x50] ss:$8 sps:$4 sm:$0xff]  }
  0xd1   : > { %vm7005_vm3 = vmpackc.low %vm5287_vm12, %vm5724_vm4  ;;  %vm7953_vm4 = vnez %v7906_v34 }
  0xd3   : > { %2636 = vmatpush1.bf16.msra.mxu0 %v5542_v45  ;;  %v5596_v45 = vld [vmem:[%s7819_s3 + $0x30] ss:$8 sps:$4 sm:$0xff]  }
  0xd4   : > { %2637 = vmatprep.subr.bf16.mxu0 %v5547_v49  ;;  %v5601_v49 = vld [vmem:[%s7819_s3 + $0x44] ss:$8 sps:$4 sm:$0xff]  }
  0xd5   : > { %5039 = vmatmul.mubr.msk.bf16.gmra.mrb[24].mxu1 %vm6980_vm6, %v6626_v27 }
  0xd6   : > { %4871 = vmatmul.mubr.msk.bf16.gmra.mrb[4].mxu0 %vm6805_vm14, %v7931_v39  ;;  %5043 = vmatprep.mubr.msk.bf16.mxu1 %vm7005_vm3, %v6810_v9  ;;  %v5559_v39 = vld [vmem:[%s7817_s1 + $0xcc] ss:$16 sps:$4 sm:$0xff]  }
  0xd7   : > { %2638 = vmatpush1.bf16.msra.mxu0 %v5545_v29  ;;  %4875 = vmatprep.mubr.msk.bf16.mxu0 %vm6842_vm0, %v6327_v21  ;;  %v5556_v21 = vld [vmem:[%s7817_s1 + $0xac] ss:$16 sps:$4 sm:$0xff]  }
  0xd8   : > { %2639 = vmatprep.subr.bf16.mxu0 %v5550_v32  ;;  %v5604_v29 = vld [vmem:[%s7819_s3 + $0x54] ss:$8 sps:$4 sm:$0xff]   ;;  %v5607_v32 = vld [vmem:[%s7819_s3 + $0x64] ss:$8 sps:$4 sm:$0xff]  }
  0xdb   : > { %2640 = vmatpush1.bf16.msra.mxu0 %v5548_v23  ;;  %v5619_v23 = vld [vmem:[%s7819_s3 + $0xa4] ss:$8 sps:$4 sm:$0xff]  }
  0xdc   : > { %2641 = vmatprep.subr.bf16.mxu0 %v5553_v4  ;;  %v5625_v4 = vld [vmem:[%s7819_s3 + $0xc4] ss:$8 sps:$4 sm:$0xff]  }
  0xdd   : > { %5047 = vmatmul.mubr.msk.bf16.gmra.mrb[28].mxu1 %vm7005_vm3, %v6820_v38 }
  0xde   : > { %4879 = vmatmul.mubr.msk.bf16.gmra.mrb[8].mxu0 %vm6842_vm0, %v6350_v51  ;;  %v5557_v51 = vld [vmem:[%s7817_s1 + $0xc8] ss:$16 sps:$4 sm:$0xff]  }
  0xdf   : > { %2642 = vmatpush1.bf16.msra.mxu0 %v5551_v0  ;;  %4883 = vmatprep.mubr.msk.bf16.mxu0 %vm6869_vm8, %v6394_v48  ;;  %v5560_v48 = vld [vmem:[%s7817_s1 + $0xe8] ss:$16 sps:$4 sm:$0xff]   ;;  %v5631_v0 = vld [vmem:[%s7819_s3 + $0xe4] ss:$8 sps:$4 sm:$0xff]  }
  0xe0   : > { %2643 = vmatprep.subr.bf16.mxu0 %v5556_v21  ;;  %v5637_v21 = vld [vmem:[%s7819_s3 + $0x104] ss:$8 sps:$4 sm:$0xff]  }
  0xe3   : > { %2644 = vmatpush1.bf16.msra.mxu0 %v5554_v30 }
  0xe4   : > { %2645 = vmatprep.subr.bf16.mxu0 %v5559_v39 }
  0xe6   : > { %4887 = vmatmul.mubr.msk.bf16.gmra.mrb[12].mxu0 %vm6869_vm8, %v6407_v16  ;;  %v5568_v16 = vld [vmem:[%s7817_s1 + $0x12c] ss:$16 sps:$4 sm:$0xff]  }
  0xe7   : > { %2646 = vmatpush1.bf16.msra.mxu0 %v5557_v51  ;;  %4891 = vmatprep.mubr.msk.bf16.mxu0 %vm6896_vm2, %v6465_v54  ;;  %v5566_v54 = vld [vmem:[%s7817_s1 + $0x128] ss:$16 sps:$4 sm:$0xff]  }
  0xe8   : > { %2647 = vmatprep.subr.bf16.mxu0 %v5562_v10 }
  0xeb   : > { %2648 = vmatpush1.bf16.msra.mxu0 %v5560_v48 }
  0xec   : > { %2649 = vmatprep.subr.bf16.mxu0 %v5565_v8 }
  0xee   : > { %4895 = vmatmul.mubr.msk.bf16.gmra.mrb[16].mxu0 %vm6896_vm2, %v6480_v36  ;;  %v5574_v36 = vld [vmem:[%s7817_s1 + $0x16c] ss:$16 sps:$4 sm:$0xff]  }
  0xef   : > { %2650 = vmatpush1.bf16.msra.mxu0 %v5563_v59  ;;  %4899 = vmatprep.mubr.msk.bf16.mxu0 %vm6943_vm10, %v6538_v52  ;;  %v5572_v52 = vld [vmem:[%s7817_s1 + $0x168] ss:$16 sps:$4 sm:$0xff]  }
  0xf0   : > { %2651 = vmatprep.subr.bf16.mxu0 %v5568_v16 }
  0xf3   : > { %2652 = vmatpush1.bf16.msra.mxu0 %v5566_v54 }
  0xf4   : > { %2653 = vmatprep.subr.bf16.mxu0 %v5571_v17 }
  0xf6   : > { %4903 = vmatmul.mubr.msk.bf16.gmra.mrb[20].mxu0 %vm6943_vm10, %v6553_v40  ;;  %v5580_v40 = vld [vmem:[%s7817_s1 + $0x1ac] ss:$16 sps:$4 sm:$0xff]  }
  0xf7   : > { %2654 = vmatpush1.bf16.msra.mxu0 %v5569_v47  ;;  %4907 = vmatprep.mubr.msk.bf16.mxu0 %vm6980_vm6, %v6611_v12  ;;  %v5578_v12 = vld [vmem:[%s7817_s1 + $0x1a8] ss:$16 sps:$4 sm:$0xff]  }
  0xf8   : > { %2655 = vmatprep.subr.bf16.mxu0 %v5574_v36 }
  0xfb   : > { %2656 = vmatpush1.bf16.msra.mxu0 %v5572_v52 }
  0xfc   : > { %2657 = vmatprep.subr.bf16.mxu0 %v5577_v35 }
  0xfe   : > { %4911 = vmatmul.mubr.msk.bf16.gmra.mrb[24].mxu0 %vm6980_vm6, %v6626_v27  ;;  %v5586_v27 = vld [vmem:[%s7817_s1 + $0x1ec] ss:$16 sps:$4 sm:$0xff]  }
  0xff   : > { %2658 = vmatpush1.bf16.msra.mxu0 %v5575_v15  ;;  %4915 = vmatprep.mubr.msk.bf16.mxu0 %vm7005_vm3, %v6810_v9  ;;  %v5584_v9 = vld [vmem:[%s7817_s1 + $0x1e8] ss:$16 sps:$4 sm:$0xff]   ;;  %v1316_v15 = vsub.s32 0, %v5781_v7 }
 0x100   : > { %2659 = vmatprep.subr.bf16.mxu0 %v5580_v40  ;;  %v7312_v40 = vld [vmem:[%s7818_s2] sm:$0xf] }
 0x103   : > { %2660 = vmatpush1.bf16.msra.mxu0 %v5578_v12  ;;  %v1320_v12 = vsub.s32 1, %v5781_v7 }
 0x104   : > { %2661 = vmatprep.subr.bf16.mxu0 %v5583_v14 }
 0x105   : > { %v7327_v63 = vrot.slane %v7312_v40, %v1320_v12 }
 0x106   : > { %4919 = vmatmul.mubr.msk.bf16.gmra.mrb[28].mxu0 %vm7005_vm3, %v6820_v38  ;;  %v5592_v38 = vld [vmem:[%s7819_s3 + $0x14] ss:$8 sps:$4 sm:$0xff]  }
 0x107   : > { %2662 = vmatpush1.bf16.msra.mxu0 %v5581_v58  ;;  %4923 = vmatprep.mubr.msk.bf16.mxu0 %vm5911_vm5, %v7946_v18 }
 0x108   : > { %2663 = vmatprep.subr.bf16.mxu0 %v5586_v27 }
 0x10b   : > { %2664 = vmatpush1.bf16.msra.mxu0 %v5584_v9  ;;  %v7322_v9 = vrot.slane %v7312_v40, %v1316_v15 }
 0x10c   : > { %3452 = vmatprep.subr.bf16.mxu0 %v5589_v60 }
 0x10e   : > { %4927 = vmatmul.mubr.msk.bf16.vlgmr.msra.gmra.mrb[32].mxu0 %vm5911_vm5, %v7948_v20 }
 0x10f   : > { %4931 = vmatprep.mubr.msk.bf16.mxu0 %vm6144_vm7, %v7949_v53  ;;  %3453 = vmatpush1.bf16.msra.mxu0 %v5587_v2 }
 0x110   : > { %3454 = vmatprep.subr.bf16.mxu0 %v5592_v38 }
 0x113   : > { %3455 = vmatpush1.bf16.msra.mxu0 %v5590_v13 }
 0x114   : > { %3456 = vmatprep.subr.bf16.mxu0 %v5595_v31 }
 0x116   : > { %4935 = vmatmul.mubr.msk.bf16.gmra.mrb[36].mxu0 %vm6144_vm7, %v7951_v41 }
 0x117   : > { %4939 = vmatprep.mubr.msk.bf16.mxu0 %vm6239_vm9, %v7952_v57  ;;  %3457 = vmatpush1.bf16.msra.mxu0 %v5593_v44 }
 0x118   : > { %3458 = vmatprep.subr.bf16.mxu0 %v5598_v61 }
 0x11b   : > { %3459 = vmatpush1.bf16.msra.mxu0 %v5596_v45 }
 0x11c   : > { %3460 = vmatprep.subr.bf16.mxu0 %v5601_v49 }
 0x11e   : > { %4943 = vmatmul.mubr.msk.bf16.gmra.mrb[40].mxu0 %vm6239_vm9, %v6322_v11  ;;  %v5610_v11 = vld [vmem:[%s7819_s3 + $0x74] ss:$8 sps:$4 sm:$0xff]  }
 0x11f   : > { %4947 = vmatprep.mubr.msk.bf16.mxu0 %vm6338_vm11, %v6344_v50  ;;  %3461 = vmatpush1.bf16.msra.mxu0 %v5599_v3  ;;  %v5608_v50 = vld [vmem:[%s7819_s3 + $0x70] ss:$8 sps:$4 sm:$0xff]  }
 0x120   : > { %3462 = vmatprep.subr.bf16.mxu0 %v5604_v29 }
 0x123   : > { %3463 = vmatpush1.bf16.msra.mxu0 %v5602_v33 }
 0x124   : > { %3464 = vmatprep.subr.bf16.mxu0 %v5607_v32 }
 0x126   : > { %4951 = vmatmul.mubr.msk.bf16.gmra.mrb[44].mxu0 %vm6338_vm11, %v6382_v55  ;;  %v5616_v55 = vld [vmem:[%s7819_s3 + $0x94] ss:$8 sps:$4 sm:$0xff]  }
 0x127   : > { %4955 = vmatprep.mubr.msk.bf16.mxu0 %vm6399_vm13, %v6405_v28  ;;  %3465 = vmatpush1.bf16.msra.mxu0 %v5605_v37  ;;  %v5614_v28 = vld [vmem:[%s7819_s3 + $0x90] ss:$8 sps:$4 sm:$0xff]  }
 0x128   : > { %3466 = vmatprep.subr.bf16.mxu0 %v5610_v11  ;;  %v5635_v11 = vld [vmem:[%s7819_s3 + $0x100] ss:$8 sps:$4 sm:$0xff]  }
 0x12b   : > { %3467 = vmatpush1.bf16.msra.mxu0 %v5608_v50 }
 0x12c   : > { %3468 = vmatprep.subr.bf16.mxu0 %v5613_v43 }
 0x12e   : > { %4959 = vmatmul.mubr.msk.bf16.gmra.mrb[48].mxu0 %vm6399_vm13, %v6451_v42  ;;  %v5622_v42 = vld [vmem:[%s7819_s3 + $0xb4] ss:$8 sps:$4 sm:$0xff]  }
 0x12f   : > { %4963 = vmatprep.mubr.msk.bf16.mxu0 %vm6472_vm15, %v6478_v26  ;;  %3469 = vmatpush1.bf16.msra.mxu0 %v5611_v62  ;;  %v5620_v26 = vld [vmem:[%s7819_s3 + $0xb0] ss:$8 sps:$4 sm:$0xff]   ;;  %v5640_v62 = vld [vmem:[%s7819_s3 + $0x114] ss:$8 sps:$4 sm:$0xff]  }
 0x130   : > { %3470 = vmatprep.subr.bf16.mxu0 %v5616_v55 }
 0x133   : > { %3471 = vmatpush1.bf16.msra.mxu0 %v5614_v28 }
 0x134   : > { %3472 = vmatprep.subr.bf16.mxu0 %v5619_v23 }
 0x136   : > { %4967 = vmatmul.mubr.msk.bf16.gmra.mrb[52].mxu0 %vm6472_vm15, %v6524_v19  ;;  %v5628_v19 = vld [vmem:[%s7819_s3 + $0xd4] ss:$8 sps:$4 sm:$0xff]  }
 0x137   : > { %4971 = vmatprep.mubr.msk.bf16.mxu0 %vm6545_vm1, %v6551_v1  ;;  %3473 = vmatpush1.bf16.msra.mxu0 %v5617_v6  ;;  %v5626_v1 = vld [vmem:[%s7819_s3 + $0xd0] ss:$8 sps:$4 sm:$0xff]  }
 0x138   : > { %3474 = vmatprep.subr.bf16.mxu0 %v5622_v42 }
 0x13b   : > { %3475 = vmatpush1.bf16.msra.mxu0 %v5620_v26 }
 0x13c   : > { %3476 = vmatprep.subr.bf16.mxu0 %v5625_v4 }
 0x13e   : > { %4975 = vmatmul.mubr.msk.bf16.gmra.mrb[56].mxu0 %vm6545_vm1, %v6597_v25  ;;  %v5634_v25 = vld [vmem:[%s7819_s3 + $0xf4] ss:$8 sps:$4 sm:$0xff]  }
 0x13f   : > { %4979 = vmatprep.mubr.msk.bf16.mxu0 %vm7953_vm4, %v6624_v56  ;;  %3477 = vmatpush1.bf16.msra.mxu0 %v5623_v22  ;;  %v5632_v56 = vld [vmem:[%s7819_s3 + $0xf0] ss:$8 sps:$4 sm:$0xff]  }
 0x140   : > { %3478 = vmatprep.subr.bf16.mxu0 %v5628_v19  ;;  %v5638_v22 = vld [vmem:[%s7819_s3 + $0x110] ss:$8 sps:$4 sm:$0xff]  }
 0x143   : > { %3479 = vmatpush1.bf16.msra.mxu0 %v5626_v1 }
 0x144   : > { %3480 = vmatprep.subr.bf16.mxu0 %v5631_v0 }
 0x146   : > { %4983 = vmatmul.mubr.msk.bf16.gmra.mrb[60].mxu0 %vm7953_vm4, %v6671_v24 }
 0x147   : > { %3481 = vmatpush1.bf16.msra.mxu0 %v5629_v46  ;;  %v5643_v46 = vld [vmem:[%s7819_s3 + $0x124] ss:$8 sps:$4 sm:$0xff]  }
 0x148   : > { %3482 = vmatprep.subr.bf16.mxu0 %v5634_v25 }
 0x14b   : > { %3483 = vmatpush1.bf16.msra.mxu0 %v5632_v56 }
 0x14c   : > { %3565 = vmatprep.subr.bf16.mxu0 %v5637_v21 }
 0x178   : > { %v7276_v30 = vpop.f32.mrb[0].mxu1 }
 0x179   : > { %v7278_v39 = vpop.f32.mrb[1].mxu1 }
 0x17a   : > { %v7280_v51 = vpop.f32.mrb[2].mxu1 }
 0x17b   : > { %v7282_v34 = vpop.f32.mrb[3].mxu1 }
 0x180   : > { %v7284_v24 = vpop.f32.mrb[4].mxu1 }
 0x181   : > { %v7286_v10 = vpop.f32.mrb[5].mxu1 }
 0x182   : > { %v7288_v48 = vpop.f32.mrb[6].mxu1 }
 0x183   : > { %v7290_v8 = vpop.f32.mrb[7].mxu1 }
 0x188   : > { %v7292_v59 = vpop.f32.mrb[8].mxu1 }
 0x189   : > { %v7294_v16 = vpop.f32.mrb[9].mxu1 }
 0x18a   : > { %v7296_v54 = vpop.f32.mrb[10].mxu1 }
 0x18b   : > { %v7298_v17 = vpop.f32.mrb[11].mxu1 }
 0x190   : > { %v7300_v47 = vpop.f32.mrb[12].mxu1 }
 0x191   : > { %v7302_v36 = vpop.f32.mrb[13].mxu1 }
 0x192   : > { %v7304_v52 = vpop.f32.mrb[14].mxu1 }
 0x193   : > { %v7306_v35 = vpop.f32.mrb[15].mxu1 }
 0x198   : > { %v7315_v14 = vpop.f32.mrb[16].mxu1 }
 0x199   : > { %v7317_v58 = vpop.f32.mrb[17].mxu1 }
 0x19a   : > { %v7319_v27 = vpop.f32.mrb[18].mxu1 }
 0x19b   : > { %v7324_v18 = vpop.f32.mrb[19].mxu1 }
 0x1a0   : > { %v7331_v5 = vpop.f32.mrb[20].mxu1 }
 0x1a1   : > { %v2554_v60 = vpop.f32.mrb[0].mxu0  ;;  %v7334_v44 = vpop.f32.mrb[21].mxu1 }
 0x1a2   : > { %v5048_v2 = vadd.f32 %v2554_v60, %v7322_v9  ;;  %v2556_v38 = vpop.f32.mrb[1].mxu0  ;;  %v7337_v41 = vpop.f32.mrb[22].mxu1 }
 0x1a3   : > { %v5049_v20 = vadd.f32 %v2556_v38, %v7327_v63  ;;  %v2558_v53 = vpop.f32.mrb[2].mxu0  ;;  %v7339_v49 = vpop.f32.mrb[23].mxu1 }
 0x1a4   : > { %v5050_v13 = vadd.f32 %v2558_v53, %v7322_v9  ;;  %v2560_v31 = vpop.f32.mrb[3].mxu0  ;;  %v2972_v57 = vmax.f32 %v5048_v2, 0.0  ;;  %v5641_v2 = vld [vmem:[%s7819_s3 + $0x120] ss:$8 sps:$4 sm:$0xff]   ;;  %v5646_v53 = vld [vmem:[%s7819_s3 + $0x134] ss:$8 sps:$4 sm:$0xff]  }
 0x1a5   : > { %v5051_v61 = vadd.f32 %v2560_v31, %v7327_v63  ;;  %v2973_v3 = vmax.f32 %v5049_v20, 0.0 }
 0x1a6   : > { %v2976_v45 = vmax.f32 %v5050_v13, 0.0 }
 0x1a7   : > { %v2977_v29 = vmax.f32 %v5051_v61, 0.0 }
 0x1a8   : > { %v3036_v33 = vpack.c.bf16 %v2976_v45, %v2972_v57  ;;  %v7349_v23 = vpop.f32.mrb[24].mxu1 }
 0x1a9   : > { %v3037_v32 = vpack.c.bf16 %v2977_v29, %v2973_v3  ;;  %v2564_v37 = vpop.f32.mrb[4].mxu0  ;;  %v7352_v26 = vpop.f32.mrb[25].mxu1 }
 0x1aa   : > { %v5052_v50 = vadd.f32 %v2564_v37, %v7322_v9  ;;  %v2566_v43 = vpop.f32.mrb[5].mxu0  ;;  %v7358_v19 = vpop.f32.mrb[26].mxu1 }
 0x1ab   : > { %v5053_v55 = vadd.f32 %v2566_v43, %v7327_v63  ;;  %v2568_v28 = vpop.f32.mrb[6].mxu0  ;;  %3484 = vmatprep.mubr.bf16.mxu0 %v3037_v32  ;;  %v7363_v25 = vpop.f32.mrb[27].mxu1 }
 0x1ac   : > { %v5054_v6 = vadd.f32 %v2568_v28, %v7322_v9  ;;  %v2570_v42 = vpop.f32.mrb[7].mxu0  ;;  %3485 = vmatmul.mubr.bf16.vlgmr.msra.gmra.mrb[64].mxu0 %v3036_v33  ;;  %v2980_v1 = vmax.f32 %v5052_v50, 0.0  ;;  %v5644_v33 = vld [vmem:[%s7819_s3 + $0x130] ss:$8 sps:$4 sm:$0xff]   ;;  %v5649_v50 = vld [vmem:[%s7819_s3 + $0x144] ss:$8 sps:$4 sm:$0xff]  }
 0x1ad   : > { %v5055_v4 = vadd.f32 %v2570_v42, %v7327_v63  ;;  %3566 = vmatpush1.bf16.msra.mxu0 %v5635_v11  ;;  %v2981_v56 = vmax.f32 %v5053_v55, 0.0 }
 0x1ae   : > { %v2984_v0 = vmax.f32 %v5054_v6, 0.0  ;;  %3567 = vmatprep.subr.bf16.mxu0 %v5640_v62 }
 0x1af   : > { %v2985_v21 = vmax.f32 %v5055_v4, 0.0  ;;  %v5647_v4 = vld [vmem:[%s7819_s3 + $0x140] ss:$8 sps:$4 sm:$0xff]  }
 0x1b0   : > { %v3040_v15 = vpack.c.bf16 %v2984_v0, %v2980_v1  ;;  %v7373_v61 = vpop.f32.mrb[28].mxu1  ;;  %v5652_v0 = vld [vmem:[%s7819_s3 + $0x154] ss:$8 sps:$4 sm:$0xff]  }
 0x1b1   : > { %v3041_v12 = vpack.c.bf16 %v2985_v21, %v2981_v56  ;;  %v2574_v60 = vpop.f32.mrb[8].mxu0  ;;  %3568 = vmatpush1.bf16.msra.mxu0 %v5638_v22  ;;  %v7376_v3 = vpop.f32.mrb[29].mxu1 }
 0x1b2   : > { %v5056_v38 = vadd.f32 %v2574_v60, %v7322_v9  ;;  %v2576_v20 = vpop.f32.mrb[9].mxu0  ;;  %3569 = vmatprep.subr.bf16.mxu0 %v5643_v46  ;;  %v7382_v32 = vpop.f32.mrb[30].mxu1  ;;  %v5650_v60 = vld [vmem:[%s7819_s3 + $0x150] ss:$8 sps:$4 sm:$0xff]  }
 0x1b3   : > { %v5057_v13 = vadd.f32 %v2576_v20, %v7327_v63  ;;  %v2578_v31 = vpop.f32.mrb[10].mxu0  ;;  %3494 = vmatprep.mubr.bf16.mxu0 %v3041_v12  ;;  %v7387_v43 = vpop.f32.mrb[31].mxu1  ;;  %v5655_v20 = vld [vmem:[%s7819_s3 + $0x164] ss:$8 sps:$4 sm:$0xff]  }
 0x1b4   : > { %v5058_v57 = vadd.f32 %v2578_v31, %v7322_v9  ;;  %v2580_v45 = vpop.f32.mrb[11].mxu0  ;;  %3495 = vmatmul.mubr.bf16.gmra.mrb[68].mxu0 %v3040_v15  ;;  %v2988_v37 = vmax.f32 %v5056_v38, 0.0 }
 0x1b5   : > { %v5059_v29 = vadd.f32 %v2580_v45, %v7327_v63  ;;  %3570 = vmatpush1.bf16.msra.mxu0 %v5641_v2  ;;  %v2989_v62 = vmax.f32 %v5057_v13, 0.0 }
 0x1b6   : > { %v2992_v11 = vmax.f32 %v5058_v57, 0.0  ;;  %3571 = vmatprep.subr.bf16.mxu0 %v5646_v53 }
 0x1b7   : > { %v2993_v55 = vmax.f32 %v5059_v29, 0.0  ;;  %v5653_v29 = vld [vmem:[%s7819_s3 + $0x160] ss:$8 sps:$4 sm:$0xff]  }
 0x1b8   : > { %v3044_v28 = vpack.c.bf16 %v2992_v11, %v2988_v37  ;;  %v5658_v11 = vld [vmem:[%s7819_s3 + $0x174] ss:$8 sps:$4 sm:$0xff]  }
 0x1b9   : > { %v3045_v6 = vpack.c.bf16 %v2993_v55, %v2989_v62  ;;  %v2584_v42 = vpop.f32.mrb[12].mxu0  ;;  %3572 = vmatpush1.bf16.msra.mxu0 %v5644_v33 }
 0x1ba   : > { %v5060_v22 = vadd.f32 %v2584_v42, %v7322_v9  ;;  %v2586_v1 = vpop.f32.mrb[13].mxu0  ;;  %3573 = vmatprep.subr.bf16.mxu0 %v5649_v50  ;;  %v5656_v42 = vld [vmem:[%s7819_s3 + $0x170] ss:$8 sps:$4 sm:$0xff]  }
 0x1bb   : > { %v5061_v46 = vadd.f32 %v2586_v1, %v7327_v63  ;;  %v2588_v56 = vpop.f32.mrb[14].mxu0  ;;  %3504 = vmatprep.mubr.bf16.mxu0 %v3045_v6  ;;  %v5661_v1 = vld [vmem:[%s7819_s3 + $0x184] ss:$8 sps:$4 sm:$0xff]  }
 0x1bc   : > { %v5062_v21 = vadd.f32 %v2588_v56, %v7322_v9  ;;  %v2590_v15 = vpop.f32.mrb[15].mxu0  ;;  %3505 = vmatmul.mubr.bf16.gmra.mrb[72].mxu0 %v3044_v28  ;;  %v2996_v2 = vmax.f32 %v5060_v22, 0.0 }
 0x1bd   : > { %v5063_v12 = vadd.f32 %v2590_v15, %v7327_v63  ;;  %3574 = vmatpush1.bf16.msra.mxu0 %v5647_v4  ;;  %v2997_v53 = vmax.f32 %v5061_v46, 0.0 }
 0x1be   : > { %v3000_v38 = vmax.f32 %v5062_v21, 0.0  ;;  %3575 = vmatprep.subr.bf16.mxu0 %v5652_v0 }
 0x1bf   : > { %v3001_v13 = vmax.f32 %v5063_v12, 0.0  ;;  %v5659_v12 = vld [vmem:[%s7819_s3 + $0x180] ss:$8 sps:$4 sm:$0xff]  }
 0x1c0   : > { %v3048_v31 = vpack.c.bf16 %v3000_v38, %v2996_v2  ;;  %v5664_v38 = vld [vmem:[%s7819_s3 + $0x194] ss:$8 sps:$4 sm:$0xff]  }
 0x1c1   : > { %v3049_v57 = vpack.c.bf16 %v3001_v13, %v2997_v53  ;;  %v2594_v45 = vpop.f32.mrb[16].mxu0  ;;  %3576 = vmatpush1.bf16.msra.mxu0 %v5650_v60 }
 0x1c2   : > { %v5064_v33 = vadd.f32 %v2594_v45, %v7322_v9  ;;  %v2596_v37 = vpop.f32.mrb[17].mxu0  ;;  %3577 = vmatprep.subr.bf16.mxu0 %v5655_v20  ;;  %v5662_v45 = vld [vmem:[%s7819_s3 + $0x190] ss:$8 sps:$4 sm:$0xff]  }
 0x1c3   : > { %v5065_v50 = vadd.f32 %v2596_v37, %v7327_v63  ;;  %v2598_v62 = vpop.f32.mrb[18].mxu0  ;;  %3514 = vmatprep.mubr.bf16.mxu0 %v3049_v57  ;;  %v5667_v37 = vld [vmem:[%s7819_s3 + $0x1a4] ss:$8 sps:$4 sm:$0xff]  }
 0x1c4   : > { %v5066_v55 = vadd.f32 %v2598_v62, %v7322_v9  ;;  %v2600_v28 = vpop.f32.mrb[19].mxu0  ;;  %3515 = vmatmul.mubr.bf16.gmra.mrb[76].mxu0 %v3048_v31  ;;  %v3004_v4 = vmax.f32 %v5064_v33, 0.0 }
 0x1c5   : > { %v5067_v6 = vadd.f32 %v2600_v28, %v7327_v63  ;;  %3578 = vmatpush1.bf16.msra.mxu0 %v5653_v29  ;;  %v3005_v0 = vmax.f32 %v5065_v50, 0.0 }
 0x1c6   : > { %v3008_v22 = vmax.f32 %v5066_v55, 0.0  ;;  %3579 = vmatprep.subr.bf16.mxu0 %v5658_v11 }
 0x1c7   : > { %v3009_v46 = vmax.f32 %v5067_v6, 0.0  ;;  %v5665_v6 = vld [vmem:[%s7819_s3 + $0x1a0] ss:$8 sps:$4 sm:$0xff]  }
 0x1c8   : > { %v3052_v56 = vpack.c.bf16 %v3008_v22, %v3004_v4  ;;  %v5670_v22 = vld [vmem:[%s7819_s3 + $0x1b4] ss:$8 sps:$4 sm:$0xff]  }
 0x1c9   : > { %v3053_v21 = vpack.c.bf16 %v3009_v46, %v3005_v0  ;;  %v2604_v15 = vpop.f32.mrb[20].mxu0  ;;  %3580 = vmatpush1.bf16.msra.mxu0 %v5656_v42 }
 0x1ca   : > { %v5068_v60 = vadd.f32 %v2604_v15, %v7322_v9  ;;  %v2606_v2 = vpop.f32.mrb[21].mxu0  ;;  %3581 = vmatprep.subr.bf16.mxu0 %v5661_v1  ;;  %v5668_v15 = vld [vmem:[%s7819_s3 + $0x1b0] ss:$8 sps:$4 sm:$0xff]  }
 0x1cb   : > { %v5069_v20 = vadd.f32 %v2606_v2, %v7327_v63  ;;  %v2608_v53 = vpop.f32.mrb[22].mxu0  ;;  %3524 = vmatprep.mubr.bf16.mxu0 %v3053_v21  ;;  %v5673_v2 = vld [vmem:[%s7819_s3 + $0x1c4] ss:$8 sps:$4 sm:$0xff]  }
 0x1cc   : > { %v5070_v13 = vadd.f32 %v2608_v53, %v7322_v9  ;;  %v2610_v31 = vpop.f32.mrb[23].mxu0  ;;  %3525 = vmatmul.mubr.bf16.gmra.mrb[80].mxu0 %v3052_v56  ;;  %v3012_v29 = vmax.f32 %v5068_v60, 0.0 }
 0x1cd   : > { %v5071_v57 = vadd.f32 %v2610_v31, %v7327_v63  ;;  %3582 = vmatpush1.bf16.msra.mxu0 %v5659_v12  ;;  %v3013_v11 = vmax.f32 %v5069_v20, 0.0 }
 0x1ce   : > { %v3016_v33 = vmax.f32 %v5070_v13, 0.0  ;;  %3583 = vmatprep.subr.bf16.mxu0 %v5664_v38 }
 0x1cf   : > { %v3017_v50 = vmax.f32 %v5071_v57, 0.0  ;;  %v5671_v57 = vld [vmem:[%s7819_s3 + $0x1c0] ss:$8 sps:$4 sm:$0xff]  }
 0x1d0   : > { %v3056_v62 = vpack.c.bf16 %v3016_v33, %v3012_v29  ;;  %v1324_v33 = vsub.s32 2, %v5781_v7 }
 0x1d1   : > { %v3057_v55 = vpack.c.bf16 %v3017_v50, %v3013_v11  ;;  %v2614_v28 = vpop.f32.mrb[24].mxu0  ;;  %3584 = vmatpush1.bf16.msra.mxu0 %v5662_v45 }
 0x1d2   : > { %v5072_v42 = vadd.f32 %v2614_v28, %v7322_v9  ;;  %v2616_v4 = vpop.f32.mrb[25].mxu0  ;;  %3585 = vmatprep.subr.bf16.mxu0 %v5667_v37  ;;  %v5676_v37 = vld [vmem:[%s7819_s3 + $0x1d4] ss:$8 sps:$4 sm:$0xff]  }
 0x1d3   : > { %v5073_v1 = vadd.f32 %v2616_v4, %v7327_v63  ;;  %v2618_v0 = vpop.f32.mrb[26].mxu0  ;;  %3534 = vmatprep.mubr.bf16.mxu0 %v3057_v55 }
 0x1d4   : > { %v5074_v46 = vadd.f32 %v2618_v0, %v7322_v9  ;;  %v2620_v56 = vpop.f32.mrb[27].mxu0  ;;  %3535 = vmatmul.mubr.bf16.gmra.mrb[84].mxu0 %v3056_v62  ;;  %v3020_v12 = vmax.f32 %v5072_v42, 0.0  ;;  %v1328_v62 = vsub.s32 3, %v5781_v7  ;;  %v5674_v42 = vld [vmem:[%s7819_s3 + $0x1d0] ss:$8 sps:$4 sm:$0xff]  }
 0x1d5   : > { %v5075_v21 = vadd.f32 %v2620_v56, %v7327_v63  ;;  %3586 = vmatpush1.bf16.msra.mxu0 %v5665_v6  ;;  %v3021_v38 = vmax.f32 %v5073_v1, 0.0  ;;  %v7469_v1 = vrot.slane %v7312_v40, %v1324_v33  ;;  %v5679_v7 = vld [vmem:[%s7819_s3 + $0x1e4] ss:$8 sps:$4 sm:$0xff]  }
 0x1d6   : > { %v3024_v60 = vmax.f32 %v5074_v46, 0.0  ;;  %3587 = vmatprep.subr.bf16.mxu0 %v5670_v22  ;;  %v7475_v46 = vrot.slane %v7312_v40, %v1328_v62 }
 0x1d7   : > { %v3025_v20 = vmax.f32 %v5075_v21, 0.0 }
 0x1d8   : > { %v3060_v53 = vpack.c.bf16 %v3024_v60, %v3020_v12 }
 0x1d9   : > { %v3061_v13 = vpack.c.bf16 %v3025_v20, %v3021_v38  ;;  %v2624_v31 = vpop.f32.mrb[28].mxu0  ;;  %3588 = vmatpush1.bf16.msra.mxu0 %v5668_v15  ;;  %v5677_v15 = vld [vmem:[%s7819_s3 + $0x1e0] ss:$8 sps:$4 sm:$0xff]  }
 0x1da   : > { %v5076_v45 = vadd.f32 %v2624_v31, %v7322_v9  ;;  %v2626_v29 = vpop.f32.mrb[29].mxu0  ;;  %3589 = vmatprep.subr.bf16.mxu0 %v5673_v2  ;;  %v5682_v2 = vld [vmem:[%s7819_s3 + $0x1f4] ss:$8 sps:$4 sm:$0xff]  }
 0x1db   : > { %v5077_v11 = vadd.f32 %v2626_v29, %v7327_v63  ;;  %v2628_v50 = vpop.f32.mrb[30].mxu0  ;;  %3544 = vmatprep.mubr.bf16.mxu0 %v3061_v13 }
 0x1dc   : > { %v5078_v55 = vadd.f32 %v2628_v50, %v7322_v9  ;;  %v2630_v28 = vpop.f32.mrb[31].mxu0  ;;  %3545 = vmatmul.mubr.bf16.gmra.mrb[88].mxu0 %v3060_v53  ;;  %v3028_v4 = vmax.f32 %v5076_v45, 0.0  ;;  %v5680_v45 = vld [vmem:[%s7819_s3 + $0x1f0] ss:$8 sps:$4 sm:$0xff]  }
 0x1dd   : > { %v5079_v6 = vadd.f32 %v2630_v28, %v7327_v63  ;;  %3590 = vmatpush1.bf16.msra.mxu0 %v5671_v57  ;;  %v3029_v9 = vmax.f32 %v5077_v11, 0.0 }
 0x1de   : > { %v3032_v22 = vmax.f32 %v5078_v55, 0.0  ;;  %3591 = vmatprep.subr.bf16.mxu0 %v5676_v37 }
 0x1df   : > { %v3033_v0 = vmax.f32 %v5079_v6, 0.0 }
 0x1e0   : > { %v3064_v63 = vpack.c.bf16 %v3032_v22, %v3028_v4 }
 0x1e1   : > { %v3065_v56 = vpack.c.bf16 %v3033_v0, %v3029_v9  ;;  %v2667_v21 = vpop.f32.mrb[32].mxu0  ;;  %3592 = vmatpush1.bf16.msra.mxu0 %v5674_v42 }
 0x1e2   : > { %v2668_v12 = vadd.f32 %v2667_v21, %v7469_v1  ;;  %v2669_v60 = vpop.f32.mrb[33].mxu0  ;;  %3593 = vmatprep.subr.bf16.mxu0 %v5679_v7 }
 0x1e3   : > { %v2670_v38 = vadd.f32 %v2669_v60, %v7475_v46  ;;  %v2671_v40 = vpop.f32.mrb[34].mxu0  ;;  %3554 = vmatprep.mubr.bf16.mxu0 %v3065_v56 }
 0x1e4   : > { %v5081_v20 = vadd.f32 %v7276_v30, %v2668_v12  ;;  %v2672_v53 = vadd.f32 %v2671_v40, %v7469_v1  ;;  %v2673_v13 = vpop.f32.mrb[35].mxu0  ;;  %3555 = vmatmul.mubr.bf16.gmra.mrb[92].mxu0 %v3064_v63 }
 0x1e5   : > { %v5083_v31 = vadd.f32 %v7278_v39, %v2670_v38  ;;  %v2674_v57 = vadd.f32 %v2673_v13, %v7475_v46  ;;  %3594 = vmatpush1.bf16.msra.mxu0 %v5677_v15 }
 0x1e6   : > { %v5085_v29 = vadd.f32 %v7280_v51, %v2672_v53  ;;  %3595 = vmatprep.subr.bf16.mxu0 %v5682_v2  ;;  %v2974_v37 = vmax.f32 %v5081_v20, 0.0 }
 0x1e7   : > { %v5087_v33 = vadd.f32 %v7282_v34, %v2674_v57  ;;  %v2975_v11 = vmax.f32 %v5083_v31, 0.0 }
 0x1e8   : > { %v2978_v30 = vmax.f32 %v5085_v29, 0.0 }
 0x1e9   : > { %v2979_v50 = vmax.f32 %v5087_v33, 0.0  ;;  %v2677_v62 = vpop.f32.mrb[36].mxu0  ;;  %3596 = vmatpush1.bf16.msra.mxu0 %v5680_v45 }
 0x1ea   : > { %v3038_v55 = vpack.c.bf16 %v2978_v30, %v2974_v37  ;;  %v2678_v39 = vadd.f32 %v2677_v62, %v7469_v1  ;;  %v2679_v28 = vpop.f32.mrb[37].mxu0 }
 0x1eb   : > { %v2680_v6 = vadd.f32 %v2679_v28, %v7475_v46  ;;  %v2681_v42 = vpop.f32.mrb[38].mxu0  ;;  %v3039_v4 = vpack.c.bf16 %v2979_v50, %v2975_v11 }
 0x1ec   : > { %v5089_v22 = vadd.f32 %v7284_v24, %v2678_v39  ;;  %v2682_v51 = vadd.f32 %v2681_v42, %v7469_v1  ;;  %v2683_v7 = vpop.f32.mrb[39].mxu0 }
 0x1ed   : > { %v5091_v34 = vadd.f32 %v7286_v10, %v2680_v6  ;;  %v2684_v9 = vadd.f32 %v2683_v7, %v7475_v46  ;;  %3597 = vmatprep.mubr.bf16.mxu0 %v3039_v4 }
 0x1ee   : > { %v5093_v0 = vadd.f32 %v7288_v48, %v2682_v51  ;;  %3598 = vmatmul.mubr.bf16.vlgmr.msra.gmra.mrb[64].mxu0 %v3038_v55  ;;  %v2982_v56 = vmax.f32 %v5089_v22, 0.0 }
 0x1ef   : > { %v5095_v63 = vadd.f32 %v7290_v8, %v2684_v9  ;;  %v2983_v15 = vmax.f32 %v5091_v34, 0.0 }
 0x1f0   : > { %v2986_v21 = vmax.f32 %v5093_v0, 0.0 }
 0x1f1   : > { %v2987_v12 = vmax.f32 %v5095_v63, 0.0  ;;  %v2687_v60 = vpop.f32.mrb[40].mxu0 }
 0x1f2   : > { %v2688_v24 = vadd.f32 %v2687_v60, %v7469_v1  ;;  %v2689_v2 = vpop.f32.mrb[41].mxu0  ;;  %v3042_v38 = vpack.c.bf16 %v2986_v21, %v2982_v56 }
 0x1f3   : > { %v2690_v40 = vadd.f32 %v2689_v2, %v7475_v46  ;;  %v2691_v10 = vpop.f32.mrb[42].mxu0  ;;  %v3043_v20 = vpack.c.bf16 %v2987_v12, %v2983_v15 }
 0x1f4   : > { %v5097_v53 = vadd.f32 %v7292_v59, %v2688_v24  ;;  %v2692_v48 = vadd.f32 %v2691_v10, %v7469_v1  ;;  %v2693_v13 = vpop.f32.mrb[43].mxu0 }
 0x1f5   : > { %v5099_v8 = vadd.f32 %v7294_v16, %v2690_v40  ;;  %v2694_v31 = vadd.f32 %v2693_v13, %v7475_v46  ;;  %3607 = vmatprep.mubr.bf16.mxu0 %v3043_v20 }
 0x1f6   : > { %v5101_v57 = vadd.f32 %v7296_v54, %v2692_v48  ;;  %3608 = vmatmul.mubr.bf16.gmra.mrb[68].mxu0 %v3042_v38  ;;  %v2990_v29 = vmax.f32 %v5097_v53, 0.0 }
 0x1f7   : > { %v5103_v45 = vadd.f32 %v7298_v17, %v2694_v31  ;;  %v2991_v37 = vmax.f32 %v5099_v8, 0.0 }
 0x1f8   : > { %v2994_v33 = vmax.f32 %v5101_v57, 0.0 }
 0x1f9   : > { %v2995_v30 = vmax.f32 %v5103_v45, 0.0  ;;  %v2697_v11 = vpop.f32.mrb[44].mxu0 }
 0x1fa   : > { %v2698_v59 = vadd.f32 %v2697_v11, %v7469_v1  ;;  %v2699_v50 = vpop.f32.mrb[45].mxu0  ;;  %v3046_v62 = vpack.c.bf16 %v2994_v33, %v2990_v29 }
 0x1fb   : > { %v2700_v55 = vadd.f32 %v2699_v50, %v7475_v46  ;;  %v2701_v16 = vpop.f32.mrb[46].mxu0  ;;  %v3047_v39 = vpack.c.bf16 %v2995_v30, %v2991_v37 }
 0x1fc   : > { %v5105_v28 = vadd.f32 %v7300_v47, %v2698_v59  ;;  %v2702_v54 = vadd.f32 %v2701_v16, %v7469_v1  ;;  %v2703_v6 = vpop.f32.mrb[47].mxu0 }
 0x1fd   : > { %v5107_v17 = vadd.f32 %v7302_v36, %v2700_v55  ;;  %v2704_v42 = vadd.f32 %v2703_v6, %v7475_v46  ;;  %3617 = vmatprep.mubr.bf16.mxu0 %v3047_v39 }
 0x1fe   : > { %v5109_v4 = vadd.f32 %v7304_v52, %v2702_v54  ;;  %3618 = vmatmul.mubr.bf16.gmra.mrb[72].mxu0 %v3046_v62  ;;  %v2998_v51 = vmax.f32 %v5105_v28, 0.0 }
 0x1ff   : > { %v5111_v22 = vadd.f32 %v7306_v35, %v2704_v42  ;;  %v2999_v34 = vmax.f32 %v5107_v17, 0.0 }
 0x200   : > { %v3002_v7 = vmax.f32 %v5109_v4, 0.0 }
 0x201   : > { %v3003_v9 = vmax.f32 %v5111_v22, 0.0  ;;  %v2707_v0 = vpop.f32.mrb[48].mxu0 }
 0x202   : > { %v2708_v47 = vadd.f32 %v2707_v0, %v7469_v1  ;;  %v2709_v63 = vpop.f32.mrb[49].mxu0  ;;  %v3050_v56 = vpack.c.bf16 %v3002_v7, %v2998_v51 }
 0x203   : > { %v2710_v21 = vadd.f32 %v2709_v63, %v7475_v46  ;;  %v2711_v36 = vpop.f32.mrb[50].mxu0  ;;  %v3051_v15 = vpack.c.bf16 %v3003_v9, %v2999_v34 }
 0x204   : > { %v5113_v12 = vadd.f32 %v7315_v14, %v2708_v47  ;;  %v2712_v52 = vadd.f32 %v2711_v36, %v7469_v1  ;;  %v2713_v60 = vpop.f32.mrb[51].mxu0 }
 0x205   : > { %v5115_v35 = vadd.f32 %v7317_v58, %v2710_v21  ;;  %v2714_v24 = vadd.f32 %v2713_v60, %v7475_v46  ;;  %3627 = vmatprep.mubr.bf16.mxu0 %v3051_v15 }
 0x206   : > { %v5117_v2 = vadd.f32 %v7319_v27, %v2712_v52  ;;  %3628 = vmatmul.mubr.bf16.gmra.mrb[76].mxu0 %v3050_v56  ;;  %v3006_v40 = vmax.f32 %v5113_v12, 0.0 }
 0x207   : > { %v5119_v38 = vadd.f32 %v7324_v18, %v2714_v24  ;;  %v3007_v20 = vmax.f32 %v5115_v35, 0.0 }
 0x208   : > { %v3010_v10 = vmax.f32 %v5117_v2, 0.0 }
 0x209   : > { %v3011_v53 = vmax.f32 %v5119_v38, 0.0  ;;  %v2717_v48 = vpop.f32.mrb[52].mxu0 }
 0x20a   : > { %v2718_v14 = vadd.f32 %v2717_v48, %v7469_v1  ;;  %v2719_v13 = vpop.f32.mrb[53].mxu0  ;;  %v3054_v8 = vpack.c.bf16 %v3010_v10, %v3006_v40 }
 0x20b   : > { %v2720_v31 = vadd.f32 %v2719_v13, %v7475_v46  ;;  %v2721_v58 = vpop.f32.mrb[54].mxu0  ;;  %v3055_v57 = vpack.c.bf16 %v3011_v53, %v3007_v20 }
 0x20c   : > { %v5121_v45 = vadd.f32 %v7331_v5, %v2718_v14  ;;  %v2722_v27 = vadd.f32 %v2721_v58, %v7469_v1  ;;  %v2723_v29 = vpop.f32.mrb[55].mxu0 }
 0x20d   : > { %v5123_v18 = vadd.f32 %v7334_v44, %v2720_v31  ;;  %v2724_v33 = vadd.f32 %v2723_v29, %v7475_v46  ;;  %3637 = vmatprep.mubr.bf16.mxu0 %v3055_v57 }
 0x20e   : > { %v5125_v37 = vadd.f32 %v7337_v41, %v2722_v27  ;;  %3638 = vmatmul.mubr.bf16.gmra.mrb[80].mxu0 %v3054_v8  ;;  %v3014_v11 = vmax.f32 %v5121_v45, 0.0 }
 0x20f   : > { %v5127_v30 = vadd.f32 %v7339_v49, %v2724_v33  ;;  %v3015_v50 = vmax.f32 %v5123_v18, 0.0 }
 0x210   : > { %v3018_v59 = vmax.f32 %v5125_v37, 0.0 }
 0x211   : > { %v3019_v62 = vmax.f32 %v5127_v30, 0.0  ;;  %v2727_v55 = vpop.f32.mrb[56].mxu0 }
 0x212   : > { %v2728_v5 = vadd.f32 %v2727_v55, %v7469_v1  ;;  %v2729_v16 = vpop.f32.mrb[57].mxu0  ;;  %v3058_v39 = vpack.c.bf16 %v3018_v59, %v3014_v11 }
 0x213   : > { %v2730_v28 = vadd.f32 %v2729_v16, %v7475_v46  ;;  %v2731_v44 = vpop.f32.mrb[58].mxu0  ;;  %v3059_v54 = vpack.c.bf16 %v3019_v62, %v3015_v50 }
 0x214   : > { %v5129_v6 = vadd.f32 %v7349_v23, %v2728_v5  ;;  %v2732_v41 = vadd.f32 %v2731_v44, %v7469_v1  ;;  %v2733_v17 = vpop.f32.mrb[59].mxu0 }
 0x215   : > { %v5131_v49 = vadd.f32 %v7352_v26, %v2730_v28  ;;  %v2734_v42 = vadd.f32 %v2733_v17, %v7475_v46  ;;  %3647 = vmatprep.mubr.bf16.mxu0 %v3059_v54 }
 0x216   : > { %v5133_v4 = vadd.f32 %v7358_v19, %v2732_v41  ;;  %3648 = vmatmul.mubr.bf16.gmra.mrb[84].mxu0 %v3058_v39  ;;  %v3022_v51 = vmax.f32 %v5129_v6, 0.0 }
 0x217   : > { %v5135_v22 = vadd.f32 %v7363_v25, %v2734_v42  ;;  %v3023_v34 = vmax.f32 %v5131_v49, 0.0 }
 0x218   : > { %v3026_v7 = vmax.f32 %v5133_v4, 0.0 }
 0x219   : > { %v3027_v9 = vmax.f32 %v5135_v22, 0.0  ;;  %v2737_v0 = vpop.f32.mrb[60].mxu0 }
 0x21a   : > { %v2738_v23 = vadd.f32 %v2737_v0, %v7469_v1  ;;  %v2739_v47 = vpop.f32.mrb[61].mxu0  ;;  %v3062_v63 = vpack.c.bf16 %v3026_v7, %v3022_v51 }
 0x21b   : > { %v2740_v56 = vadd.f32 %v2739_v47, %v7475_v46  ;;  %v2741_v26 = vpop.f32.mrb[62].mxu0  ;;  %v3063_v21 = vpack.c.bf16 %v3027_v9, %v3023_v34 }
 0x21c   : > { %v5137_v36 = vadd.f32 %v7373_v61, %v2738_v23  ;;  %v2742_v19 = vadd.f32 %v2741_v26, %v7469_v1  ;;  %v2743_v15 = vpop.f32.mrb[63].mxu0  ;;  %v5725_v61 = vmov 0   ;;  %v5683_v26 = vld [vmem:[%s7820_s4] sm:$0xff]  }
 0x21d   : > { %v5139_v25 = vadd.f32 %v7376_v3, %v2740_v56  ;;  %v2744_v12 = vadd.f32 %v2743_v15, %v7475_v46  ;;  %3657 = vmatprep.mubr.bf16.mxu0 %v3063_v21  ;;  %3982 = vmatprep.mubr.bf16.mxu1 %v5725_v61  ;;  %v5684_v21 = vld [vmem:[%s7820_s4 + $0x8] sm:$0xff]   ;;  %v5687_v15 = vld [vmem:[%s7820_s4 + $0x20] sm:$0xff]  }
 0x21e   : > { %v5141_v52 = vadd.f32 %v7382_v32, %v2742_v19  ;;  %3658 = vmatmul.mubr.bf16.gmra.mrb[88].mxu0 %v3062_v63  ;;  %v3030_v35 = vmax.f32 %v5137_v36, 0.0  ;;  %v5685_v36 = vld [vmem:[%s7820_s4 + $0x10] sm:$0xff]   ;;  %v5686_v19 = vld [vmem:[%s7820_s4 + $0x18] sm:$0xff]  }
 0x21f   : > { %v5143_v60 = vadd.f32 %v7387_v43, %v2744_v12  ;;  %v3031_v2 = vmax.f32 %v5139_v25, 0.0  ;;  %v5688_v25 = vld [vmem:[%s7820_s4 + $0x28] sm:$0xff]   ;;  %v5689_v12 = vld [vmem:[%s7820_s4 + $0x30] sm:$0xff]  }
 0x220   : > { %v3034_v24 = vmax.f32 %v5141_v52, 0.0  ;;  %v5690_v52 = vld [vmem:[%s7820_s4 + $0x38] sm:$0xff]  }
 0x221   : > { %v3035_v38 = vmax.f32 %v5143_v60, 0.0  ;;  %v5691_v60 = vld [vmem:[%s7820_s4 + $0x40] sm:$0xff]  }
 0x222   : > { %v3066_v40 = vpack.c.bf16 %v3034_v24, %v3030_v35  ;;  %v5692_v35 = vld [vmem:[%s7820_s4 + $0x48] sm:$0xff]   ;;  %v5693_v24 = vld [vmem:[%s7820_s4 + $0x50] sm:$0xff]  }
 0x223   : > { %v3067_v10 = vpack.c.bf16 %v3035_v38, %v3031_v2  ;;  %v5694_v2 = vld [vmem:[%s7820_s4 + $0x58] sm:$0xff]   ;;  %v5695_v38 = vld [vmem:[%s7820_s4 + $0x60] sm:$0xff]  }
 0x225   : > { %3667 = vmatprep.mubr.bf16.mxu0 %v3067_v10  ;;  %v5697_v10 = vld [vmem:[%s7820_s4 + $0x70] sm:$0xff]  }
 0x226   : > { %3668 = vmatmul.mubr.bf16.gmra.mrb[92].mxu0 %v3066_v40  ;;  %v5696_v40 = vld [vmem:[%s7820_s4 + $0x68] sm:$0xff]  }
 0x2c1   : > { %v3599_v3 = vpop.f32.mrb[64].mxu0 }
 0x2c2   : > { %v3601_v1 = vpop.f32.mrb[65].mxu0 }
 0x2c3   : > { %v3603_v46 = vpop.f32.mrb[66].mxu0 }
 0x2c4   : > { %v3742_v20 = vpack.c.bf16 %v3603_v46, %v3599_v3  ;;  %v3605_v53 = vpop.f32.mrb[67].mxu0  ;;  %v5698_v3 = vld [vmem:[%s7820_s4 + $0x78] sm:$0xff]   ;;  %v5700_v46 = vld [vmem:[%s7820_s4 + $0x88] sm:$0xff]  }
 0x2c5   : > { %v3743_v32 = vpack.c.bf16 %v3605_v53, %v3601_v1  ;;  %v5699_v1 = vld [vmem:[%s7820_s4 + $0x80] sm:$0xff]   ;;  %v5702_v53 = vld [vmem:[%s7820_s4 + $0x98] sm:$0xff]  }
 0x2c7   : > { %3950 = vmatprep.subr.bf16.mxu1 %v3743_v32  ;;  %v5703_v32 = vld [vmem:[%s7820_s4 + $0xa0] sm:$0xff]  }
 0x2c8   : > { %3951 = vmatpush1.bf16.msra.mxu1 %v3742_v20  ;;  %v5701_v20 = vld [vmem:[%s7820_s4 + $0x90] sm:$0xff]  }
 0x2c9   : > { %v3609_v43 = vpop.f32.mrb[68].mxu0 }
 0x2ca   : > { %v3611_v48 = vpop.f32.mrb[69].mxu0 }
 0x2cb   : > { %v3613_v14 = vpop.f32.mrb[70].mxu0 }
 0x2cc   : > { %v3744_v13 = vpack.c.bf16 %v3613_v14, %v3609_v43  ;;  %v3615_v8 = vpop.f32.mrb[71].mxu0  ;;  %v5704_v43 = vld [vmem:[%s7820_s4 + $0xa8] sm:$0xff]   ;;  %v5706_v14 = vld [vmem:[%s7820_s4 + $0xb8] sm:$0xff]  }
 0x2cd   : > { %v3745_v31 = vpack.c.bf16 %v3615_v8, %v3611_v48  ;;  %v5705_v48 = vld [vmem:[%s7820_s4 + $0xb0] sm:$0xff]   ;;  %v5708_v8 = vld [vmem:[%s7820_s4 + $0xc8] sm:$0xff]  }
 0x2cf   : > { %3952 = vmatprep.subr.bf16.mxu1 %v3745_v31  ;;  %v5709_v31 = vld [vmem:[%s7820_s4 + $0xd0] sm:$0xff]  }
 0x2d0   : > { %3953 = vmatpush1.bf16.msra.mxu1 %v3744_v13  ;;  %v5707_v13 = vld [vmem:[%s7820_s4 + $0xc0] sm:$0xff]  }
 0x2d1   : > { %v3619_v58 = vpop.f32.mrb[72].mxu0 }
 0x2d2   : > { %v3621_v57 = vpop.f32.mrb[73].mxu0 }
 0x2d3   : > { %v3623_v45 = vpop.f32.mrb[74].mxu0 }
 0x2d4   : > { %v3746_v27 = vpack.c.bf16 %v3623_v45, %v3619_v58  ;;  %v3625_v29 = vpop.f32.mrb[75].mxu0  ;;  %v5710_v45 = vld [vmem:[%s7820_s4 + $0xd8] sm:$0xff]  }
 0x2d5   : > { %v3747_v18 = vpack.c.bf16 %v3625_v29, %v3621_v57 }
 0x2d7   : > { %3954 = vmatprep.subr.bf16.mxu1 %v3747_v18 }
 0x2d8   : > { %3955 = vmatpush1.bf16.msra.mxu1 %v3746_v27 }
 0x2d9   : > { %v3629_v33 = vpop.f32.mrb[76].mxu0 }
 0x2da   : > { %v3631_v37 = vpop.f32.mrb[77].mxu0 }
 0x2db   : > { %v3633_v30 = vpop.f32.mrb[78].mxu0 }
 0x2dc   : > { %v3748_v11 = vpack.c.bf16 %v3633_v30, %v3629_v33  ;;  %v3635_v59 = vpop.f32.mrb[79].mxu0 }
 0x2dd   : > { %v3749_v50 = vpack.c.bf16 %v3635_v59, %v3631_v37  ;;  %v5711_v37 = vld [vmem:[%s7820_s4 + $0xe0] sm:$0xff]  }
 0x2df   : > { %3956 = vmatprep.subr.bf16.mxu1 %v3749_v50 }
 0x2e0   : > { %3957 = vmatpush1.bf16.msra.mxu1 %v3748_v11 }
 0x2e1   : > { %v3639_v62 = vpop.f32.mrb[80].mxu0 }
 0x2e2   : > { %v3641_v55 = vpop.f32.mrb[81].mxu0 }
 0x2e3   : > { %v3643_v5 = vpop.f32.mrb[82].mxu0 }
 0x2e4   : > { %v3750_v16 = vpack.c.bf16 %v3643_v5, %v3639_v62  ;;  %v3645_v39 = vpop.f32.mrb[83].mxu0  ;;  %v5712_v62 = vld [vmem:[%s7820_s4 + $0xe8] sm:$0xff]  }
 0x2e5   : > { %v3751_v28 = vpack.c.bf16 %v3645_v39, %v3641_v55 }
 0x2e7   : > { %3958 = vmatprep.subr.bf16.mxu1 %v3751_v28  ;;  %v5713_v28 = vld [vmem:[%s7820_s4 + $0xf0] sm:$0xff]  }
 0x2e8   : > { %3959 = vmatpush1.bf16.msra.mxu1 %v3750_v16 }
 0x2e9   : > { %v3649_v44 = vpop.f32.mrb[84].mxu0 }
 0x2ea   : > { %v3651_v54 = vpop.f32.mrb[85].mxu0 }
 0x2eb   : > { %v3653_v6 = vpop.f32.mrb[86].mxu0 }
 0x2ec   : > { %v3752_v41 = vpack.c.bf16 %v3653_v6, %v3649_v44  ;;  %v3655_v17 = vpop.f32.mrb[87].mxu0 }
 0x2ed   : > { %v3753_v49 = vpack.c.bf16 %v3655_v17, %v3651_v54  ;;  %v5714_v17 = vld [vmem:[%s7820_s4 + $0xf8] sm:$0xff]  }
 0x2ef   : > { %3960 = vmatprep.subr.bf16.mxu1 %v3753_v49 }
 0x2f0   : > { %3961 = vmatpush1.bf16.msra.mxu1 %v3752_v41 }
 0x2f1   : > { %v3659_v42 = vpop.f32.mrb[88].mxu0 }
 0x2f2   : > { %v3661_v4 = vpop.f32.mrb[89].mxu0 }
 0x2f3   : > { %v3663_v22 = vpop.f32.mrb[90].mxu0 }
 0x2f4   : > { %v3754_v51 = vpack.c.bf16 %v3663_v22, %v3659_v42  ;;  %v3665_v7 = vpop.f32.mrb[91].mxu0 }
 0x2f5   : > { %v3755_v34 = vpack.c.bf16 %v3665_v7, %v3661_v4 }
 0x2f7   : > { %3962 = vmatprep.subr.bf16.mxu1 %v3755_v34 }
 0x2f8   : > { %3963 = vmatpush1.bf16.msra.mxu1 %v3754_v51 }
 0x2f9   : > { %v3669_v9 = vpop.f32.mrb[92].mxu0 }
 0x2fa   : > { %v3671_v0 = vpop.f32.mrb[93].mxu0 }
 0x2fb   : > { %v3673_v23 = vpop.f32.mrb[94].mxu0 }
 0x2fc   : > { %v3756_v47 = vpack.c.bf16 %v3673_v23, %v3669_v9  ;;  %v3675_v63 = vpop.f32.mrb[95].mxu0 }
 0x2fd   : > { %v3757_v56 = vpack.c.bf16 %v3675_v63, %v3671_v0 }
 0x2ff   : > { %3964 = vmatprep.subr.bf16.mxu1 %v3757_v56 }
 0x300   : > { %3965 = vmatpush1.bf16.msra.mxu1 %v3756_v47 }
 0x303   : > { %3983 = vmatmul.mubr.bf16.vlgmr.msra.gmra.mrb[32].mxu1 %v5683_v26 }
 0x304   : > { %3992 = vmatprep.mubr.bf16.mxu1 %v5725_v61 }
 0x30b   : > { %3993 = vmatmul.mubr.bf16.gmra.mrb[36].mxu1 %v5684_v21 }
 0x30c   : > { %4002 = vmatprep.mubr.bf16.mxu1 %v5725_v61 }
 0x313   : > { %4003 = vmatmul.mubr.bf16.gmra.mrb[40].mxu1 %v5685_v36 }
 0x314   : > { %4012 = vmatprep.mubr.bf16.mxu1 %v5725_v61 }
 0x31b   : > { %4013 = vmatmul.mubr.bf16.gmra.mrb[44].mxu1 %v5686_v19 }
 0x31c   : > { %4022 = vmatprep.mubr.bf16.mxu1 %v5725_v61 }
 0x323   : > { %4023 = vmatmul.mubr.bf16.gmra.mrb[48].mxu1 %v5687_v15 }
 0x324   : > { %4032 = vmatprep.mubr.bf16.mxu1 %v5725_v61 }
 0x32b   : > { %4033 = vmatmul.mubr.bf16.gmra.mrb[52].mxu1 %v5688_v25 }
 0x32c   : > { %4042 = vmatprep.mubr.bf16.mxu1 %v5725_v61 }
 0x333   : > { %4043 = vmatmul.mubr.bf16.gmra.mrb[56].mxu1 %v5689_v12 }
 0x334   : > { %4052 = vmatprep.mubr.bf16.mxu1 %v5725_v61 }
 0x33b   : > { %4053 = vmatmul.mubr.bf16.gmra.mrb[60].mxu1 %v5690_v52 }
 0x33c   : > { %4062 = vmatprep.mubr.bf16.mxu1 %v5725_v61 }
 0x343   : > { %4063 = vmatmul.mubr.bf16.gmra.mrb[64].mxu1 %v5691_v60 }
 0x344   : > { %4072 = vmatprep.mubr.bf16.mxu1 %v5725_v61 }
 0x34b   : > { %4073 = vmatmul.mubr.bf16.gmra.mrb[68].mxu1 %v5692_v35 }
 0x34c   : > { %4082 = vmatprep.mubr.bf16.mxu1 %v5725_v61 }
 0x353   : > { %4083 = vmatmul.mubr.bf16.gmra.mrb[72].mxu1 %v5693_v24 }
 0x354   : > { %4092 = vmatprep.mubr.bf16.mxu1 %v5725_v61 }
 0x35b   : > { %4093 = vmatmul.mubr.bf16.gmra.mrb[76].mxu1 %v5694_v2 }
 0x35c   : > { %4102 = vmatprep.mubr.bf16.mxu1 %v5725_v61 }
 0x363   : > { %4103 = vmatmul.mubr.bf16.gmra.mrb[80].mxu1 %v5695_v38 }
 0x364   : > { %4112 = vmatprep.mubr.bf16.mxu1 %v5725_v61 }
 0x36b   : > { %4113 = vmatmul.mubr.bf16.gmra.mrb[84].mxu1 %v5696_v40 }
 0x36c   : > { %4122 = vmatprep.mubr.bf16.mxu1 %v5725_v61 }
 0x373   : > { %4123 = vmatmul.mubr.bf16.gmra.mrb[88].mxu1 %v5697_v10 }
 0x374   : > { %4132 = vmatprep.mubr.bf16.mxu1 %v5725_v61 }
 0x37b   : > { %4133 = vmatmul.mubr.bf16.gmra.mrb[92].mxu1 %v5698_v3 }
 0x37c   : > { %4142 = vmatprep.mubr.bf16.mxu1 %v5725_v61 }
 0x383   : > { %4143 = vmatmul.mubr.bf16.gmra.mrb[96].mxu1 %v5699_v1 }
 0x384   : > { %4152 = vmatprep.mubr.bf16.mxu1 %v5725_v61 }
 0x38b   : > { %4153 = vmatmul.mubr.bf16.gmra.mrb[100].mxu1 %v5700_v46 }
 0x38c   : > { %4162 = vmatprep.mubr.bf16.mxu1 %v5725_v61 }
 0x393   : > { %4163 = vmatmul.mubr.bf16.gmra.mrb[104].mxu1 %v5701_v20 }
 0x394   : > { %4172 = vmatprep.mubr.bf16.mxu1 %v5725_v61 }
 0x39b   : > { %4173 = vmatmul.mubr.bf16.gmra.mrb[108].mxu1 %v5702_v53 }
 0x39c   : > { %4182 = vmatprep.mubr.bf16.mxu1 %v5725_v61 }
 0x3a3   : > { %4183 = vmatmul.mubr.bf16.gmra.mrb[112].mxu1 %v5703_v32 }
 0x3a4   : > { %4192 = vmatprep.mubr.bf16.mxu1 %v5725_v61 }
 0x3ab   : > { %4193 = vmatmul.mubr.bf16.gmra.mrb[116].mxu1 %v5704_v43 }
 0x3ac   : > { %4202 = vmatprep.mubr.bf16.mxu1 %v5725_v61 }
 0x3b3   : > { %4203 = vmatmul.mubr.bf16.gmra.mrb[120].mxu1 %v5705_v48 }
 0x3b4   : > { %4212 = vmatprep.mubr.bf16.mxu1 %v5725_v61 }
 0x3bb   : > { %4213 = vmatmul.mubr.bf16.gmra.mrb[124].mxu1 %v5706_v14 }
 0x3bc   : > { %4222 = vmatprep.mubr.bf16.mxu1 %v5725_v61 }
 0x3c3   : > { %4223 = vmatmul.mubr.bf16.gmra.mrb[128].mxu1 %v5707_v13 }
 0x3c4   : > { %4232 = vmatprep.mubr.bf16.mxu1 %v5725_v61 }
 0x3cb   : > { %4233 = vmatmul.mubr.bf16.gmra.mrb[132].mxu1 %v5708_v8 }
 0x3cc   : > { %4242 = vmatprep.mubr.bf16.mxu1 %v5725_v61 }
 0x3d3   : > { %4243 = vmatmul.mubr.bf16.gmra.mrb[136].mxu1 %v5709_v31 }
 0x3d4   : > { %4252 = vmatprep.mubr.bf16.mxu1 %v5725_v61 }
 0x3d6   : > { %v3984_v58 = vpop.f32.mrb[32].mxu1 }
 0x3d7   : > { %4303 = vst [vmem:[%s7663_s27] sm:$0xff] %v3984_v58  ;;  %v3986_v57 = vpop.f32.mrb[33].mxu1 }
 0x3d8   : > { %4304 = vst [vmem:[%s7663_s27 + $0x8] sm:$0xff] %v3986_v57  ;;  %v3988_v27 = vpop.f32.mrb[34].mxu1 }
 0x3d9   : > { %4305 = vst [vmem:[%s7663_s27 + $0x10] sm:$0xff] %v3988_v27  ;;  %v3990_v29 = vpop.f32.mrb[35].mxu1 }
 0x3da   : > { %4306 = vst [vmem:[%s7663_s27 + $0x18] sm:$0xff] %v3990_v29 }
 0x3db   : > { %4253 = vmatmul.mubr.bf16.gmra.mrb[140].mxu1 %v5710_v45 }
 0x3dc   : > { %4262 = vmatprep.mubr.bf16.mxu1 %v5725_v61 }
 0x3de   : > { %v3994_v18 = vpop.f32.mrb[36].mxu1 }
 0x3df   : > { %4307 = vst [vmem:[%s7663_s27 + $0x20] sm:$0xff] %v3994_v18  ;;  %v3996_v33 = vpop.f32.mrb[37].mxu1 }
 0x3e0   : > { %4308 = vst [vmem:[%s7663_s27 + $0x28] sm:$0xff] %v3996_v33  ;;  %v3998_v30 = vpop.f32.mrb[38].mxu1 }
 0x3e1   : > { %4309 = vst [vmem:[%s7663_s27 + $0x30] sm:$0xff] %v3998_v30  ;;  %v4000_v11 = vpop.f32.mrb[39].mxu1 }
 0x3e2   : > { %4310 = vst [vmem:[%s7663_s27 + $0x38] sm:$0xff] %v4000_v11 }
 0x3e3   : > { %4263 = vmatmul.mubr.bf16.gmra.mrb[144].mxu1 %v5711_v37 }
 0x3e4   : > { %4272 = vmatprep.mubr.bf16.mxu1 %v5725_v61 }
 0x3e6   : > { %v4004_v59 = vpop.f32.mrb[40].mxu1 }
 0x3e7   : > { %4311 = vst [vmem:[%s7663_s27 + $0x40] sm:$0xff] %v4004_v59  ;;  %v4006_v50 = vpop.f32.mrb[41].mxu1 }
 0x3e8   : > { %4312 = vst [vmem:[%s7663_s27 + $0x48] sm:$0xff] %v4006_v50  ;;  %v4008_v55 = vpop.f32.mrb[42].mxu1 }
 0x3e9   : > { %4313 = vst [vmem:[%s7663_s27 + $0x50] sm:$0xff] %v4008_v55  ;;  %v4010_v5 = vpop.f32.mrb[43].mxu1 }
 0x3ea   : > { %4314 = vst [vmem:[%s7663_s27 + $0x58] sm:$0xff] %v4010_v5 }
 0x3eb   : > { %4273 = vmatmul.mubr.bf16.gmra.mrb[148].mxu1 %v5712_v62 }
 0x3ec   : > { %4282 = vmatprep.mubr.bf16.mxu1 %v5725_v61 }
 0x3ee   : > { %v4014_v16 = vpop.f32.mrb[44].mxu1 }
 0x3ef   : > { %4315 = vst [vmem:[%s7663_s27 + $0x60] sm:$0xff] %v4014_v16  ;;  %v4016_v39 = vpop.f32.mrb[45].mxu1 }
 0x3f0   : > { %4316 = vst [vmem:[%s7663_s27 + $0x68] sm:$0xff] %v4016_v39  ;;  %v4018_v44 = vpop.f32.mrb[46].mxu1 }
 0x3f1   : > { %4317 = vst [vmem:[%s7663_s27 + $0x70] sm:$0xff] %v4018_v44  ;;  %v4020_v54 = vpop.f32.mrb[47].mxu1 }
 0x3f2   : > { %4318 = vst [vmem:[%s7663_s27 + $0x78] sm:$0xff] %v4020_v54 }
 0x3f3   : > { %4283 = vmatmul.mubr.bf16.gmra.mrb[152].mxu1 %v5713_v28 }
 0x3f4   : > { %4292 = vmatprep.mubr.bf16.mxu1 %v5725_v61 }
 0x3f6   : > { %v4024_v6 = vpop.f32.mrb[48].mxu1 }
 0x3f7   : > { %4319 = vst [vmem:[%s7663_s27 + $0x80] sm:$0xff] %v4024_v6  ;;  %v4026_v41 = vpop.f32.mrb[49].mxu1 }
 0x3f8   : > { %4320 = vst [vmem:[%s7663_s27 + $0x88] sm:$0xff] %v4026_v41  ;;  %v4028_v49 = vpop.f32.mrb[50].mxu1 }
 0x3f9   : > { %4321 = vst [vmem:[%s7663_s27 + $0x90] sm:$0xff] %v4028_v49  ;;  %v4030_v42 = vpop.f32.mrb[51].mxu1 }
 0x3fa   : > { %4322 = vst [vmem:[%s7663_s27 + $0x98] sm:$0xff] %v4030_v42 }
 0x3fb   : > { %4293 = vmatmul.mubr.bf16.gmra.mrb[156].mxu1 %v5714_v17 }
 0x3fe   : > { %v4034_v61 = vpop.f32.mrb[52].mxu1 }
 0x3ff   : > { %4323 = vst [vmem:[%s7663_s27 + $0xa0] sm:$0xff] %v4034_v61  ;;  %v4036_v4 = vpop.f32.mrb[53].mxu1 }
 0x400   : > { %4324 = vst [vmem:[%s7663_s27 + $0xa8] sm:$0xff] %v4036_v4  ;;  %v4038_v22 = vpop.f32.mrb[54].mxu1 }
 0x401   : > { %4325 = vst [vmem:[%s7663_s27 + $0xb0] sm:$0xff] %v4038_v22  ;;  %v4040_v51 = vpop.f32.mrb[55].mxu1 }
 0x402   : > { %4326 = vst [vmem:[%s7663_s27 + $0xb8] sm:$0xff] %v4040_v51 }
 0x406   : > { %v4044_v7 = vpop.f32.mrb[56].mxu1 }
 0x407   : > { %4327 = vst [vmem:[%s7663_s27 + $0xc0] sm:$0xff] %v4044_v7  ;;  %v4046_v34 = vpop.f32.mrb[57].mxu1 }
 0x408   : > { %4328 = vst [vmem:[%s7663_s27 + $0xc8] sm:$0xff] %v4046_v34  ;;  %v4048_v9 = vpop.f32.mrb[58].mxu1 }
 0x409   : > { %4329 = vst [vmem:[%s7663_s27 + $0xd0] sm:$0xff] %v4048_v9  ;;  %v4050_v0 = vpop.f32.mrb[59].mxu1 }
 0x40a   : > { %4330 = vst [vmem:[%s7663_s27 + $0xd8] sm:$0xff] %v4050_v0 }
 0x40e   : > { %v4054_v23 = vpop.f32.mrb[60].mxu1 }
 0x40f   : > { %4331 = vst [vmem:[%s7663_s27 + $0xe0] sm:$0xff] %v4054_v23  ;;  %v4056_v47 = vpop.f32.mrb[61].mxu1 }
 0x410   : > { %4332 = vst [vmem:[%s7663_s27 + $0xe8] sm:$0xff] %v4056_v47  ;;  %v4058_v63 = vpop.f32.mrb[62].mxu1 }
 0x411   : > { %4333 = vst [vmem:[%s7663_s27 + $0xf0] sm:$0xff] %v4058_v63  ;;  %v4060_v56 = vpop.f32.mrb[63].mxu1 }
 0x412   : > { %4334 = vst [vmem:[%s7663_s27 + $0xf8] sm:$0xff] %v4060_v56 }
 0x416   : > { %v4064_v26 = vpop.f32.mrb[64].mxu1 }
 0x417   : > { %4335 = vst [vmem:[%s7663_s27 + $0x100] sm:$0xff] %v4064_v26  ;;  %v4066_v21 = vpop.f32.mrb[65].mxu1 }
 0x418   : > { %4336 = vst [vmem:[%s7663_s27 + $0x108] sm:$0xff] %v4066_v21  ;;  %v4068_v36 = vpop.f32.mrb[66].mxu1 }
 0x419   : > { %4337 = vst [vmem:[%s7663_s27 + $0x110] sm:$0xff] %v4068_v36  ;;  %v4070_v19 = vpop.f32.mrb[67].mxu1 }
 0x41a   : > { %4338 = vst [vmem:[%s7663_s27 + $0x118] sm:$0xff] %v4070_v19 }
 0x41e   : > { %v4074_v15 = vpop.f32.mrb[68].mxu1 }
 0x41f   : > { %4339 = vst [vmem:[%s7663_s27 + $0x120] sm:$0xff] %v4074_v15  ;;  %v4076_v25 = vpop.f32.mrb[69].mxu1 }
 0x420   : > { %4340 = vst [vmem:[%s7663_s27 + $0x128] sm:$0xff] %v4076_v25  ;;  %v4078_v12 = vpop.f32.mrb[70].mxu1 }
 0x421   : > { %4341 = vst [vmem:[%s7663_s27 + $0x130] sm:$0xff] %v4078_v12  ;;  %v4080_v52 = vpop.f32.mrb[71].mxu1 }
 0x422   : > { %4342 = vst [vmem:[%s7663_s27 + $0x138] sm:$0xff] %v4080_v52 }
 0x426   : > { %v4084_v60 = vpop.f32.mrb[72].mxu1 }
 0x427   : > { %4343 = vst [vmem:[%s7663_s27 + $0x140] sm:$0xff] %v4084_v60  ;;  %v4086_v35 = vpop.f32.mrb[73].mxu1 }
 0x428   : > { %4344 = vst [vmem:[%s7663_s27 + $0x148] sm:$0xff] %v4086_v35  ;;  %v4088_v24 = vpop.f32.mrb[74].mxu1 }
 0x429   : > { %4345 = vst [vmem:[%s7663_s27 + $0x150] sm:$0xff] %v4088_v24  ;;  %v4090_v2 = vpop.f32.mrb[75].mxu1 }
 0x42a   : > { %4346 = vst [vmem:[%s7663_s27 + $0x158] sm:$0xff] %v4090_v2 }
 0x42e   : > { %v4094_v38 = vpop.f32.mrb[76].mxu1 }
 0x42f   : > { %4347 = vst [vmem:[%s7663_s27 + $0x160] sm:$0xff] %v4094_v38  ;;  %v4096_v40 = vpop.f32.mrb[77].mxu1 }
 0x430   : > { %4348 = vst [vmem:[%s7663_s27 + $0x168] sm:$0xff] %v4096_v40  ;;  %v4098_v10 = vpop.f32.mrb[78].mxu1 }
 0x431   : > { %4349 = vst [vmem:[%s7663_s27 + $0x170] sm:$0xff] %v4098_v10  ;;  %v4100_v3 = vpop.f32.mrb[79].mxu1 }
 0x432   : > { %4350 = vst [vmem:[%s7663_s27 + $0x178] sm:$0xff] %v4100_v3 }
 0x436   : > { %v4104_v1 = vpop.f32.mrb[80].mxu1 }
 0x437   : > { %4351 = vst [vmem:[%s7663_s27 + $0x180] sm:$0xff] %v4104_v1  ;;  %v4106_v46 = vpop.f32.mrb[81].mxu1 }
 0x438   : > { %4352 = vst [vmem:[%s7663_s27 + $0x188] sm:$0xff] %v4106_v46  ;;  %v4108_v20 = vpop.f32.mrb[82].mxu1 }
 0x439   : > { %4353 = vst [vmem:[%s7663_s27 + $0x190] sm:$0xff] %v4108_v20  ;;  %v4110_v53 = vpop.f32.mrb[83].mxu1 }
 0x43a   : > { %4354 = vst [vmem:[%s7663_s27 + $0x198] sm:$0xff] %v4110_v53 }
 0x43e   : > { %v4114_v32 = vpop.f32.mrb[84].mxu1 }
 0x43f   : > { %4355 = vst [vmem:[%s7663_s27 + $0x1a0] sm:$0xff] %v4114_v32  ;;  %v4116_v43 = vpop.f32.mrb[85].mxu1 }
 0x440   : > { %4356 = vst [vmem:[%s7663_s27 + $0x1a8] sm:$0xff] %v4116_v43  ;;  %v4118_v48 = vpop.f32.mrb[86].mxu1 }
 0x441   : > { %4357 = vst [vmem:[%s7663_s27 + $0x1b0] sm:$0xff] %v4118_v48  ;;  %v4120_v14 = vpop.f32.mrb[87].mxu1 }
 0x442   : > { %4358 = vst [vmem:[%s7663_s27 + $0x1b8] sm:$0xff] %v4120_v14 }
 0x446   : > { %v4124_v13 = vpop.f32.mrb[88].mxu1 }
 0x447   : > { %4359 = vst [vmem:[%s7663_s27 + $0x1c0] sm:$0xff] %v4124_v13  ;;  %v4126_v8 = vpop.f32.mrb[89].mxu1 }
 0x448   : > { %4360 = vst [vmem:[%s7663_s27 + $0x1c8] sm:$0xff] %v4126_v8  ;;  %v4128_v31 = vpop.f32.mrb[90].mxu1 }
 0x449   : > { %4361 = vst [vmem:[%s7663_s27 + $0x1d0] sm:$0xff] %v4128_v31  ;;  %v4130_v58 = vpop.f32.mrb[91].mxu1 }
 0x44a   : > { %4362 = vst [vmem:[%s7663_s27 + $0x1d8] sm:$0xff] %v4130_v58 }
 0x44e   : > { %v4134_v57 = vpop.f32.mrb[92].mxu1 }
 0x44f   : > { %4363 = vst [vmem:[%s7663_s27 + $0x1e0] sm:$0xff] %v4134_v57  ;;  %v4136_v45 = vpop.f32.mrb[93].mxu1 }
 0x450   : > { %4364 = vst [vmem:[%s7663_s27 + $0x1e8] sm:$0xff] %v4136_v45  ;;  %v4138_v27 = vpop.f32.mrb[94].mxu1 }
 0x451   : > { %4365 = vst [vmem:[%s7663_s27 + $0x1f0] sm:$0xff] %v4138_v27  ;;  %v4140_v29 = vpop.f32.mrb[95].mxu1 }
 0x452   : > { %4366 = vst [vmem:[%s7663_s27 + $0x1f8] sm:$0xff] %v4140_v29 }
 0x456   : > { %v4144_v18 = vpop.f32.mrb[96].mxu1 }
 0x457   : > { %4367 = vst [vmem:[%s7663_s27 + $0x200] sm:$0xff] %v4144_v18  ;;  %v4146_v33 = vpop.f32.mrb[97].mxu1 }
 0x458   : > { %4368 = vst [vmem:[%s7663_s27 + $0x208] sm:$0xff] %v4146_v33  ;;  %v4148_v37 = vpop.f32.mrb[98].mxu1 }
 0x459   : > { %4369 = vst [vmem:[%s7663_s27 + $0x210] sm:$0xff] %v4148_v37  ;;  %v4150_v30 = vpop.f32.mrb[99].mxu1 }
 0x45a   : > { %4370 = vst [vmem:[%s7663_s27 + $0x218] sm:$0xff] %v4150_v30 }
 0x45e   : > { %v4154_v11 = vpop.f32.mrb[100].mxu1 }
 0x45f   : > { %4371 = vst [vmem:[%s7663_s27 + $0x220] sm:$0xff] %v4154_v11  ;;  %v4156_v59 = vpop.f32.mrb[101].mxu1 }
 0x460   : > { %4372 = vst [vmem:[%s7663_s27 + $0x228] sm:$0xff] %v4156_v59  ;;  %v4158_v50 = vpop.f32.mrb[102].mxu1 }
 0x461   : > { %4373 = vst [vmem:[%s7663_s27 + $0x230] sm:$0xff] %v4158_v50  ;;  %v4160_v62 = vpop.f32.mrb[103].mxu1 }
 0x462   : > { %4374 = vst [vmem:[%s7663_s27 + $0x238] sm:$0xff] %v4160_v62 }
 0x466   : > { %v4164_v55 = vpop.f32.mrb[104].mxu1 }
 0x467   : > { %4375 = vst [vmem:[%s7663_s27 + $0x240] sm:$0xff] %v4164_v55  ;;  %v4166_v5 = vpop.f32.mrb[105].mxu1 }
 0x468   : > { %4376 = vst [vmem:[%s7663_s27 + $0x248] sm:$0xff] %v4166_v5  ;;  %v4168_v16 = vpop.f32.mrb[106].mxu1 }
 0x469   : > { %4377 = vst [vmem:[%s7663_s27 + $0x250] sm:$0xff] %v4168_v16  ;;  %v4170_v39 = vpop.f32.mrb[107].mxu1 }
 0x46a   : > { %4378 = vst [vmem:[%s7663_s27 + $0x258] sm:$0xff] %v4170_v39 }
 0x46e   : > { %v4174_v28 = vpop.f32.mrb[108].mxu1 }
 0x46f   : > { %4379 = vst [vmem:[%s7663_s27 + $0x260] sm:$0xff] %v4174_v28  ;;  %v4176_v44 = vpop.f32.mrb[109].mxu1 }
 0x470   : > { %4380 = vst [vmem:[%s7663_s27 + $0x268] sm:$0xff] %v4176_v44  ;;  %v4178_v54 = vpop.f32.mrb[110].mxu1 }
 0x471   : > { %4381 = vst [vmem:[%s7663_s27 + $0x270] sm:$0xff] %v4178_v54  ;;  %v4180_v6 = vpop.f32.mrb[111].mxu1 }
 0x472   : > { %4382 = vst [vmem:[%s7663_s27 + $0x278] sm:$0xff] %v4180_v6 }
 0x476   : > { %v4184_v41 = vpop.f32.mrb[112].mxu1 }
 0x477   : > { %4383 = vst [vmem:[%s7663_s27 + $0x280] sm:$0xff] %v4184_v41  ;;  %v4186_v17 = vpop.f32.mrb[113].mxu1 }
 0x478   : > { %4384 = vst [vmem:[%s7663_s27 + $0x288] sm:$0xff] %v4186_v17  ;;  %v4188_v49 = vpop.f32.mrb[114].mxu1 }
 0x479   : > { %4385 = vst [vmem:[%s7663_s27 + $0x290] sm:$0xff] %v4188_v49  ;;  %v4190_v42 = vpop.f32.mrb[115].mxu1 }
 0x47a   : > { %4386 = vst [vmem:[%s7663_s27 + $0x298] sm:$0xff] %v4190_v42 }
 0x47e   : > { %v4194_v61 = vpop.f32.mrb[116].mxu1 }
 0x47f   : > { %4387 = vst [vmem:[%s7663_s27 + $0x2a0] sm:$0xff] %v4194_v61  ;;  %v4196_v4 = vpop.f32.mrb[117].mxu1 }
 0x480   : > { %4388 = vst [vmem:[%s7663_s27 + $0x2a8] sm:$0xff] %v4196_v4  ;;  %v4198_v22 = vpop.f32.mrb[118].mxu1 }
 0x481   : > { %4389 = vst [vmem:[%s7663_s27 + $0x2b0] sm:$0xff] %v4198_v22  ;;  %v4200_v51 = vpop.f32.mrb[119].mxu1 }
 0x482   : > { %4390 = vst [vmem:[%s7663_s27 + $0x2b8] sm:$0xff] %v4200_v51 }
 0x486   : > { %v4204_v7 = vpop.f32.mrb[120].mxu1 }
 0x487   : > { %4391 = vst [vmem:[%s7663_s27 + $0x2c0] sm:$0xff] %v4204_v7  ;;  %v4206_v34 = vpop.f32.mrb[121].mxu1 }
 0x488   : > { %4392 = vst [vmem:[%s7663_s27 + $0x2c8] sm:$0xff] %v4206_v34  ;;  %v4208_v9 = vpop.f32.mrb[122].mxu1 }
 0x489   : > { %4393 = vst [vmem:[%s7663_s27 + $0x2d0] sm:$0xff] %v4208_v9  ;;  %v4210_v0 = vpop.f32.mrb[123].mxu1 }
 0x48a   : > { %4394 = vst [vmem:[%s7663_s27 + $0x2d8] sm:$0xff] %v4210_v0 }
 0x48e   : > { %v4214_v23 = vpop.f32.mrb[124].mxu1 }
 0x48f   : > { %4395 = vst [vmem:[%s7663_s27 + $0x2e0] sm:$0xff] %v4214_v23  ;;  %v4216_v47 = vpop.f32.mrb[125].mxu1 }
 0x490   : > { %4396 = vst [vmem:[%s7663_s27 + $0x2e8] sm:$0xff] %v4216_v47  ;;  %v4218_v63 = vpop.f32.mrb[126].mxu1 }
 0x491   : > { %4397 = vst [vmem:[%s7663_s27 + $0x2f0] sm:$0xff] %v4218_v63  ;;  %v4220_v56 = vpop.f32.mrb[127].mxu1 }
 0x492   : > { %4398 = vst [vmem:[%s7663_s27 + $0x2f8] sm:$0xff] %v4220_v56 }
 0x496   : > { %v4224_v26 = vpop.f32.mrb[128].mxu1 }
 0x497   : > { %4399 = vst [vmem:[%s7663_s27 + $0x300] sm:$0xff] %v4224_v26  ;;  %v4226_v21 = vpop.f32.mrb[129].mxu1 }
 0x498   : > { %4400 = vst [vmem:[%s7663_s27 + $0x308] sm:$0xff] %v4226_v21  ;;  %v4228_v36 = vpop.f32.mrb[130].mxu1 }
 0x499   : > { %4401 = vst [vmem:[%s7663_s27 + $0x310] sm:$0xff] %v4228_v36  ;;  %v4230_v19 = vpop.f32.mrb[131].mxu1 }
 0x49a   : > { %4402 = vst [vmem:[%s7663_s27 + $0x318] sm:$0xff] %v4230_v19 }
 0x49e   : > { %v4234_v15 = vpop.f32.mrb[132].mxu1 }
 0x49f   : > { %4403 = vst [vmem:[%s7663_s27 + $0x320] sm:$0xff] %v4234_v15  ;;  %v4236_v25 = vpop.f32.mrb[133].mxu1 }
 0x4a0   : > { %4404 = vst [vmem:[%s7663_s27 + $0x328] sm:$0xff] %v4236_v25  ;;  %v4238_v12 = vpop.f32.mrb[134].mxu1 }
 0x4a1   : > { %4405 = vst [vmem:[%s7663_s27 + $0x330] sm:$0xff] %v4238_v12  ;;  %v4240_v52 = vpop.f32.mrb[135].mxu1 }
 0x4a2   : > { %4406 = vst [vmem:[%s7663_s27 + $0x338] sm:$0xff] %v4240_v52 }
 0x4a6   : > { %v4244_v60 = vpop.f32.mrb[136].mxu1 }
 0x4a7   : > { %4407 = vst [vmem:[%s7663_s27 + $0x340] sm:$0xff] %v4244_v60  ;;  %v4246_v35 = vpop.f32.mrb[137].mxu1 }
 0x4a8   : > { %4408 = vst [vmem:[%s7663_s27 + $0x348] sm:$0xff] %v4246_v35  ;;  %v4248_v24 = vpop.f32.mrb[138].mxu1 }
 0x4a9   : > { %4409 = vst [vmem:[%s7663_s27 + $0x350] sm:$0xff] %v4248_v24  ;;  %v4250_v2 = vpop.f32.mrb[139].mxu1 }
 0x4aa   : > { %4410 = vst [vmem:[%s7663_s27 + $0x358] sm:$0xff] %v4250_v2 }
 0x4ae   : > { %v4254_v38 = vpop.f32.mrb[140].mxu1 }
 0x4af   : > { %4411 = vst [vmem:[%s7663_s27 + $0x360] sm:$0xff] %v4254_v38  ;;  %v4256_v40 = vpop.f32.mrb[141].mxu1 }
 0x4b0   : > { %4412 = vst [vmem:[%s7663_s27 + $0x368] sm:$0xff] %v4256_v40  ;;  %v4258_v10 = vpop.f32.mrb[142].mxu1 }
 0x4b1   : > { %4413 = vst [vmem:[%s7663_s27 + $0x370] sm:$0xff] %v4258_v10  ;;  %v4260_v3 = vpop.f32.mrb[143].mxu1 }
 0x4b2   : > { %4414 = vst [vmem:[%s7663_s27 + $0x378] sm:$0xff] %v4260_v3 }
 0x4b6   : > { %v4264_v1 = vpop.f32.mrb[144].mxu1 }
 0x4b7   : > { %4415 = vst [vmem:[%s7663_s27 + $0x380] sm:$0xff] %v4264_v1  ;;  %v4266_v46 = vpop.f32.mrb[145].mxu1 }
 0x4b8   : > { %4416 = vst [vmem:[%s7663_s27 + $0x388] sm:$0xff] %v4266_v46  ;;  %v4268_v20 = vpop.f32.mrb[146].mxu1 }
 0x4b9   : > { %4417 = vst [vmem:[%s7663_s27 + $0x390] sm:$0xff] %v4268_v20  ;;  %v4270_v53 = vpop.f32.mrb[147].mxu1 }
 0x4ba   : > { %4418 = vst [vmem:[%s7663_s27 + $0x398] sm:$0xff] %v4270_v53 }
 0x4be   : > { %v4274_v32 = vpop.f32.mrb[148].mxu1 }
 0x4bf   : > { %4419 = vst [vmem:[%s7663_s27 + $0x3a0] sm:$0xff] %v4274_v32  ;;  %v4276_v43 = vpop.f32.mrb[149].mxu1 }
 0x4c0   : > { %4420 = vst [vmem:[%s7663_s27 + $0x3a8] sm:$0xff] %v4276_v43  ;;  %v4278_v48 = vpop.f32.mrb[150].mxu1 }
 0x4c1   : > { %4421 = vst [vmem:[%s7663_s27 + $0x3b0] sm:$0xff] %v4278_v48  ;;  %v4280_v14 = vpop.f32.mrb[151].mxu1 }
 0x4c2   : > { %4422 = vst [vmem:[%s7663_s27 + $0x3b8] sm:$0xff] %v4280_v14 }
 0x4c6   : > { %v4284_v13 = vpop.f32.mrb[152].mxu1 }
 0x4c7   : > { %4423 = vst [vmem:[%s7663_s27 + $0x3c0] sm:$0xff] %v4284_v13  ;;  %v4286_v8 = vpop.f32.mrb[153].mxu1 }
 0x4c8   : > { %4424 = vst [vmem:[%s7663_s27 + $0x3c8] sm:$0xff] %v4286_v8  ;;  %v4288_v31 = vpop.f32.mrb[154].mxu1 }
 0x4c9   : > { %4425 = vst [vmem:[%s7663_s27 + $0x3d0] sm:$0xff] %v4288_v31  ;;  %v4290_v58 = vpop.f32.mrb[155].mxu1 }
 0x4ca   : > { %4426 = vst [vmem:[%s7663_s27 + $0x3d8] sm:$0xff] %v4290_v58 }
 0x4ce   : > { %v4294_v57 = vpop.f32.mrb[156].mxu1 }
 0x4cf   : > { %4427 = vst [vmem:[%s7663_s27 + $0x3e0] sm:$0xff] %v4294_v57  ;;  %v4296_v45 = vpop.f32.mrb[157].mxu1 }
 0x4d0   : > { %4428 = vst [vmem:[%s7663_s27 + $0x3e8] sm:$0xff] %v4296_v45  ;;  %v4298_v27 = vpop.f32.mrb[158].mxu1 }
 0x4d1   : > { %4429 = vst [vmem:[%s7663_s27 + $0x3f0] sm:$0xff] %v4298_v27  ;;  %v4300_v29 = vpop.f32.mrb[159].mxu1 }
 0x4d2   : > { %4430 = vst [vmem:[%s7663_s27 + $0x3f8] sm:$0xff] %v4300_v29 }
 0x4d3 PF: > { %s15_s18 = sadd.s32 1, %s5721_s18  }
 0x4d4   : > { %p12_p5 = scmp.ge.s32.totalorder %s15_s18, 4  }
 0x4d6   :  { %14 = sbr.rel (!%p12_p5) target bundleno = 1 (0x1), region = 71 }

</bundles_post_ra>
